<compile_context>
chip_gen: v7x
topology: tpu7x:2x2x1
jax: 0.10.0
libtpu: 0.0.40
codegen_flags: <defaults>
</compile_context>

<pallas_src>
import numpy as np
import jax
import jax.numpy as jnp
from jax.experimental import pallas as pl
from jax.experimental.pallas import tpu as pltpu


LANE = 128       # lane-dense padding for kernel outputs
NUM_TAX = 33     # taxonomy classes of MLPClassifier


# --------------------------------------------------------------------------- kernel

def make_ae_kernel(cfg):
    B = cfg["B"]
    K = cfg["K"]
    level_sizes = cfg["level_sizes"]        # nlev + 1 vertex counts
    out_channels = cfg["out_channels"]      # nlev channel counts
    nlev = len(out_channels)
    num_vert = level_sizes[-1]
    N0 = level_sizes[0]

    def dot(a, b):
        return jnp.dot(a, b, preferred_element_type=jnp.float32)

    def elu(v):
        # PyTorch F.elu(alpha=1): x>0 -> x, else exp(x)-1
        return jnp.where(v > 0, v, jnp.exp(jnp.minimum(v, 0.0)) - 1.0)

    def cheb(h, L, L2, w_ref, bias):
        """ChebConv: sum_k T_k(L) @ h @ W_k + bias.   h: (N, Fin) -> (N, Fout).
        K matmuls accumulate into one f32 register accumulator (no concat)."""
        y = dot(h, w_ref[0])                               # T0 = h
        if K > 1:
            t_prev, t_cur = h, dot(L, h)                   # T1 = L h
            y = y + dot(t_cur, w_ref[1])
            for k in range(2, K):
                t_prev, t_cur = t_cur, dot(L2, t_cur) - t_prev   # Tk = 2L T_{k-1} - T_{k-2}
                y = y + dot(t_cur, w_ref[k])
        return y + bias

    def kernel(*refs):
        it = iter(refs)
        x_ref = next(it)                                   # (B*N0, Cin)  batch-major rows
        L_refs = [next(it) for _ in range(nlev)]           # (Ni, Ni) scaled Laplacians
        D_refs = [next(it) for _ in range(nlev)]           # (N_{i+1}, N_i) down-pool
        U_refs = [next(it) for _ in range(nlev)]           # (N_i, N_{i+1}) up-pool
        en_w = [(next(it), next(it)) for _ in range(nlev)]  # encoder ChebConv (K,Fin,Fout),(1,Fout)
        wen_ref, ben_ref = next(it), next(it)              # en_lin (nv, C, latent), (1, latent)
        wde_ref, bde_ref = next(it), next(it)              # de_lin (nv, latent, C), (nv, C)
        de_w = [(next(it), next(it)) for _ in range(nlev)]  # decoder ChebConvs
        wf_ref, bf_ref = next(it), next(it)                # final ChebConv, lane-padded to LANE
        wm1_ref, bm1_ref = next(it), next(it)
        wm2_ref, bm2_ref = next(it), next(it)
        wm3_ref, bm3_ref = next(it), next(it)              # mlp3 lane-padded to LANE
        out_ref = next(it)                                 # (B*N0, LANE)
        tax_ref = next(it)                                 # (B, LANE)
        z_scr = next(it)                                   # VMEM (B, latent)
        d_scr = next(it)                                   # VMEM (num_vert, c_last)

        # Invariant operands: read once; hoist 2*L out of the recursion.
        L = [r[...] for r in L_refs]
        L2 = [l + l for l in L]
        D = [r[...] for r in D_refs]
        U = [r[...] for r in U_refs]
        ben = ben_ref[...]
        bde = bde_ref[...]
        x_all = x_ref[...]

        # ---------------- encoder: (ChebConv + ELU + down-pool) x nlev, then en_lin ----
        for b in range(B):
            h = x_all[b * N0:(b + 1) * N0, :]                              # (N0, Cin)
            for i in range(nlev):
                w_r, b_r = en_w[i]
                h = dot(D[i], elu(cheb(h, L[i], L2[i], w_r, b_r[...])))    # (N_{i+1}, C_i)
            # en_lin restructured on the (num_vert, C) layout:
            #   z_b = bias + sum_v h[v, :] @ W_en[v]      (no flatten / transpose)
            zb = ben
            for v in range(num_vert):
                zb = zb + dot(h[v:v + 1, :], wen_ref[v])                   # (1, latent)
            z_scr[pl.ds(b, 1), :] = zb
        z = z_scr[...]                                                     # (B, latent)

        # ---------------- taxonomy MLP (whole batch, lane-dense padded output) --------
        t = jnp.maximum(dot(z, wm1_ref[...]) + bm1_ref[...], 0.0)
        t = jnp.maximum(dot(t, wm2_ref[...]) + bm2_ref[...], 0.0)
        tax_ref[...] = dot(t, wm3_ref[...]) + bm3_ref[...]                 # (B, LANE)

        # ---------------- decoder: de_lin, (up-pool + ChebConv + ELU) x nlev, final ---
        for b in range(B):
            zb = z[b:b + 1, :]                                             # (1, latent)
            # de_lin restructured: d[v, :] = z_b @ W_de[v] + b_de[v]  (no reshape)
            for v in range(num_vert):
                d_scr[pl.ds(v, 1), :] = dot(zb, wde_ref[v]) + bde[v:v + 1, :]
            d = d_scr[...]                                                 # (num_vert, c_last)
            for j in range(nlev):
                lvl = nlev - 1 - j
                w_r, b_r = de_w[j]
                d = elu(cheb(dot(U[lvl], d), L[lvl], L2[lvl], w_r, b_r[...]))
            # final ChebConv (no ELU); weight/bias padded to LANE lanes -> dense store
            y = cheb(d, L[0], L2[0], wf_ref, bf_ref[...])                  # (N0, LANE)
            out_ref[pl.ds(b * N0, N0), :] = y

    return kernel


# ------------------------------------------------------------------ wrapper / params

def xavier_uniform(key, shape, fan_in, fan_out):
    bound = float(np.sqrt(6.0 / (fan_in + fan_out)))
    return jax.random.uniform(key, shape, jnp.float32, -bound, bound)


def ring_edge_index(n):
    src = np.arange(n)
    dst = (src + 1) % n
    return np.stack([np.concatenate([src, dst]), np.concatenate([dst, src])])


def scaled_laplacian(edge_index, n):
    # torch_geometric ChebConv, normalization='sym', lambda_max=2:
    #   L_hat = (2/lambda_max)(I - D^-1/2 A D^-1/2) - I = -D^-1/2 A D^-1/2
    A = np.zeros((n, n), np.float32)
    A[edge_index[0], edge_index[1]] = 1.0
    deg = A.sum(axis=1)
    dinv = 1.0 / np.sqrt(np.maximum(deg, 1e-12))
    return jnp.asarray(-(dinv[:, None] * A * dinv[None, :]))


def down_transform_dense(m, n):            # (m, n) with n = 2m, average-pool vertex pairs
    T = np.zeros((m, n), np.float32)
    T[np.arange(m), 2 * np.arange(m)] = 0.5
    T[np.arange(m), 2 * np.arange(m) + 1] = 0.5
    return jnp.asarray(T)


def up_transform_dense(n, m):              # (n, m) with n = 2m, copy-up
    U = np.zeros((n, m), np.float32)
    U[2 * np.arange(m), np.arange(m)] = 1.0
    U[2 * np.arange(m) + 1, np.arange(m)] = 1.0
    return jnp.asarray(U)


def build_params(key, in_channels, out_channels, output_channels, latent, num_vert, K):
    keys = iter(jax.random.split(key, 64))
    c_last = out_channels[-1]
    p = {}

    def cheb_w(kk, fin, fout):
        return (xavier_uniform(kk, (K, fin, fout), fin, fout),
                jnp.zeros((1, fout), jnp.float32))

    # encoder ChebConvs
    p["en_conv"] = []
    prev = in_channels
    for oc in out_channels:
        p["en_conv"].append(cheb_w(next(keys), prev, oc))
        prev = oc

    # encoder Linear: num_vert*c_last -> latent, pre-reshaped to (num_vert, C, latent)
    fin = num_vert * c_last
    w_en = xavier_uniform(next(keys), (fin, latent), fin, latent)
    p["en_lin"] = (w_en.reshape(num_vert, c_last, latent),
                   jnp.zeros((1, latent), jnp.float32))

    # decoder Linear: latent -> num_vert*c_last, pre-reshaped to (num_vert, latent, C)
    w_de = xavier_uniform(next(keys), (latent, fin), latent, fin)
    p["de_lin"] = (jnp.transpose(w_de.reshape(latent, num_vert, c_last), (1, 0, 2)),
                   jnp.zeros((num_vert, c_last), jnp.float32))

    # decoder Deblock ChebConvs
    p["de_conv"] = []
    for idx in range(len(out_channels)):
        if idx == 0:
            fi, fo = out_channels[-1], out_channels[-1]
        else:
            fi, fo = out_channels[-idx], out_channels[-idx - 1]
        p["de_conv"].append(cheb_w(next(keys), fi, fo))

    # final ChebConv: output channels zero-padded to LANE for lane-dense stores
    wf = xavier_uniform(next(keys), (K, out_channels[0], output_channels),
                        out_channels[0], output_channels)
    wf_pad = jnp.zeros((K, out_channels[0], LANE), jnp.float32).at[..., :output_channels].set(wf)
    p["de_final"] = (wf_pad, jnp.zeros((1, LANE), jnp.float32))

    # MLPClassifier (last layer padded to LANE lanes)
    d1, d2 = latent // 2, latent // 4
    p["mlp1"] = (xavier_uniform(next(keys), (latent, d1), latent, d1),
                 jnp.zeros((1, d1), jnp.float32))
    p["mlp2"] = (xavier_uniform(next(keys), (d1, d2), d1, d2),
                 jnp.zeros((1, d2), jnp.float32))
    w3 = xavier_uniform(next(keys), (d2, NUM_TAX), d2, NUM_TAX)
    w3_pad = jnp.zeros((d2, LANE), jnp.float32).at[:, :NUM_TAX].set(w3)
    p["mlp3"] = (w3_pad, jnp.zeros((1, LANE), jnp.float32))
    return p


def ae_forward(x, params, graph, cfg):
    B = cfg["B"]
    level_sizes = cfg["level_sizes"]
    out_channels = cfg["out_channels"]
    output_channels = cfg["output_channels"]
    latent = cfg["latent"]
    N0 = level_sizes[0]
    num_vert = level_sizes[-1]
    c_last = out_channels[-1]

    args = [x.reshape(B * N0, x.shape[-1])]       # batch-major rows (free reshape)
    args += list(graph["L"]) + list(graph["D"]) + list(graph["U"])
    for (w, b) in params["en_conv"]:
        args += [w, b]
    args += [params["en_lin"][0], params["en_lin"][1],
             params["de_lin"][0], params["de_lin"][1]]
    for (w, b) in params["de_conv"]:
        args += [w, b]
    args += [params["de_final"][0], params["de_final"][1],
             params["mlp1"][0], params["mlp1"][1],
             params["mlp2"][0], params["mlp2"][1],
             params["mlp3"][0], params["mlp3"][1]]

    vmem = pl.BlockSpec(memory_space=pltpu.MemorySpace.VMEM)
    out_pad, tax_pad = pl.pallas_call(
        make_ae_kernel(cfg),
        out_shape=(jax.ShapeDtypeStruct((B * N0, LANE), jnp.float32),
                   jax.ShapeDtypeStruct((B, LANE), jnp.float32)),
        in_specs=[vmem] * len(args),
        out_specs=(vmem, vmem),
        scratch_shapes=[pltpu.VMEM((B, latent), jnp.float32),
                        pltpu.VMEM((num_vert, c_last), jnp.float32)],
    )(*args)

    out = out_pad[:, :output_channels].reshape(B, N0, output_channels)
    taxonomy = tax_pad[:, :NUM_TAX]

    # TODO(synk): ManoLayer depends on external MANO model assets; returning
    #             zero placeholders of the expected shapes instead.
    verts = jnp.zeros((B, 778, 3), jnp.float32)
    joints = jnp.zeros((B, 21, 3), jnp.float32)
    return out, taxonomy, verts, joints


# -------------------------------------------------------------------------------- main

if __name__ == "__main__":
    in_channels = 3
    out_channels = [16, 32]
    output_channels = 3
    latent_channels = 64          # >= 48 so z[:, :48] (MANO slice) would be valid
    K = 3
    B = 2
    level_sizes = [32, 16, 8]     # vertex counts per mesh level
    num_vert = level_sizes[-1]    # down_transform[-1].size(0)
    nlev = len(out_channels)

    # graph structure per level (only levels 0..nlev-1 carry ChebConvs)
    graph = {
        "L": [scaled_laplacian(ring_edge_index(level_sizes[i]), level_sizes[i])
              for i in range(nlev)],
        "D": [down_transform_dense(level_sizes[i + 1], level_sizes[i])
              for i in range(nlev)],
        "U": [up_transform_dense(level_sizes[i], level_sizes[i + 1])
              for i in range(nlev)],
    }

    key = jax.random.PRNGKey(0)
    pkey, xkey = jax.random.split(key)
    params = build_params(pkey, in_channels, out_channels, output_channels,
                          latent_channels, num_vert, K)
    x = jax.random.normal(xkey, (B, level_sizes[0], in_channels), jnp.float32)

    cfg = dict(B=B, K=K, level_sizes=level_sizes, out_channels=out_channels,
               output_channels=output_channels, latent=latent_channels)

    fwd = jax.jit(lambda xx: ae_forward(xx, params, graph, cfg))
    out, taxonomy, verts, joints = fwd(x)
    jax.block_until_ready((out, taxonomy, verts, joints))

    assert out.shape == (B, level_sizes[0], output_channels)
    assert taxonomy.shape == (B, NUM_TAX)
    assert verts.shape == (B, 778, 3) and joints.shape == (B, 21, 3)
    assert bool(jnp.all(jnp.isfinite(out))) and bool(jnp.all(jnp.isfinite(taxonomy)))
    print("KERNEL_OK")
</pallas_src>

<mosaic_0001>
module attributes {stable_mosaic.version = 11 : i64} {
  func.func @kernel(%arg0: memref<64x3xf32, #tpu.memory_space<vmem>>, %arg1: memref<32x32xf32, #tpu.memory_space<vmem>>, %arg2: memref<16x16xf32, #tpu.memory_space<vmem>>, %arg3: memref<16x32xf32, #tpu.memory_space<vmem>>, %arg4: memref<8x16xf32, #tpu.memory_space<vmem>>, %arg5: memref<32x16xf32, #tpu.memory_space<vmem>>, %arg6: memref<16x8xf32, #tpu.memory_space<vmem>>, %arg7: memref<3x3x16xf32, #tpu.memory_space<vmem>>, %arg8: memref<1x16xf32, #tpu.memory_space<vmem>>, %arg9: memref<3x16x32xf32, #tpu.memory_space<vmem>>, %arg10: memref<1x32xf32, #tpu.memory_space<vmem>>, %arg11: memref<8x32x64xf32, #tpu.memory_space<vmem>>, %arg12: memref<1x64xf32, #tpu.memory_space<vmem>>, %arg13: memref<8x64x32xf32, #tpu.memory_space<vmem>>, %arg14: memref<8x32xf32, #tpu.memory_space<vmem>>, %arg15: memref<3x32x32xf32, #tpu.memory_space<vmem>>, %arg16: memref<1x32xf32, #tpu.memory_space<vmem>>, %arg17: memref<3x32x16xf32, #tpu.memory_space<vmem>>, %arg18: memref<1x16xf32, #tpu.memory_space<vmem>>, %arg19: memref<3x16x128xf32, #tpu.memory_space<vmem>>, %arg20: memref<1x128xf32, #tpu.memory_space<vmem>>, %arg21: memref<64x32xf32, #tpu.memory_space<vmem>>, %arg22: memref<1x32xf32, #tpu.memory_space<vmem>>, %arg23: memref<32x16xf32, #tpu.memory_space<vmem>>, %arg24: memref<1x16xf32, #tpu.memory_space<vmem>>, %arg25: memref<16x128xf32, #tpu.memory_space<vmem>>, %arg26: memref<1x128xf32, #tpu.memory_space<vmem>>, %arg27: memref<64x128xf32, #tpu.memory_space<vmem>>, %arg28: memref<2x128xf32, #tpu.memory_space<vmem>>, %arg29: memref<2x64xf32, #tpu.memory_space<vmem>>, %arg30: memref<8x32xf32, #tpu.memory_space<vmem>>) attributes {dimension_semantics = [], scalar_prefetch = 0 : i64, scratch_operands = 2 : i64, tpu.core_type = #tpu.core_type<tc>} {
    %c0 = arith.constant 0 : index
    %c0_0 = arith.constant 0 : index
    %0 = vector.load %arg1[%c0, %c0_0] : memref<32x32xf32, #tpu.memory_space<vmem>>, vector<32x32xf32>
    %c0_1 = arith.constant 0 : index
    %c0_2 = arith.constant 0 : index
    %1 = vector.load %arg2[%c0_1, %c0_2] : memref<16x16xf32, #tpu.memory_space<vmem>>, vector<16x16xf32>
    %2 = arith.addf %0, %0 : vector<32x32xf32>
    %3 = arith.addf %1, %1 : vector<16x16xf32>
    %c0_3 = arith.constant 0 : index
    %c0_4 = arith.constant 0 : index
    %4 = vector.load %arg3[%c0_3, %c0_4] : memref<16x32xf32, #tpu.memory_space<vmem>>, vector<16x32xf32>
    %c0_5 = arith.constant 0 : index
    %c0_6 = arith.constant 0 : index
    %5 = vector.load %arg4[%c0_5, %c0_6] : memref<8x16xf32, #tpu.memory_space<vmem>>, vector<8x16xf32>
    %c0_7 = arith.constant 0 : index
    %c0_8 = arith.constant 0 : index
    %6 = vector.load %arg5[%c0_7, %c0_8] : memref<32x16xf32, #tpu.memory_space<vmem>>, vector<32x16xf32>
    %c0_9 = arith.constant 0 : index
    %c0_10 = arith.constant 0 : index
    %7 = vector.load %arg6[%c0_9, %c0_10] : memref<16x8xf32, #tpu.memory_space<vmem>>, vector<16x8xf32>
    %c0_11 = arith.constant 0 : index
    %c0_12 = arith.constant 0 : index
    %8 = vector.load %arg12[%c0_11, %c0_12] : memref<1x64xf32, #tpu.memory_space<vmem>>, vector<1x64xf32>
    %c0_13 = arith.constant 0 : index
    %c0_14 = arith.constant 0 : index
    %9 = vector.load %arg14[%c0_13, %c0_14] : memref<8x32xf32, #tpu.memory_space<vmem>>, vector<8x32xf32>
    %c0_15 = arith.constant 0 : index
    %c0_16 = arith.constant 0 : index
    %10 = vector.load %arg0[%c0_15, %c0_16] : memref<64x3xf32, #tpu.memory_space<vmem>>, vector<64x3xf32>
    %11 = vector.extract_strided_slice %10 {offsets = [0, 0], sizes = [32, 3], strides = [1, 1]} : vector<64x3xf32> to vector<32x3xf32>
    %c0_17 = arith.constant 0 : index
    %c0_18 = arith.constant 0 : index
    %12 = vector.load %arg8[%c0_17, %c0_18] : memref<1x16xf32, #tpu.memory_space<vmem>>, vector<1x16xf32>
    %c0_19 = arith.constant 0 : index
    %c0_20 = arith.constant 0 : index
    %c0_21 = arith.constant 0 : index
    %13 = vector.load %arg7[%c0_19, %c0_20, %c0_21] : memref<3x3x16xf32, #tpu.memory_space<vmem>>, vector<1x3x16xf32>
    %14 = vector.shape_cast %13 : vector<1x3x16xf32> to vector<3x16xf32>
    %cst = arith.constant dense<0.000000e+00> : vector<32x16xf32>
    %15 = tpu.matmul %11, %14, %cst {dimension_numbers = #tpu.dot_dimension_numbers<[1], [0], [0], [1], [0, 0, 1, 1], [], []>} : vector<32x3xf32>, vector<3x16xf32>, vector<32x16xf32> -> vector<32x16xf32>
    %cst_22 = arith.constant dense<0.000000e+00> : vector<32x3xf32>
    %16 = tpu.matmul %0, %11, %cst_22 {dimension_numbers = #tpu.dot_dimension_numbers<[1], [0], [0], [1], [0, 0, 1, 1], [], []>} : vector<32x32xf32>, vector<32x3xf32>, vector<32x3xf32> -> vector<32x3xf32>
    %c1 = arith.constant 1 : index
    %c0_23 = arith.constant 0 : index
    %c0_24 = arith.constant 0 : index
    %17 = vector.load %arg7[%c1, %c0_23, %c0_24] : memref<3x3x16xf32, #tpu.memory_space<vmem>>, vector<1x3x16xf32>
    %18 = vector.shape_cast %17 : vector<1x3x16xf32> to vector<3x16xf32>
    %cst_25 = arith.constant dense<0.000000e+00> : vector<32x16xf32>
    %19 = tpu.matmul %16, %18, %cst_25 {dimension_numbers = #tpu.dot_dimension_numbers<[1], [0], [0], [1], [0, 0, 1, 1], [], []>} : vector<32x3xf32>, vector<3x16xf32>, vector<32x16xf32> -> vector<32x16xf32>
    %20 = arith.addf %15, %19 : vector<32x16xf32>
    %cst_26 = arith.constant dense<0.000000e+00> : vector<32x3xf32>
    %21 = tpu.matmul %2, %16, %cst_26 {dimension_numbers = #tpu.dot_dimension_numbers<[1], [0], [0], [1], [0, 0, 1, 1], [], []>} : vector<32x32xf32>, vector<32x3xf32>, vector<32x3xf32> -> vector<32x3xf32>
    %22 = arith.subf %21, %11 : vector<32x3xf32>
    %c2 = arith.constant 2 : index
    %c0_27 = arith.constant 0 : index
    %c0_28 = arith.constant 0 : index
    %23 = vector.load %arg7[%c2, %c0_27, %c0_28] : memref<3x3x16xf32, #tpu.memory_space<vmem>>, vector<1x3x16xf32>
    %24 = vector.shape_cast %23 : vector<1x3x16xf32> to vector<3x16xf32>
    %cst_29 = arith.constant dense<0.000000e+00> : vector<32x16xf32>
    %25 = tpu.matmul %22, %24, %cst_29 {dimension_numbers = #tpu.dot_dimension_numbers<[1], [0], [0], [1], [0, 0, 1, 1], [], []>} : vector<32x3xf32>, vector<3x16xf32>, vector<32x16xf32> -> vector<32x16xf32>
    %26 = arith.addf %20, %25 : vector<32x16xf32>
    %27 = vector.broadcast %12 : vector<1x16xf32> to vector<32x16xf32>
    %28 = arith.addf %26, %27 : vector<32x16xf32>
    %cst_30 = arith.constant 0.000000e+00 : f32
    %29 = vector.broadcast %cst_30 : f32 to vector<32x16xf32>
    %30 = arith.cmpf ogt, %28, %29 : vector<32x16xf32>
    %cst_31 = arith.constant 0.000000e+00 : f32
    %31 = vector.broadcast %cst_31 : f32 to vector<32x16xf32>
    %32 = arith.minimumf %28, %31 : vector<32x16xf32>
    %33 = math.exp %32 : vector<32x16xf32>
    %cst_32 = arith.constant 1.000000e+00 : f32
    %34 = vector.broadcast %cst_32 : f32 to vector<32x16xf32>
    %35 = arith.subf %33, %34 : vector<32x16xf32>
    %36 = arith.select %30, %28, %35 : vector<32x16xi1>, vector<32x16xf32>
    %cst_33 = arith.constant dense<0.000000e+00> : vector<16x16xf32>
    %37 = tpu.matmul %4, %36, %cst_33 {dimension_numbers = #tpu.dot_dimension_numbers<[1], [0], [0], [1], [0, 0, 1, 1], [], []>} : vector<16x32xf32>, vector<32x16xf32>, vector<16x16xf32> -> vector<16x16xf32>
    %c0_34 = arith.constant 0 : index
    %c0_35 = arith.constant 0 : index
    %38 = vector.load %arg10[%c0_34, %c0_35] : memref<1x32xf32, #tpu.memory_space<vmem>>, vector<1x32xf32>
    %c0_36 = arith.constant 0 : index
    %c0_37 = arith.constant 0 : index
    %c0_38 = arith.constant 0 : index
    %39 = vector.load %arg9[%c0_36, %c0_37, %c0_38] : memref<3x16x32xf32, #tpu.memory_space<vmem>>, vector<1x16x32xf32>
    %40 = vector.shape_cast %39 : vector<1x16x32xf32> to vector<16x32xf32>
    %cst_39 = arith.constant dense<0.000000e+00> : vector<16x32xf32>
    %41 = tpu.matmul %37, %40, %cst_39 {dimension_numbers = #tpu.dot_dimension_numbers<[1], [0], [0], [1], [0, 0, 1, 1], [], []>} : vector<16x16xf32>, vector<16x32xf32>, vector<16x32xf32> -> vector<16x32xf32>
    %cst_40 = arith.constant dense<0.000000e+00> : vector<16x16xf32>
    %42 = tpu.matmul %1, %37, %cst_40 {dimension_numbers = #tpu.dot_dimension_numbers<[1], [0], [0], [1], [0, 0, 1, 1], [], []>} : vector<16x16xf32>, vector<16x16xf32>, vector<16x16xf32> -> vector<16x16xf32>
    %c1_41 = arith.constant 1 : index
    %c0_42 = arith.constant 0 : index
    %c0_43 = arith.constant 0 : index
    %43 = vector.load %arg9[%c1_41, %c0_42, %c0_43] : memref<3x16x32xf32, #tpu.memory_space<vmem>>, vector<1x16x32xf32>
    %44 = vector.shape_cast %43 : vector<1x16x32xf32> to vector<16x32xf32>
    %cst_44 = arith.constant dense<0.000000e+00> : vector<16x32xf32>
    %45 = tpu.matmul %42, %44, %cst_44 {dimension_numbers = #tpu.dot_dimension_numbers<[1], [0], [0], [1], [0, 0, 1, 1], [], []>} : vector<16x16xf32>, vector<16x32xf32>, vector<16x32xf32> -> vector<16x32xf32>
    %46 = arith.addf %41, %45 : vector<16x32xf32>
    %cst_45 = arith.constant dense<0.000000e+00> : vector<16x16xf32>
    %47 = tpu.matmul %3, %42, %cst_45 {dimension_numbers = #tpu.dot_dimension_numbers<[1], [0], [0], [1], [0, 0, 1, 1], [], []>} : vector<16x16xf32>, vector<16x16xf32>, vector<16x16xf32> -> vector<16x16xf32>
    %48 = arith.subf %47, %37 : vector<16x16xf32>
    %c2_46 = arith.constant 2 : index
    %c0_47 = arith.constant 0 : index
    %c0_48 = arith.constant 0 : index
    %49 = vector.load %arg9[%c2_46, %c0_47, %c0_48] : memref<3x16x32xf32, #tpu.memory_space<vmem>>, vector<1x16x32xf32>
    %50 = vector.shape_cast %49 : vector<1x16x32xf32> to vector<16x32xf32>
    %cst_49 = arith.constant dense<0.000000e+00> : vector<16x32xf32>
    %51 = tpu.matmul %48, %50, %cst_49 {dimension_numbers = #tpu.dot_dimension_numbers<[1], [0], [0], [1], [0, 0, 1, 1], [], []>} : vector<16x16xf32>, vector<16x32xf32>, vector<16x32xf32> -> vector<16x32xf32>
    %52 = arith.addf %46, %51 : vector<16x32xf32>
    %53 = vector.broadcast %38 : vector<1x32xf32> to vector<16x32xf32>
    %54 = arith.addf %52, %53 : vector<16x32xf32>
    %cst_50 = arith.constant 0.000000e+00 : f32
    %55 = vector.broadcast %cst_50 : f32 to vector<16x32xf32>
    %56 = arith.cmpf ogt, %54, %55 : vector<16x32xf32>
    %cst_51 = arith.constant 0.000000e+00 : f32
    %57 = vector.broadcast %cst_51 : f32 to vector<16x32xf32>
    %58 = arith.minimumf %54, %57 : vector<16x32xf32>
    %59 = math.exp %58 : vector<16x32xf32>
    %cst_52 = arith.constant 1.000000e+00 : f32
    %60 = vector.broadcast %cst_52 : f32 to vector<16x32xf32>
    %61 = arith.subf %59, %60 : vector<16x32xf32>
    %62 = arith.select %56, %54, %61 : vector<16x32xi1>, vector<16x32xf32>
    %cst_53 = arith.constant dense<0.000000e+00> : vector<8x32xf32>
    %63 = tpu.matmul %5, %62, %cst_53 {dimension_numbers = #tpu.dot_dimension_numbers<[1], [0], [0], [1], [0, 0, 1, 1], [], []>} : vector<8x16xf32>, vector<16x32xf32>, vector<8x32xf32> -> vector<8x32xf32>
    %64 = vector.extract_strided_slice %63 {offsets = [0, 0], sizes = [1, 32], strides = [1, 1]} : vector<8x32xf32> to vector<1x32xf32>
    %c0_54 = arith.constant 0 : index
    %c0_55 = arith.constant 0 : index
    %c0_56 = arith.constant 0 : index
    %65 = vector.load %arg11[%c0_54, %c0_55, %c0_56] : memref<8x32x64xf32, #tpu.memory_space<vmem>>, vector<1x32x64xf32>
    %66 = vector.shape_cast %65 : vector<1x32x64xf32> to vector<32x64xf32>
    %cst_57 = arith.constant dense<0.000000e+00> : vector<1x64xf32>
    %67 = tpu.matmul %64, %66, %cst_57 {dimension_numbers = #tpu.dot_dimension_numbers<[1], [0], [0], [1], [0, 0, 1, 1], [], []>} : vector<1x32xf32>, vector<32x64xf32>, vector<1x64xf32> -> vector<1x64xf32>
    %68 = arith.addf %8, %67 : vector<1x64xf32>
    %69 = vector.extract_strided_slice %63 {offsets = [1, 0], sizes = [1, 32], strides = [1, 1]} : vector<8x32xf32> to vector<1x32xf32>
    %c1_58 = arith.constant 1 : index
    %c0_59 = arith.constant 0 : index
    %c0_60 = arith.constant 0 : index
    %70 = vector.load %arg11[%c1_58, %c0_59, %c0_60] : memref<8x32x64xf32, #tpu.memory_space<vmem>>, vector<1x32x64xf32>
    %71 = vector.shape_cast %70 : vector<1x32x64xf32> to vector<32x64xf32>
    %cst_61 = arith.constant dense<0.000000e+00> : vector<1x64xf32>
    %72 = tpu.matmul %69, %71, %cst_61 {dimension_numbers = #tpu.dot_dimension_numbers<[1], [0], [0], [1], [0, 0, 1, 1], [], []>} : vector<1x32xf32>, vector<32x64xf32>, vector<1x64xf32> -> vector<1x64xf32>
    %73 = arith.addf %68, %72 : vector<1x64xf32>
    %74 = vector.extract_strided_slice %63 {offsets = [2, 0], sizes = [1, 32], strides = [1, 1]} : vector<8x32xf32> to vector<1x32xf32>
    %c2_62 = arith.constant 2 : index
    %c0_63 = arith.constant 0 : index
    %c0_64 = arith.constant 0 : index
    %75 = vector.load %arg11[%c2_62, %c0_63, %c0_64] : memref<8x32x64xf32, #tpu.memory_space<vmem>>, vector<1x32x64xf32>
    %76 = vector.shape_cast %75 : vector<1x32x64xf32> to vector<32x64xf32>
    %cst_65 = arith.constant dense<0.000000e+00> : vector<1x64xf32>
    %77 = tpu.matmul %74, %76, %cst_65 {dimension_numbers = #tpu.dot_dimension_numbers<[1], [0], [0], [1], [0, 0, 1, 1], [], []>} : vector<1x32xf32>, vector<32x64xf32>, vector<1x64xf32> -> vector<1x64xf32>
    %78 = arith.addf %73, %77 : vector<1x64xf32>
    %79 = vector.extract_strided_slice %63 {offsets = [3, 0], sizes = [1, 32], strides = [1, 1]} : vector<8x32xf32> to vector<1x32xf32>
    %c3 = arith.constant 3 : index
    %c0_66 = arith.constant 0 : index
    %c0_67 = arith.constant 0 : index
    %80 = vector.load %arg11[%c3, %c0_66, %c0_67] : memref<8x32x64xf32, #tpu.memory_space<vmem>>, vector<1x32x64xf32>
    %81 = vector.shape_cast %80 : vector<1x32x64xf32> to vector<32x64xf32>
    %cst_68 = arith.constant dense<0.000000e+00> : vector<1x64xf32>
    %82 = tpu.matmul %79, %81, %cst_68 {dimension_numbers = #tpu.dot_dimension_numbers<[1], [0], [0], [1], [0, 0, 1, 1], [], []>} : vector<1x32xf32>, vector<32x64xf32>, vector<1x64xf32> -> vector<1x64xf32>
    %83 = arith.addf %78, %82 : vector<1x64xf32>
    %84 = vector.extract_strided_slice %63 {offsets = [4, 0], sizes = [1, 32], strides = [1, 1]} : vector<8x32xf32> to vector<1x32xf32>
    %c4 = arith.constant 4 : index
    %c0_69 = arith.constant 0 : index
    %c0_70 = arith.constant 0 : index
    %85 = vector.load %arg11[%c4, %c0_69, %c0_70] : memref<8x32x64xf32, #tpu.memory_space<vmem>>, vector<1x32x64xf32>
    %86 = vector.shape_cast %85 : vector<1x32x64xf32> to vector<32x64xf32>
    %cst_71 = arith.constant dense<0.000000e+00> : vector<1x64xf32>
    %87 = tpu.matmul %84, %86, %cst_71 {dimension_numbers = #tpu.dot_dimension_numbers<[1], [0], [0], [1], [0, 0, 1, 1], [], []>} : vector<1x32xf32>, vector<32x64xf32>, vector<1x64xf32> -> vector<1x64xf32>
    %88 = arith.addf %83, %87 : vector<1x64xf32>
    %89 = vector.extract_strided_slice %63 {offsets = [5, 0], sizes = [1, 32], strides = [1, 1]} : vector<8x32xf32> to vector<1x32xf32>
    %c5 = arith.constant 5 : index
    %c0_72 = arith.constant 0 : index
    %c0_73 = arith.constant 0 : index
    %90 = vector.load %arg11[%c5, %c0_72, %c0_73] : memref<8x32x64xf32, #tpu.memory_space<vmem>>, vector<1x32x64xf32>
    %91 = vector.shape_cast %90 : vector<1x32x64xf32> to vector<32x64xf32>
    %cst_74 = arith.constant dense<0.000000e+00> : vector<1x64xf32>
    %92 = tpu.matmul %89, %91, %cst_74 {dimension_numbers = #tpu.dot_dimension_numbers<[1], [0], [0], [1], [0, 0, 1, 1], [], []>} : vector<1x32xf32>, vector<32x64xf32>, vector<1x64xf32> -> vector<1x64xf32>
    %93 = arith.addf %88, %92 : vector<1x64xf32>
    %94 = vector.extract_strided_slice %63 {offsets = [6, 0], sizes = [1, 32], strides = [1, 1]} : vector<8x32xf32> to vector<1x32xf32>
    %c6 = arith.constant 6 : index
    %c0_75 = arith.constant 0 : index
    %c0_76 = arith.constant 0 : index
    %95 = vector.load %arg11[%c6, %c0_75, %c0_76] : memref<8x32x64xf32, #tpu.memory_space<vmem>>, vector<1x32x64xf32>
    %96 = vector.shape_cast %95 : vector<1x32x64xf32> to vector<32x64xf32>
    %cst_77 = arith.constant dense<0.000000e+00> : vector<1x64xf32>
    %97 = tpu.matmul %94, %96, %cst_77 {dimension_numbers = #tpu.dot_dimension_numbers<[1], [0], [0], [1], [0, 0, 1, 1], [], []>} : vector<1x32xf32>, vector<32x64xf32>, vector<1x64xf32> -> vector<1x64xf32>
    %98 = arith.addf %93, %97 : vector<1x64xf32>
    %99 = vector.extract_strided_slice %63 {offsets = [7, 0], sizes = [1, 32], strides = [1, 1]} : vector<8x32xf32> to vector<1x32xf32>
    %c7 = arith.constant 7 : index
    %c0_78 = arith.constant 0 : index
    %c0_79 = arith.constant 0 : index
    %100 = vector.load %arg11[%c7, %c0_78, %c0_79] : memref<8x32x64xf32, #tpu.memory_space<vmem>>, vector<1x32x64xf32>
    %101 = vector.shape_cast %100 : vector<1x32x64xf32> to vector<32x64xf32>
    %cst_80 = arith.constant dense<0.000000e+00> : vector<1x64xf32>
    %102 = tpu.matmul %99, %101, %cst_80 {dimension_numbers = #tpu.dot_dimension_numbers<[1], [0], [0], [1], [0, 0, 1, 1], [], []>} : vector<1x32xf32>, vector<32x64xf32>, vector<1x64xf32> -> vector<1x64xf32>
    %103 = arith.addf %98, %102 : vector<1x64xf32>
    %c0_81 = arith.constant 0 : index
    %c0_82 = arith.constant 0 : index
    %104 = vector.load %arg29[%c0_81, %c0_82] : memref<2x64xf32, #tpu.memory_space<vmem>>, vector<1x64xf32>
    tpu.vector_store %arg29[%c0_81, %c0_82], %103 {strides = array<i32>} : memref<2x64xf32, #tpu.memory_space<vmem>>, vector<1x64xf32>,
    %105 = vector.extract_strided_slice %10 {offsets = [32, 0], sizes = [32, 3], strides = [1, 1]} : vector<64x3xf32> to vector<32x3xf32>
    %c0_83 = arith.constant 0 : index
    %c0_84 = arith.constant 0 : index
    %106 = vector.load %arg8[%c0_83, %c0_84] : memref<1x16xf32, #tpu.memory_space<vmem>>, vector<1x16xf32>
    %c0_85 = arith.constant 0 : index
    %c0_86 = arith.constant 0 : index
    %c0_87 = arith.constant 0 : index
    %107 = vector.load %arg7[%c0_85, %c0_86, %c0_87] : memref<3x3x16xf32, #tpu.memory_space<vmem>>, vector<1x3x16xf32>
    %108 = vector.shape_cast %107 : vector<1x3x16xf32> to vector<3x16xf32>
    %cst_88 = arith.constant dense<0.000000e+00> : vector<32x16xf32>
    %109 = tpu.matmul %105, %108, %cst_88 {dimension_numbers = #tpu.dot_dimension_numbers<[1], [0], [0], [1], [0, 0, 1, 1], [], []>} : vector<32x3xf32>, vector<3x16xf32>, vector<32x16xf32> -> vector<32x16xf32>
    %cst_89 = arith.constant dense<0.000000e+00> : vector<32x3xf32>
    %110 = tpu.matmul %0, %105, %cst_89 {dimension_numbers = #tpu.dot_dimension_numbers<[1], [0], [0], [1], [0, 0, 1, 1], [], []>} : vector<32x32xf32>, vector<32x3xf32>, vector<32x3xf32> -> vector<32x3xf32>
    %c1_90 = arith.constant 1 : index
    %c0_91 = arith.constant 0 : index
    %c0_92 = arith.constant 0 : index
    %111 = vector.load %arg7[%c1_90, %c0_91, %c0_92] : memref<3x3x16xf32, #tpu.memory_space<vmem>>, vector<1x3x16xf32>
    %112 = vector.shape_cast %111 : vector<1x3x16xf32> to vector<3x16xf32>
    %cst_93 = arith.constant dense<0.000000e+00> : vector<32x16xf32>
    %113 = tpu.matmul %110, %112, %cst_93 {dimension_numbers = #tpu.dot_dimension_numbers<[1], [0], [0], [1], [0, 0, 1, 1], [], []>} : vector<32x3xf32>, vector<3x16xf32>, vector<32x16xf32> -> vector<32x16xf32>
    %114 = arith.addf %109, %113 : vector<32x16xf32>
    %cst_94 = arith.constant dense<0.000000e+00> : vector<32x3xf32>
    %115 = tpu.matmul %2, %110, %cst_94 {dimension_numbers = #tpu.dot_dimension_numbers<[1], [0], [0], [1], [0, 0, 1, 1], [], []>} : vector<32x32xf32>, vector<32x3xf32>, vector<32x3xf32> -> vector<32x3xf32>
    %116 = arith.subf %115, %105 : vector<32x3xf32>
    %c2_95 = arith.constant 2 : index
    %c0_96 = arith.constant 0 : index
    %c0_97 = arith.constant 0 : index
    %117 = vector.load %arg7[%c2_95, %c0_96, %c0_97] : memref<3x3x16xf32, #tpu.memory_space<vmem>>, vector<1x3x16xf32>
    %118 = vector.shape_cast %117 : vector<1x3x16xf32> to vector<3x16xf32>
    %cst_98 = arith.constant dense<0.000000e+00> : vector<32x16xf32>
    %119 = tpu.matmul %116, %118, %cst_98 {dimension_numbers = #tpu.dot_dimension_numbers<[1], [0], [0], [1], [0, 0, 1, 1], [], []>} : vector<32x3xf32>, vector<3x16xf32>, vector<32x16xf32> -> vector<32x16xf32>
    %120 = arith.addf %114, %119 : vector<32x16xf32>
    %121 = vector.broadcast %106 : vector<1x16xf32> to vector<32x16xf32>
    %122 = arith.addf %120, %121 : vector<32x16xf32>
    %cst_99 = arith.constant 0.000000e+00 : f32
    %123 = vector.broadcast %cst_99 : f32 to vector<32x16xf32>
    %124 = arith.cmpf ogt, %122, %123 : vector<32x16xf32>
    %cst_100 = arith.constant 0.000000e+00 : f32
    %125 = vector.broadcast %cst_100 : f32 to vector<32x16xf32>
    %126 = arith.minimumf %122, %125 : vector<32x16xf32>
    %127 = math.exp %126 : vector<32x16xf32>
    %cst_101 = arith.constant 1.000000e+00 : f32
    %128 = vector.broadcast %cst_101 : f32 to vector<32x16xf32>
    %129 = arith.subf %127, %128 : vector<32x16xf32>
    %130 = arith.select %124, %122, %129 : vector<32x16xi1>, vector<32x16xf32>
    %cst_102 = arith.constant dense<0.000000e+00> : vector<16x16xf32>
    %131 = tpu.matmul %4, %130, %cst_102 {dimension_numbers = #tpu.dot_dimension_numbers<[1], [0], [0], [1], [0, 0, 1, 1], [], []>} : vector<16x32xf32>, vector<32x16xf32>, vector<16x16xf32> -> vector<16x16xf32>
    %c0_103 = arith.constant 0 : index
    %c0_104 = arith.constant 0 : index
    %132 = vector.load %arg10[%c0_103, %c0_104] : memref<1x32xf32, #tpu.memory_space<vmem>>, vector<1x32xf32>
    %c0_105 = arith.constant 0 : index
    %c0_106 = arith.constant 0 : index
    %c0_107 = arith.constant 0 : index
    %133 = vector.load %arg9[%c0_105, %c0_106, %c0_107] : memref<3x16x32xf32, #tpu.memory_space<vmem>>, vector<1x16x32xf32>
    %134 = vector.shape_cast %133 : vector<1x16x32xf32> to vector<16x32xf32>
    %cst_108 = arith.constant dense<0.000000e+00> : vector<16x32xf32>
    %135 = tpu.matmul %131, %134, %cst_108 {dimension_numbers = #tpu.dot_dimension_numbers<[1], [0], [0], [1], [0, 0, 1, 1], [], []>} : vector<16x16xf32>, vector<16x32xf32>, vector<16x32xf32> -> vector<16x32xf32>
    %cst_109 = arith.constant dense<0.000000e+00> : vector<16x16xf32>
    %136 = tpu.matmul %1, %131, %cst_109 {dimension_numbers = #tpu.dot_dimension_numbers<[1], [0], [0], [1], [0, 0, 1, 1], [], []>} : vector<16x16xf32>, vector<16x16xf32>, vector<16x16xf32> -> vector<16x16xf32>
    %c1_110 = arith.constant 1 : index
    %c0_111 = arith.constant 0 : index
    %c0_112 = arith.constant 0 : index
    %137 = vector.load %arg9[%c1_110, %c0_111, %c0_112] : memref<3x16x32xf32, #tpu.memory_space<vmem>>, vector<1x16x32xf32>
    %138 = vector.shape_cast %137 : vector<1x16x32xf32> to vector<16x32xf32>
    %cst_113 = arith.constant dense<0.000000e+00> : vector<16x32xf32>
    %139 = tpu.matmul %136, %138, %cst_113 {dimension_numbers = #tpu.dot_dimension_numbers<[1], [0], [0], [1], [0, 0, 1, 1], [], []>} : vector<16x16xf32>, vector<16x32xf32>, vector<16x32xf32> -> vector<16x32xf32>
    %140 = arith.addf %135, %139 : vector<16x32xf32>
    %cst_114 = arith.constant dense<0.000000e+00> : vector<16x16xf32>
    %141 = tpu.matmul %3, %136, %cst_114 {dimension_numbers = #tpu.dot_dimension_numbers<[1], [0], [0], [1], [0, 0, 1, 1], [], []>} : vector<16x16xf32>, vector<16x16xf32>, vector<16x16xf32> -> vector<16x16xf32>
    %142 = arith.subf %141, %131 : vector<16x16xf32>
    %c2_115 = arith.constant 2 : index
    %c0_116 = arith.constant 0 : index
    %c0_117 = arith.constant 0 : index
    %143 = vector.load %arg9[%c2_115, %c0_116, %c0_117] : memref<3x16x32xf32, #tpu.memory_space<vmem>>, vector<1x16x32xf32>
    %144 = vector.shape_cast %143 : vector<1x16x32xf32> to vector<16x32xf32>
    %cst_118 = arith.constant dense<0.000000e+00> : vector<16x32xf32>
    %145 = tpu.matmul %142, %144, %cst_118 {dimension_numbers = #tpu.dot_dimension_numbers<[1], [0], [0], [1], [0, 0, 1, 1], [], []>} : vector<16x16xf32>, vector<16x32xf32>, vector<16x32xf32> -> vector<16x32xf32>
    %146 = arith.addf %140, %145 : vector<16x32xf32>
    %147 = vector.broadcast %132 : vector<1x32xf32> to vector<16x32xf32>
    %148 = arith.addf %146, %147 : vector<16x32xf32>
    %cst_119 = arith.constant 0.000000e+00 : f32
    %149 = vector.broadcast %cst_119 : f32 to vector<16x32xf32>
    %150 = arith.cmpf ogt, %148, %149 : vector<16x32xf32>
    %cst_120 = arith.constant 0.000000e+00 : f32
    %151 = vector.broadcast %cst_120 : f32 to vector<16x32xf32>
    %152 = arith.minimumf %148, %151 : vector<16x32xf32>
    %153 = math.exp %152 : vector<16x32xf32>
    %cst_121 = arith.constant 1.000000e+00 : f32
    %154 = vector.broadcast %cst_121 : f32 to vector<16x32xf32>
    %155 = arith.subf %153, %154 : vector<16x32xf32>
    %156 = arith.select %150, %148, %155 : vector<16x32xi1>, vector<16x32xf32>
    %cst_122 = arith.constant dense<0.000000e+00> : vector<8x32xf32>
    %157 = tpu.matmul %5, %156, %cst_122 {dimension_numbers = #tpu.dot_dimension_numbers<[1], [0], [0], [1], [0, 0, 1, 1], [], []>} : vector<8x16xf32>, vector<16x32xf32>, vector<8x32xf32> -> vector<8x32xf32>
    %158 = vector.extract_strided_slice %157 {offsets = [0, 0], sizes = [1, 32], strides = [1, 1]} : vector<8x32xf32> to vector<1x32xf32>
    %c0_123 = arith.constant 0 : index
    %c0_124 = arith.constant 0 : index
    %c0_125 = arith.constant 0 : index
    %159 = vector.load %arg11[%c0_123, %c0_124, %c0_125] : memref<8x32x64xf32, #tpu.memory_space<vmem>>, vector<1x32x64xf32>
    %160 = vector.shape_cast %159 : vector<1x32x64xf32> to vector<32x64xf32>
    %cst_126 = arith.constant dense<0.000000e+00> : vector<1x64xf32>
    %161 = tpu.matmul %158, %160, %cst_126 {dimension_numbers = #tpu.dot_dimension_numbers<[1], [0], [0], [1], [0, 0, 1, 1], [], []>} : vector<1x32xf32>, vector<32x64xf32>, vector<1x64xf32> -> vector<1x64xf32>
    %162 = arith.addf %8, %161 : vector<1x64xf32>
    %163 = vector.extract_strided_slice %157 {offsets = [1, 0], sizes = [1, 32], strides = [1, 1]} : vector<8x32xf32> to vector<1x32xf32>
    %c1_127 = arith.constant 1 : index
    %c0_128 = arith.constant 0 : index
    %c0_129 = arith.constant 0 : index
    %164 = vector.load %arg11[%c1_127, %c0_128, %c0_129] : memref<8x32x64xf32, #tpu.memory_space<vmem>>, vector<1x32x64xf32>
    %165 = vector.shape_cast %164 : vector<1x32x64xf32> to vector<32x64xf32>
    %cst_130 = arith.constant dense<0.000000e+00> : vector<1x64xf32>
    %166 = tpu.matmul %163, %165, %cst_130 {dimension_numbers = #tpu.dot_dimension_numbers<[1], [0], [0], [1], [0, 0, 1, 1], [], []>} : vector<1x32xf32>, vector<32x64xf32>, vector<1x64xf32> -> vector<1x64xf32>
    %167 = arith.addf %162, %166 : vector<1x64xf32>
    %168 = vector.extract_strided_slice %157 {offsets = [2, 0], sizes = [1, 32], strides = [1, 1]} : vector<8x32xf32> to vector<1x32xf32>
    %c2_131 = arith.constant 2 : index
    %c0_132 = arith.constant 0 : index
    %c0_133 = arith.constant 0 : index
    %169 = vector.load %arg11[%c2_131, %c0_132, %c0_133] : memref<8x32x64xf32, #tpu.memory_space<vmem>>, vector<1x32x64xf32>
    %170 = vector.shape_cast %169 : vector<1x32x64xf32> to vector<32x64xf32>
    %cst_134 = arith.constant dense<0.000000e+00> : vector<1x64xf32>
    %171 = tpu.matmul %168, %170, %cst_134 {dimension_numbers = #tpu.dot_dimension_numbers<[1], [0], [0], [1], [0, 0, 1, 1], [], []>} : vector<1x32xf32>, vector<32x64xf32>, vector<1x64xf32> -> vector<1x64xf32>
    %172 = arith.addf %167, %171 : vector<1x64xf32>
    %173 = vector.extract_strided_slice %157 {offsets = [3, 0], sizes = [1, 32], strides = [1, 1]} : vector<8x32xf32> to vector<1x32xf32>
    %c3_135 = arith.constant 3 : index
    %c0_136 = arith.constant 0 : index
    %c0_137 = arith.constant 0 : index
    %174 = vector.load %arg11[%c3_135, %c0_136, %c0_137] : memref<8x32x64xf32, #tpu.memory_space<vmem>>, vector<1x32x64xf32>
    %175 = vector.shape_cast %174 : vector<1x32x64xf32> to vector<32x64xf32>
    %cst_138 = arith.constant dense<0.000000e+00> : vector<1x64xf32>
    %176 = tpu.matmul %173, %175, %cst_138 {dimension_numbers = #tpu.dot_dimension_numbers<[1], [0], [0], [1], [0, 0, 1, 1], [], []>} : vector<1x32xf32>, vector<32x64xf32>, vector<1x64xf32> -> vector<1x64xf32>
    %177 = arith.addf %172, %176 : vector<1x64xf32>
    %178 = vector.extract_strided_slice %157 {offsets = [4, 0], sizes = [1, 32], strides = [1, 1]} : vector<8x32xf32> to vector<1x32xf32>
    %c4_139 = arith.constant 4 : index
    %c0_140 = arith.constant 0 : index
    %c0_141 = arith.constant 0 : index
    %179 = vector.load %arg11[%c4_139, %c0_140, %c0_141] : memref<8x32x64xf32, #tpu.memory_space<vmem>>, vector<1x32x64xf32>
    %180 = vector.shape_cast %179 : vector<1x32x64xf32> to vector<32x64xf32>
    %cst_142 = arith.constant dense<0.000000e+00> : vector<1x64xf32>
    %181 = tpu.matmul %178, %180, %cst_142 {dimension_numbers = #tpu.dot_dimension_numbers<[1], [0], [0], [1], [0, 0, 1, 1], [], []>} : vector<1x32xf32>, vector<32x64xf32>, vector<1x64xf32> -> vector<1x64xf32>
    %182 = arith.addf %177, %181 : vector<1x64xf32>
    %183 = vector.extract_strided_slice %157 {offsets = [5, 0], sizes = [1, 32], strides = [1, 1]} : vector<8x32xf32> to vector<1x32xf32>
    %c5_143 = arith.constant 5 : index
    %c0_144 = arith.constant 0 : index
    %c0_145 = arith.constant 0 : index
    %184 = vector.load %arg11[%c5_143, %c0_144, %c0_145] : memref<8x32x64xf32, #tpu.memory_space<vmem>>, vector<1x32x64xf32>
    %185 = vector.shape_cast %184 : vector<1x32x64xf32> to vector<32x64xf32>
    %cst_146 = arith.constant dense<0.000000e+00> : vector<1x64xf32>
    %186 = tpu.matmul %183, %185, %cst_146 {dimension_numbers = #tpu.dot_dimension_numbers<[1], [0], [0], [1], [0, 0, 1, 1], [], []>} : vector<1x32xf32>, vector<32x64xf32>, vector<1x64xf32> -> vector<1x64xf32>
    %187 = arith.addf %182, %186 : vector<1x64xf32>
    %188 = vector.extract_strided_slice %157 {offsets = [6, 0], sizes = [1, 32], strides = [1, 1]} : vector<8x32xf32> to vector<1x32xf32>
    %c6_147 = arith.constant 6 : index
    %c0_148 = arith.constant 0 : index
    %c0_149 = arith.constant 0 : index
    %189 = vector.load %arg11[%c6_147, %c0_148, %c0_149] : memref<8x32x64xf32, #tpu.memory_space<vmem>>, vector<1x32x64xf32>
    %190 = vector.shape_cast %189 : vector<1x32x64xf32> to vector<32x64xf32>
    %cst_150 = arith.constant dense<0.000000e+00> : vector<1x64xf32>
    %191 = tpu.matmul %188, %190, %cst_150 {dimension_numbers = #tpu.dot_dimension_numbers<[1], [0], [0], [1], [0, 0, 1, 1], [], []>} : vector<1x32xf32>, vector<32x64xf32>, vector<1x64xf32> -> vector<1x64xf32>
    %192 = arith.addf %187, %191 : vector<1x64xf32>
    %193 = vector.extract_strided_slice %157 {offsets = [7, 0], sizes = [1, 32], strides = [1, 1]} : vector<8x32xf32> to vector<1x32xf32>
    %c7_151 = arith.constant 7 : index
    %c0_152 = arith.constant 0 : index
    %c0_153 = arith.constant 0 : index
    %194 = vector.load %arg11[%c7_151, %c0_152, %c0_153] : memref<8x32x64xf32, #tpu.memory_space<vmem>>, vector<1x32x64xf32>
    %195 = vector.shape_cast %194 : vector<1x32x64xf32> to vector<32x64xf32>
    %cst_154 = arith.constant dense<0.000000e+00> : vector<1x64xf32>
    %196 = tpu.matmul %193, %195, %cst_154 {dimension_numbers = #tpu.dot_dimension_numbers<[1], [0], [0], [1], [0, 0, 1, 1], [], []>} : vector<1x32xf32>, vector<32x64xf32>, vector<1x64xf32> -> vector<1x64xf32>
    %197 = arith.addf %192, %196 : vector<1x64xf32>
    %c1_155 = arith.constant 1 : index
    %c0_156 = arith.constant 0 : index
    %198 = vector.load %arg29[%c1_155, %c0_156] : memref<2x64xf32, #tpu.memory_space<vmem>>, vector<1x64xf32>
    tpu.vector_store %arg29[%c1_155, %c0_156], %197 {strides = array<i32>} : memref<2x64xf32, #tpu.memory_space<vmem>>, vector<1x64xf32>,
    %c0_157 = arith.constant 0 : index
    %c0_158 = arith.constant 0 : index
    %199 = vector.load %arg29[%c0_157, %c0_158] : memref<2x64xf32, #tpu.memory_space<vmem>>, vector<2x64xf32>
    %c0_159 = arith.constant 0 : index
    %c0_160 = arith.constant 0 : index
    %200 = vector.load %arg21[%c0_159, %c0_160] : memref<64x32xf32, #tpu.memory_space<vmem>>, vector<64x32xf32>
    %cst_161 = arith.constant dense<0.000000e+00> : vector<2x32xf32>
    %201 = tpu.matmul %199, %200, %cst_161 {dimension_numbers = #tpu.dot_dimension_numbers<[1], [0], [0], [1], [0, 0, 1, 1], [], []>} : vector<2x64xf32>, vector<64x32xf32>, vector<2x32xf32> -> vector<2x32xf32>
    %c0_162 = arith.constant 0 : index
    %c0_163 = arith.constant 0 : index
    %202 = vector.load %arg22[%c0_162, %c0_163] : memref<1x32xf32, #tpu.memory_space<vmem>>, vector<1x32xf32>
    %203 = vector.broadcast %202 : vector<1x32xf32> to vector<2x32xf32>
    %204 = arith.addf %201, %203 : vector<2x32xf32>
    %cst_164 = arith.constant 0.000000e+00 : f32
    %205 = vector.broadcast %cst_164 : f32 to vector<2x32xf32>
    %206 = arith.maximumf %204, %205 : vector<2x32xf32>
    %c0_165 = arith.constant 0 : index
    %c0_166 = arith.constant 0 : index
    %207 = vector.load %arg23[%c0_165, %c0_166] : memref<32x16xf32, #tpu.memory_space<vmem>>, vector<32x16xf32>
    %cst_167 = arith.constant dense<0.000000e+00> : vector<2x16xf32>
    %208 = tpu.matmul %206, %207, %cst_167 {dimension_numbers = #tpu.dot_dimension_numbers<[1], [0], [0], [1], [0, 0, 1, 1], [], []>} : vector<2x32xf32>, vector<32x16xf32>, vector<2x16xf32> -> vector<2x16xf32>
    %c0_168 = arith.constant 0 : index
    %c0_169 = arith.constant 0 : index
    %209 = vector.load %arg24[%c0_168, %c0_169] : memref<1x16xf32, #tpu.memory_space<vmem>>, vector<1x16xf32>
    %210 = vector.broadcast %209 : vector<1x16xf32> to vector<2x16xf32>
    %211 = arith.addf %208, %210 : vector<2x16xf32>
    %cst_170 = arith.constant 0.000000e+00 : f32
    %212 = vector.broadcast %cst_170 : f32 to vector<2x16xf32>
    %213 = arith.maximumf %211, %212 : vector<2x16xf32>
    %c0_171 = arith.constant 0 : index
    %c0_172 = arith.constant 0 : index
    %214 = vector.load %arg25[%c0_171, %c0_172] : memref<16x128xf32, #tpu.memory_space<vmem>>, vector<16x128xf32>
    %cst_173 = arith.constant dense<0.000000e+00> : vector<2x128xf32>
    %215 = tpu.matmul %213, %214, %cst_173 {dimension_numbers = #tpu.dot_dimension_numbers<[1], [0], [0], [1], [0, 0, 1, 1], [], []>} : vector<2x16xf32>, vector<16x128xf32>, vector<2x128xf32> -> vector<2x128xf32>
    %c0_174 = arith.constant 0 : index
    %c0_175 = arith.constant 0 : index
    %216 = vector.load %arg26[%c0_174, %c0_175] : memref<1x128xf32, #tpu.memory_space<vmem>>, vector<1x128xf32>
    %217 = vector.broadcast %216 : vector<1x128xf32> to vector<2x128xf32>
    %218 = arith.addf %215, %217 : vector<2x128xf32>
    %c0_176 = arith.constant 0 : index
    %c0_177 = arith.constant 0 : index
    %219 = vector.load %arg28[%c0_176, %c0_177] : memref<2x128xf32, #tpu.memory_space<vmem>>, vector<2x128xf32>
    tpu.vector_store %arg28[%c0_176, %c0_177], %218 {strides = array<i32>} : memref<2x128xf32, #tpu.memory_space<vmem>>, vector<2x128xf32>,
    %220 = vector.extract_strided_slice %199 {offsets = [0, 0], sizes = [1, 64], strides = [1, 1]} : vector<2x64xf32> to vector<1x64xf32>
    %c0_178 = arith.constant 0 : index
    %c0_179 = arith.constant 0 : index
    %c0_180 = arith.constant 0 : index
    %221 = vector.load %arg13[%c0_178, %c0_179, %c0_180] : memref<8x64x32xf32, #tpu.memory_space<vmem>>, vector<1x64x32xf32>
    %222 = vector.shape_cast %221 : vector<1x64x32xf32> to vector<64x32xf32>
    %cst_181 = arith.constant dense<0.000000e+00> : vector<1x32xf32>
    %223 = tpu.matmul %220, %222, %cst_181 {dimension_numbers = #tpu.dot_dimension_numbers<[1], [0], [0], [1], [0, 0, 1, 1], [], []>} : vector<1x64xf32>, vector<64x32xf32>, vector<1x32xf32> -> vector<1x32xf32>
    %224 = vector.extract_strided_slice %9 {offsets = [0, 0], sizes = [1, 32], strides = [1, 1]} : vector<8x32xf32> to vector<1x32xf32>
    %225 = arith.addf %223, %224 : vector<1x32xf32>
    %c0_182 = arith.constant 0 : index
    %c0_183 = arith.constant 0 : index
    %226 = vector.load %arg30[%c0_182, %c0_183] : memref<8x32xf32, #tpu.memory_space<vmem>>, vector<1x32xf32>
    tpu.vector_store %arg30[%c0_182, %c0_183], %225 {strides = array<i32>} : memref<8x32xf32, #tpu.memory_space<vmem>>, vector<1x32xf32>,
    %c1_184 = arith.constant 1 : index
    %c0_185 = arith.constant 0 : index
    %c0_186 = arith.constant 0 : index
    %227 = vector.load %arg13[%c1_184, %c0_185, %c0_186] : memref<8x64x32xf32, #tpu.memory_space<vmem>>, vector<1x64x32xf32>
    %228 = vector.shape_cast %227 : vector<1x64x32xf32> to vector<64x32xf32>
    %cst_187 = arith.constant dense<0.000000e+00> : vector<1x32xf32>
    %229 = tpu.matmul %220, %228, %cst_187 {dimension_numbers = #tpu.dot_dimension_numbers<[1], [0], [0], [1], [0, 0, 1, 1], [], []>} : vector<1x64xf32>, vector<64x32xf32>, vector<1x32xf32> -> vector<1x32xf32>
    %230 = vector.extract_strided_slice %9 {offsets = [1, 0], sizes = [1, 32], strides = [1, 1]} : vector<8x32xf32> to vector<1x32xf32>
    %231 = arith.addf %229, %230 : vector<1x32xf32>
    %c1_188 = arith.constant 1 : index
    %c0_189 = arith.constant 0 : index
    %232 = vector.load %arg30[%c1_188, %c0_189] : memref<8x32xf32, #tpu.memory_space<vmem>>, vector<1x32xf32>
    tpu.vector_store %arg30[%c1_188, %c0_189], %231 {strides = array<i32>} : memref<8x32xf32, #tpu.memory_space<vmem>>, vector<1x32xf32>,
    %c2_190 = arith.constant 2 : index
    %c0_191 = arith.constant 0 : index
    %c0_192 = arith.constant 0 : index
    %233 = vector.load %arg13[%c2_190, %c0_191, %c0_192] : memref<8x64x32xf32, #tpu.memory_space<vmem>>, vector<1x64x32xf32>
    %234 = vector.shape_cast %233 : vector<1x64x32xf32> to vector<64x32xf32>
    %cst_193 = arith.constant dense<0.000000e+00> : vector<1x32xf32>
    %235 = tpu.matmul %220, %234, %cst_193 {dimension_numbers = #tpu.dot_dimension_numbers<[1], [0], [0], [1], [0, 0, 1, 1], [], []>} : vector<1x64xf32>, vector<64x32xf32>, vector<1x32xf32> -> vector<1x32xf32>
    %236 = vector.extract_strided_slice %9 {offsets = [2, 0], sizes = [1, 32], strides = [1, 1]} : vector<8x32xf32> to vector<1x32xf32>
    %237 = arith.addf %235, %236 : vector<1x32xf32>
    %c2_194 = arith.constant 2 : index
    %c0_195 = arith.constant 0 : index
    %238 = vector.load %arg30[%c2_194, %c0_195] : memref<8x32xf32, #tpu.memory_space<vmem>>, vector<1x32xf32>
    tpu.vector_store %arg30[%c2_194, %c0_195], %237 {strides = array<i32>} : memref<8x32xf32, #tpu.memory_space<vmem>>, vector<1x32xf32>,
    %c3_196 = arith.constant 3 : index
    %c0_197 = arith.constant 0 : index
    %c0_198 = arith.constant 0 : index
    %239 = vector.load %arg13[%c3_196, %c0_197, %c0_198] : memref<8x64x32xf32, #tpu.memory_space<vmem>>, vector<1x64x32xf32>
    %240 = vector.shape_cast %239 : vector<1x64x32xf32> to vector<64x32xf32>
    %cst_199 = arith.constant dense<0.000000e+00> : vector<1x32xf32>
    %241 = tpu.matmul %220, %240, %cst_199 {dimension_numbers = #tpu.dot_dimension_numbers<[1], [0], [0], [1], [0, 0, 1, 1], [], []>} : vector<1x64xf32>, vector<64x32xf32>, vector<1x32xf32> -> vector<1x32xf32>
    %242 = vector.extract_strided_slice %9 {offsets = [3, 0], sizes = [1, 32], strides = [1, 1]} : vector<8x32xf32> to vector<1x32xf32>
    %243 = arith.addf %241, %242 : vector<1x32xf32>
    %c3_200 = arith.constant 3 : index
    %c0_201 = arith.constant 0 : index
    %244 = vector.load %arg30[%c3_200, %c0_201] : memref<8x32xf32, #tpu.memory_space<vmem>>, vector<1x32xf32>
    tpu.vector_store %arg30[%c3_200, %c0_201], %243 {strides = array<i32>} : memref<8x32xf32, #tpu.memory_space<vmem>>, vector<1x32xf32>,
    %c4_202 = arith.constant 4 : index
    %c0_203 = arith.constant 0 : index
    %c0_204 = arith.constant 0 : index
    %245 = vector.load %arg13[%c4_202, %c0_203, %c0_204] : memref<8x64x32xf32, #tpu.memory_space<vmem>>, vector<1x64x32xf32>
    %246 = vector.shape_cast %245 : vector<1x64x32xf32> to vector<64x32xf32>
    %cst_205 = arith.constant dense<0.000000e+00> : vector<1x32xf32>
    %247 = tpu.matmul %220, %246, %cst_205 {dimension_numbers = #tpu.dot_dimension_numbers<[1], [0], [0], [1], [0, 0, 1, 1], [], []>} : vector<1x64xf32>, vector<64x32xf32>, vector<1x32xf32> -> vector<1x32xf32>
    %248 = vector.extract_strided_slice %9 {offsets = [4, 0], sizes = [1, 32], strides = [1, 1]} : vector<8x32xf32> to vector<1x32xf32>
    %249 = arith.addf %247, %248 : vector<1x32xf32>
    %c4_206 = arith.constant 4 : index
    %c0_207 = arith.constant 0 : index
    %250 = vector.load %arg30[%c4_206, %c0_207] : memref<8x32xf32, #tpu.memory_space<vmem>>, vector<1x32xf32>
    tpu.vector_store %arg30[%c4_206, %c0_207], %249 {strides = array<i32>} : memref<8x32xf32, #tpu.memory_space<vmem>>, vector<1x32xf32>,
    %c5_208 = arith.constant 5 : index
    %c0_209 = arith.constant 0 : index
    %c0_210 = arith.constant 0 : index
    %251 = vector.load %arg13[%c5_208, %c0_209, %c0_210] : memref<8x64x32xf32, #tpu.memory_space<vmem>>, vector<1x64x32xf32>
    %252 = vector.shape_cast %251 : vector<1x64x32xf32> to vector<64x32xf32>
    %cst_211 = arith.constant dense<0.000000e+00> : vector<1x32xf32>
    %253 = tpu.matmul %220, %252, %cst_211 {dimension_numbers = #tpu.dot_dimension_numbers<[1], [0], [0], [1], [0, 0, 1, 1], [], []>} : vector<1x64xf32>, vector<64x32xf32>, vector<1x32xf32> -> vector<1x32xf32>
    %254 = vector.extract_strided_slice %9 {offsets = [5, 0], sizes = [1, 32], strides = [1, 1]} : vector<8x32xf32> to vector<1x32xf32>
    %255 = arith.addf %253, %254 : vector<1x32xf32>
    %c5_212 = arith.constant 5 : index
    %c0_213 = arith.constant 0 : index
    %256 = vector.load %arg30[%c5_212, %c0_213] : memref<8x32xf32, #tpu.memory_space<vmem>>, vector<1x32xf32>
    tpu.vector_store %arg30[%c5_212, %c0_213], %255 {strides = array<i32>} : memref<8x32xf32, #tpu.memory_space<vmem>>, vector<1x32xf32>,
    %c6_214 = arith.constant 6 : index
    %c0_215 = arith.constant 0 : index
    %c0_216 = arith.constant 0 : index
    %257 = vector.load %arg13[%c6_214, %c0_215, %c0_216] : memref<8x64x32xf32, #tpu.memory_space<vmem>>, vector<1x64x32xf32>
    %258 = vector.shape_cast %257 : vector<1x64x32xf32> to vector<64x32xf32>
    %cst_217 = arith.constant dense<0.000000e+00> : vector<1x32xf32>
    %259 = tpu.matmul %220, %258, %cst_217 {dimension_numbers = #tpu.dot_dimension_numbers<[1], [0], [0], [1], [0, 0, 1, 1], [], []>} : vector<1x64xf32>, vector<64x32xf32>, vector<1x32xf32> -> vector<1x32xf32>
    %260 = vector.extract_strided_slice %9 {offsets = [6, 0], sizes = [1, 32], strides = [1, 1]} : vector<8x32xf32> to vector<1x32xf32>
    %261 = arith.addf %259, %260 : vector<1x32xf32>
    %c6_218 = arith.constant 6 : index
    %c0_219 = arith.constant 0 : index
    %262 = vector.load %arg30[%c6_218, %c0_219] : memref<8x32xf32, #tpu.memory_space<vmem>>, vector<1x32xf32>
    tpu.vector_store %arg30[%c6_218, %c0_219], %261 {strides = array<i32>} : memref<8x32xf32, #tpu.memory_space<vmem>>, vector<1x32xf32>,
    %c7_220 = arith.constant 7 : index
    %c0_221 = arith.constant 0 : index
    %c0_222 = arith.constant 0 : index
    %263 = vector.load %arg13[%c7_220, %c0_221, %c0_222] : memref<8x64x32xf32, #tpu.memory_space<vmem>>, vector<1x64x32xf32>
    %264 = vector.shape_cast %263 : vector<1x64x32xf32> to vector<64x32xf32>
    %cst_223 = arith.constant dense<0.000000e+00> : vector<1x32xf32>
    %265 = tpu.matmul %220, %264, %cst_223 {dimension_numbers = #tpu.dot_dimension_numbers<[1], [0], [0], [1], [0, 0, 1, 1], [], []>} : vector<1x64xf32>, vector<64x32xf32>, vector<1x32xf32> -> vector<1x32xf32>
    %266 = vector.extract_strided_slice %9 {offsets = [7, 0], sizes = [1, 32], strides = [1, 1]} : vector<8x32xf32> to vector<1x32xf32>
    %267 = arith.addf %265, %266 : vector<1x32xf32>
    %c7_224 = arith.constant 7 : index
    %c0_225 = arith.constant 0 : index
    %268 = vector.load %arg30[%c7_224, %c0_225] : memref<8x32xf32, #tpu.memory_space<vmem>>, vector<1x32xf32>
    tpu.vector_store %arg30[%c7_224, %c0_225], %267 {strides = array<i32>} : memref<8x32xf32, #tpu.memory_space<vmem>>, vector<1x32xf32>,
    %c0_226 = arith.constant 0 : index
    %c0_227 = arith.constant 0 : index
    %269 = vector.load %arg30[%c0_226, %c0_227] : memref<8x32xf32, #tpu.memory_space<vmem>>, vector<8x32xf32>
    %cst_228 = arith.constant dense<0.000000e+00> : vector<16x32xf32>
    %270 = tpu.matmul %7, %269, %cst_228 {dimension_numbers = #tpu.dot_dimension_numbers<[1], [0], [0], [1], [0, 0, 1, 1], [], []>} : vector<16x8xf32>, vector<8x32xf32>, vector<16x32xf32> -> vector<16x32xf32>
    %c0_229 = arith.constant 0 : index
    %c0_230 = arith.constant 0 : index
    %271 = vector.load %arg16[%c0_229, %c0_230] : memref<1x32xf32, #tpu.memory_space<vmem>>, vector<1x32xf32>
    %c0_231 = arith.constant 0 : index
    %c0_232 = arith.constant 0 : index
    %c0_233 = arith.constant 0 : index
    %272 = vector.load %arg15[%c0_231, %c0_232, %c0_233] : memref<3x32x32xf32, #tpu.memory_space<vmem>>, vector<1x32x32xf32>
    %273 = vector.shape_cast %272 : vector<1x32x32xf32> to vector<32x32xf32>
    %cst_234 = arith.constant dense<0.000000e+00> : vector<16x32xf32>
    %274 = tpu.matmul %270, %273, %cst_234 {dimension_numbers = #tpu.dot_dimension_numbers<[1], [0], [0], [1], [0, 0, 1, 1], [], []>} : vector<16x32xf32>, vector<32x32xf32>, vector<16x32xf32> -> vector<16x32xf32>
    %cst_235 = arith.constant dense<0.000000e+00> : vector<16x32xf32>
    %275 = tpu.matmul %1, %270, %cst_235 {dimension_numbers = #tpu.dot_dimension_numbers<[1], [0], [0], [1], [0, 0, 1, 1], [], []>} : vector<16x16xf32>, vector<16x32xf32>, vector<16x32xf32> -> vector<16x32xf32>
    %c1_236 = arith.constant 1 : index
    %c0_237 = arith.constant 0 : index
    %c0_238 = arith.constant 0 : index
    %276 = vector.load %arg15[%c1_236, %c0_237, %c0_238] : memref<3x32x32xf32, #tpu.memory_space<vmem>>, vector<1x32x32xf32>
    %277 = vector.shape_cast %276 : vector<1x32x32xf32> to vector<32x32xf32>
    %cst_239 = arith.constant dense<0.000000e+00> : vector<16x32xf32>
    %278 = tpu.matmul %275, %277, %cst_239 {dimension_numbers = #tpu.dot_dimension_numbers<[1], [0], [0], [1], [0, 0, 1, 1], [], []>} : vector<16x32xf32>, vector<32x32xf32>, vector<16x32xf32> -> vector<16x32xf32>
    %279 = arith.addf %274, %278 : vector<16x32xf32>
    %cst_240 = arith.constant dense<0.000000e+00> : vector<16x32xf32>
    %280 = tpu.matmul %3, %275, %cst_240 {dimension_numbers = #tpu.dot_dimension_numbers<[1], [0], [0], [1], [0, 0, 1, 1], [], []>} : vector<16x16xf32>, vector<16x32xf32>, vector<16x32xf32> -> vector<16x32xf32>
    %281 = arith.subf %280, %270 : vector<16x32xf32>
    %c2_241 = arith.constant 2 : index
    %c0_242 = arith.constant 0 : index
    %c0_243 = arith.constant 0 : index
    %282 = vector.load %arg15[%c2_241, %c0_242, %c0_243] : memref<3x32x32xf32, #tpu.memory_space<vmem>>, vector<1x32x32xf32>
    %283 = vector.shape_cast %282 : vector<1x32x32xf32> to vector<32x32xf32>
    %cst_244 = arith.constant dense<0.000000e+00> : vector<16x32xf32>
    %284 = tpu.matmul %281, %283, %cst_244 {dimension_numbers = #tpu.dot_dimension_numbers<[1], [0], [0], [1], [0, 0, 1, 1], [], []>} : vector<16x32xf32>, vector<32x32xf32>, vector<16x32xf32> -> vector<16x32xf32>
    %285 = arith.addf %279, %284 : vector<16x32xf32>
    %286 = vector.broadcast %271 : vector<1x32xf32> to vector<16x32xf32>
    %287 = arith.addf %285, %286 : vector<16x32xf32>
    %cst_245 = arith.constant 0.000000e+00 : f32
    %288 = vector.broadcast %cst_245 : f32 to vector<16x32xf32>
    %289 = arith.cmpf ogt, %287, %288 : vector<16x32xf32>
    %cst_246 = arith.constant 0.000000e+00 : f32
    %290 = vector.broadcast %cst_246 : f32 to vector<16x32xf32>
    %291 = arith.minimumf %287, %290 : vector<16x32xf32>
    %292 = math.exp %291 : vector<16x32xf32>
    %cst_247 = arith.constant 1.000000e+00 : f32
    %293 = vector.broadcast %cst_247 : f32 to vector<16x32xf32>
    %294 = arith.subf %292, %293 : vector<16x32xf32>
    %295 = arith.select %289, %287, %294 : vector<16x32xi1>, vector<16x32xf32>
    %cst_248 = arith.constant dense<0.000000e+00> : vector<32x32xf32>
    %296 = tpu.matmul %6, %295, %cst_248 {dimension_numbers = #tpu.dot_dimension_numbers<[1], [0], [0], [1], [0, 0, 1, 1], [], []>} : vector<32x16xf32>, vector<16x32xf32>, vector<32x32xf32> -> vector<32x32xf32>
    %c0_249 = arith.constant 0 : index
    %c0_250 = arith.constant 0 : index
    %297 = vector.load %arg18[%c0_249, %c0_250] : memref<1x16xf32, #tpu.memory_space<vmem>>, vector<1x16xf32>
    %c0_251 = arith.constant 0 : index
    %c0_252 = arith.constant 0 : index
    %c0_253 = arith.constant 0 : index
    %298 = vector.load %arg17[%c0_251, %c0_252, %c0_253] : memref<3x32x16xf32, #tpu.memory_space<vmem>>, vector<1x32x16xf32>
    %299 = vector.shape_cast %298 : vector<1x32x16xf32> to vector<32x16xf32>
    %cst_254 = arith.constant dense<0.000000e+00> : vector<32x16xf32>
    %300 = tpu.matmul %296, %299, %cst_254 {dimension_numbers = #tpu.dot_dimension_numbers<[1], [0], [0], [1], [0, 0, 1, 1], [], []>} : vector<32x32xf32>, vector<32x16xf32>, vector<32x16xf32> -> vector<32x16xf32>
    %cst_255 = arith.constant dense<0.000000e+00> : vector<32x32xf32>
    %301 = tpu.matmul %0, %296, %cst_255 {dimension_numbers = #tpu.dot_dimension_numbers<[1], [0], [0], [1], [0, 0, 1, 1], [], []>} : vector<32x32xf32>, vector<32x32xf32>, vector<32x32xf32> -> vector<32x32xf32>
    %c1_256 = arith.constant 1 : index
    %c0_257 = arith.constant 0 : index
    %c0_258 = arith.constant 0 : index
    %302 = vector.load %arg17[%c1_256, %c0_257, %c0_258] : memref<3x32x16xf32, #tpu.memory_space<vmem>>, vector<1x32x16xf32>
    %303 = vector.shape_cast %302 : vector<1x32x16xf32> to vector<32x16xf32>
    %cst_259 = arith.constant dense<0.000000e+00> : vector<32x16xf32>
    %304 = tpu.matmul %301, %303, %cst_259 {dimension_numbers = #tpu.dot_dimension_numbers<[1], [0], [0], [1], [0, 0, 1, 1], [], []>} : vector<32x32xf32>, vector<32x16xf32>, vector<32x16xf32> -> vector<32x16xf32>
    %305 = arith.addf %300, %304 : vector<32x16xf32>
    %cst_260 = arith.constant dense<0.000000e+00> : vector<32x32xf32>
    %306 = tpu.matmul %2, %301, %cst_260 {dimension_numbers = #tpu.dot_dimension_numbers<[1], [0], [0], [1], [0, 0, 1, 1], [], []>} : vector<32x32xf32>, vector<32x32xf32>, vector<32x32xf32> -> vector<32x32xf32>
    %307 = arith.subf %306, %296 : vector<32x32xf32>
    %c2_261 = arith.constant 2 : index
    %c0_262 = arith.constant 0 : index
    %c0_263 = arith.constant 0 : index
    %308 = vector.load %arg17[%c2_261, %c0_262, %c0_263] : memref<3x32x16xf32, #tpu.memory_space<vmem>>, vector<1x32x16xf32>
    %309 = vector.shape_cast %308 : vector<1x32x16xf32> to vector<32x16xf32>
    %cst_264 = arith.constant dense<0.000000e+00> : vector<32x16xf32>
    %310 = tpu.matmul %307, %309, %cst_264 {dimension_numbers = #tpu.dot_dimension_numbers<[1], [0], [0], [1], [0, 0, 1, 1], [], []>} : vector<32x32xf32>, vector<32x16xf32>, vector<32x16xf32> -> vector<32x16xf32>
    %311 = arith.addf %305, %310 : vector<32x16xf32>
    %312 = vector.broadcast %297 : vector<1x16xf32> to vector<32x16xf32>
    %313 = arith.addf %311, %312 : vector<32x16xf32>
    %cst_265 = arith.constant 0.000000e+00 : f32
    %314 = vector.broadcast %cst_265 : f32 to vector<32x16xf32>
    %315 = arith.cmpf ogt, %313, %314 : vector<32x16xf32>
    %cst_266 = arith.constant 0.000000e+00 : f32
    %316 = vector.broadcast %cst_266 : f32 to vector<32x16xf32>
    %317 = arith.minimumf %313, %316 : vector<32x16xf32>
    %318 = math.exp %317 : vector<32x16xf32>
    %cst_267 = arith.constant 1.000000e+00 : f32
    %319 = vector.broadcast %cst_267 : f32 to vector<32x16xf32>
    %320 = arith.subf %318, %319 : vector<32x16xf32>
    %321 = arith.select %315, %313, %320 : vector<32x16xi1>, vector<32x16xf32>
    %c0_268 = arith.constant 0 : index
    %c0_269 = arith.constant 0 : index
    %322 = vector.load %arg20[%c0_268, %c0_269] : memref<1x128xf32, #tpu.memory_space<vmem>>, vector<1x128xf32>
    %c0_270 = arith.constant 0 : index
    %c0_271 = arith.constant 0 : index
    %c0_272 = arith.constant 0 : index
    %323 = vector.load %arg19[%c0_270, %c0_271, %c0_272] : memref<3x16x128xf32, #tpu.memory_space<vmem>>, vector<1x16x128xf32>
    %324 = vector.shape_cast %323 : vector<1x16x128xf32> to vector<16x128xf32>
    %cst_273 = arith.constant dense<0.000000e+00> : vector<32x128xf32>
    %325 = tpu.matmul %321, %324, %cst_273 {dimension_numbers = #tpu.dot_dimension_numbers<[1], [0], [0], [1], [0, 0, 1, 1], [], []>} : vector<32x16xf32>, vector<16x128xf32>, vector<32x128xf32> -> vector<32x128xf32>
    %cst_274 = arith.constant dense<0.000000e+00> : vector<32x16xf32>
    %326 = tpu.matmul %0, %321, %cst_274 {dimension_numbers = #tpu.dot_dimension_numbers<[1], [0], [0], [1], [0, 0, 1, 1], [], []>} : vector<32x32xf32>, vector<32x16xf32>, vector<32x16xf32> -> vector<32x16xf32>
    %c1_275 = arith.constant 1 : index
    %c0_276 = arith.constant 0 : index
    %c0_277 = arith.constant 0 : index
    %327 = vector.load %arg19[%c1_275, %c0_276, %c0_277] : memref<3x16x128xf32, #tpu.memory_space<vmem>>, vector<1x16x128xf32>
    %328 = vector.shape_cast %327 : vector<1x16x128xf32> to vector<16x128xf32>
    %cst_278 = arith.constant dense<0.000000e+00> : vector<32x128xf32>
    %329 = tpu.matmul %326, %328, %cst_278 {dimension_numbers = #tpu.dot_dimension_numbers<[1], [0], [0], [1], [0, 0, 1, 1], [], []>} : vector<32x16xf32>, vector<16x128xf32>, vector<32x128xf32> -> vector<32x128xf32>
    %330 = arith.addf %325, %329 : vector<32x128xf32>
    %cst_279 = arith.constant dense<0.000000e+00> : vector<32x16xf32>
    %331 = tpu.matmul %2, %326, %cst_279 {dimension_numbers = #tpu.dot_dimension_numbers<[1], [0], [0], [1], [0, 0, 1, 1], [], []>} : vector<32x32xf32>, vector<32x16xf32>, vector<32x16xf32> -> vector<32x16xf32>
    %332 = arith.subf %331, %321 : vector<32x16xf32>
    %c2_280 = arith.constant 2 : index
    %c0_281 = arith.constant 0 : index
    %c0_282 = arith.constant 0 : index
    %333 = vector.load %arg19[%c2_280, %c0_281, %c0_282] : memref<3x16x128xf32, #tpu.memory_space<vmem>>, vector<1x16x128xf32>
    %334 = vector.shape_cast %333 : vector<1x16x128xf32> to vector<16x128xf32>
    %cst_283 = arith.constant dense<0.000000e+00> : vector<32x128xf32>
    %335 = tpu.matmul %332, %334, %cst_283 {dimension_numbers = #tpu.dot_dimension_numbers<[1], [0], [0], [1], [0, 0, 1, 1], [], []>} : vector<32x16xf32>, vector<16x128xf32>, vector<32x128xf32> -> vector<32x128xf32>
    %336 = arith.addf %330, %335 : vector<32x128xf32>
    %337 = vector.broadcast %322 : vector<1x128xf32> to vector<32x128xf32>
    %338 = arith.addf %336, %337 : vector<32x128xf32>
    %c0_284 = arith.constant 0 : index
    %c0_285 = arith.constant 0 : index
    %339 = vector.load %arg27[%c0_284, %c0_285] : memref<64x128xf32, #tpu.memory_space<vmem>>, vector<32x128xf32>
    tpu.vector_store %arg27[%c0_284, %c0_285], %338 {strides = array<i32>} : memref<64x128xf32, #tpu.memory_space<vmem>>, vector<32x128xf32>,
    %340 = vector.extract_strided_slice %199 {offsets = [1, 0], sizes = [1, 64], strides = [1, 1]} : vector<2x64xf32> to vector<1x64xf32>
    %c0_286 = arith.constant 0 : index
    %c0_287 = arith.constant 0 : index
    %c0_288 = arith.constant 0 : index
    %341 = vector.load %arg13[%c0_286, %c0_287, %c0_288] : memref<8x64x32xf32, #tpu.memory_space<vmem>>, vector<1x64x32xf32>
    %342 = vector.shape_cast %341 : vector<1x64x32xf32> to vector<64x32xf32>
    %cst_289 = arith.constant dense<0.000000e+00> : vector<1x32xf32>
    %343 = tpu.matmul %340, %342, %cst_289 {dimension_numbers = #tpu.dot_dimension_numbers<[1], [0], [0], [1], [0, 0, 1, 1], [], []>} : vector<1x64xf32>, vector<64x32xf32>, vector<1x32xf32> -> vector<1x32xf32>
    %344 = vector.extract_strided_slice %9 {offsets = [0, 0], sizes = [1, 32], strides = [1, 1]} : vector<8x32xf32> to vector<1x32xf32>
    %345 = arith.addf %343, %344 : vector<1x32xf32>
    %c0_290 = arith.constant 0 : index
    %c0_291 = arith.constant 0 : index
    %346 = vector.load %arg30[%c0_290, %c0_291] : memref<8x32xf32, #tpu.memory_space<vmem>>, vector<1x32xf32>
    tpu.vector_store %arg30[%c0_290, %c0_291], %345 {strides = array<i32>} : memref<8x32xf32, #tpu.memory_space<vmem>>, vector<1x32xf32>,
    %c1_292 = arith.constant 1 : index
    %c0_293 = arith.constant 0 : index
    %c0_294 = arith.constant 0 : index
    %347 = vector.load %arg13[%c1_292, %c0_293, %c0_294] : memref<8x64x32xf32, #tpu.memory_space<vmem>>, vector<1x64x32xf32>
    %348 = vector.shape_cast %347 : vector<1x64x32xf32> to vector<64x32xf32>
    %cst_295 = arith.constant dense<0.000000e+00> : vector<1x32xf32>
    %349 = tpu.matmul %340, %348, %cst_295 {dimension_numbers = #tpu.dot_dimension_numbers<[1], [0], [0], [1], [0, 0, 1, 1], [], []>} : vector<1x64xf32>, vector<64x32xf32>, vector<1x32xf32> -> vector<1x32xf32>
    %350 = vector.extract_strided_slice %9 {offsets = [1, 0], sizes = [1, 32], strides = [1, 1]} : vector<8x32xf32> to vector<1x32xf32>
    %351 = arith.addf %349, %350 : vector<1x32xf32>
    %c1_296 = arith.constant 1 : index
    %c0_297 = arith.constant 0 : index
    %352 = vector.load %arg30[%c1_296, %c0_297] : memref<8x32xf32, #tpu.memory_space<vmem>>, vector<1x32xf32>
    tpu.vector_store %arg30[%c1_296, %c0_297], %351 {strides = array<i32>} : memref<8x32xf32, #tpu.memory_space<vmem>>, vector<1x32xf32>,
    %c2_298 = arith.constant 2 : index
    %c0_299 = arith.constant 0 : index
    %c0_300 = arith.constant 0 : index
    %353 = vector.load %arg13[%c2_298, %c0_299, %c0_300] : memref<8x64x32xf32, #tpu.memory_space<vmem>>, vector<1x64x32xf32>
    %354 = vector.shape_cast %353 : vector<1x64x32xf32> to vector<64x32xf32>
    %cst_301 = arith.constant dense<0.000000e+00> : vector<1x32xf32>
    %355 = tpu.matmul %340, %354, %cst_301 {dimension_numbers = #tpu.dot_dimension_numbers<[1], [0], [0], [1], [0, 0, 1, 1], [], []>} : vector<1x64xf32>, vector<64x32xf32>, vector<1x32xf32> -> vector<1x32xf32>
    %356 = vector.extract_strided_slice %9 {offsets = [2, 0], sizes = [1, 32], strides = [1, 1]} : vector<8x32xf32> to vector<1x32xf32>
    %357 = arith.addf %355, %356 : vector<1x32xf32>
    %c2_302 = arith.constant 2 : index
    %c0_303 = arith.constant 0 : index
    %358 = vector.load %arg30[%c2_302, %c0_303] : memref<8x32xf32, #tpu.memory_space<vmem>>, vector<1x32xf32>
    tpu.vector_store %arg30[%c2_302, %c0_303], %357 {strides = array<i32>} : memref<8x32xf32, #tpu.memory_space<vmem>>, vector<1x32xf32>,
    %c3_304 = arith.constant 3 : index
    %c0_305 = arith.constant 0 : index
    %c0_306 = arith.constant 0 : index
    %359 = vector.load %arg13[%c3_304, %c0_305, %c0_306] : memref<8x64x32xf32, #tpu.memory_space<vmem>>, vector<1x64x32xf32>
    %360 = vector.shape_cast %359 : vector<1x64x32xf32> to vector<64x32xf32>
    %cst_307 = arith.constant dense<0.000000e+00> : vector<1x32xf32>
    %361 = tpu.matmul %340, %360, %cst_307 {dimension_numbers = #tpu.dot_dimension_numbers<[1], [0], [0], [1], [0, 0, 1, 1], [], []>} : vector<1x64xf32>, vector<64x32xf32>, vector<1x32xf32> -> vector<1x32xf32>
    %362 = vector.extract_strided_slice %9 {offsets = [3, 0], sizes = [1, 32], strides = [1, 1]} : vector<8x32xf32> to vector<1x32xf32>
    %363 = arith.addf %361, %362 : vector<1x32xf32>
    %c3_308 = arith.constant 3 : index
    %c0_309 = arith.constant 0 : index
    %364 = vector.load %arg30[%c3_308, %c0_309] : memref<8x32xf32, #tpu.memory_space<vmem>>, vector<1x32xf32>
    tpu.vector_store %arg30[%c3_308, %c0_309], %363 {strides = array<i32>} : memref<8x32xf32, #tpu.memory_space<vmem>>, vector<1x32xf32>,
    %c4_310 = arith.constant 4 : index
    %c0_311 = arith.constant 0 : index
    %c0_312 = arith.constant 0 : index
    %365 = vector.load %arg13[%c4_310, %c0_311, %c0_312] : memref<8x64x32xf32, #tpu.memory_space<vmem>>, vector<1x64x32xf32>
    %366 = vector.shape_cast %365 : vector<1x64x32xf32> to vector<64x32xf32>
    %cst_313 = arith.constant dense<0.000000e+00> : vector<1x32xf32>
    %367 = tpu.matmul %340, %366, %cst_313 {dimension_numbers = #tpu.dot_dimension_numbers<[1], [0], [0], [1], [0, 0, 1, 1], [], []>} : vector<1x64xf32>, vector<64x32xf32>, vector<1x32xf32> -> vector<1x32xf32>
    %368 = vector.extract_strided_slice %9 {offsets = [4, 0], sizes = [1, 32], strides = [1, 1]} : vector<8x32xf32> to vector<1x32xf32>
    %369 = arith.addf %367, %368 : vector<1x32xf32>
    %c4_314 = arith.constant 4 : index
    %c0_315 = arith.constant 0 : index
    %370 = vector.load %arg30[%c4_314, %c0_315] : memref<8x32xf32, #tpu.memory_space<vmem>>, vector<1x32xf32>
    tpu.vector_store %arg30[%c4_314, %c0_315], %369 {strides = array<i32>} : memref<8x32xf32, #tpu.memory_space<vmem>>, vector<1x32xf32>,
    %c5_316 = arith.constant 5 : index
    %c0_317 = arith.constant 0 : index
    %c0_318 = arith.constant 0 : index
    %371 = vector.load %arg13[%c5_316, %c0_317, %c0_318] : memref<8x64x32xf32, #tpu.memory_space<vmem>>, vector<1x64x32xf32>
    %372 = vector.shape_cast %371 : vector<1x64x32xf32> to vector<64x32xf32>
    %cst_319 = arith.constant dense<0.000000e+00> : vector<1x32xf32>
    %373 = tpu.matmul %340, %372, %cst_319 {dimension_numbers = #tpu.dot_dimension_numbers<[1], [0], [0], [1], [0, 0, 1, 1], [], []>} : vector<1x64xf32>, vector<64x32xf32>, vector<1x32xf32> -> vector<1x32xf32>
    %374 = vector.extract_strided_slice %9 {offsets = [5, 0], sizes = [1, 32], strides = [1, 1]} : vector<8x32xf32> to vector<1x32xf32>
    %375 = arith.addf %373, %374 : vector<1x32xf32>
    %c5_320 = arith.constant 5 : index
    %c0_321 = arith.constant 0 : index
    %376 = vector.load %arg30[%c5_320, %c0_321] : memref<8x32xf32, #tpu.memory_space<vmem>>, vector<1x32xf32>
    tpu.vector_store %arg30[%c5_320, %c0_321], %375 {strides = array<i32>} : memref<8x32xf32, #tpu.memory_space<vmem>>, vector<1x32xf32>,
    %c6_322 = arith.constant 6 : index
    %c0_323 = arith.constant 0 : index
    %c0_324 = arith.constant 0 : index
    %377 = vector.load %arg13[%c6_322, %c0_323, %c0_324] : memref<8x64x32xf32, #tpu.memory_space<vmem>>, vector<1x64x32xf32>
    %378 = vector.shape_cast %377 : vector<1x64x32xf32> to vector<64x32xf32>
    %cst_325 = arith.constant dense<0.000000e+00> : vector<1x32xf32>
    %379 = tpu.matmul %340, %378, %cst_325 {dimension_numbers = #tpu.dot_dimension_numbers<[1], [0], [0], [1], [0, 0, 1, 1], [], []>} : vector<1x64xf32>, vector<64x32xf32>, vector<1x32xf32> -> vector<1x32xf32>
    %380 = vector.extract_strided_slice %9 {offsets = [6, 0], sizes = [1, 32], strides = [1, 1]} : vector<8x32xf32> to vector<1x32xf32>
    %381 = arith.addf %379, %380 : vector<1x32xf32>
    %c6_326 = arith.constant 6 : index
    %c0_327 = arith.constant 0 : index
    %382 = vector.load %arg30[%c6_326, %c0_327] : memref<8x32xf32, #tpu.memory_space<vmem>>, vector<1x32xf32>
    tpu.vector_store %arg30[%c6_326, %c0_327], %381 {strides = array<i32>} : memref<8x32xf32, #tpu.memory_space<vmem>>, vector<1x32xf32>,
    %c7_328 = arith.constant 7 : index
    %c0_329 = arith.constant 0 : index
    %c0_330 = arith.constant 0 : index
    %383 = vector.load %arg13[%c7_328, %c0_329, %c0_330] : memref<8x64x32xf32, #tpu.memory_space<vmem>>, vector<1x64x32xf32>
    %384 = vector.shape_cast %383 : vector<1x64x32xf32> to vector<64x32xf32>
    %cst_331 = arith.constant dense<0.000000e+00> : vector<1x32xf32>
    %385 = tpu.matmul %340, %384, %cst_331 {dimension_numbers = #tpu.dot_dimension_numbers<[1], [0], [0], [1], [0, 0, 1, 1], [], []>} : vector<1x64xf32>, vector<64x32xf32>, vector<1x32xf32> -> vector<1x32xf32>
    %386 = vector.extract_strided_slice %9 {offsets = [7, 0], sizes = [1, 32], strides = [1, 1]} : vector<8x32xf32> to vector<1x32xf32>
    %387 = arith.addf %385, %386 : vector<1x32xf32>
    %c7_332 = arith.constant 7 : index
    %c0_333 = arith.constant 0 : index
    %388 = vector.load %arg30[%c7_332, %c0_333] : memref<8x32xf32, #tpu.memory_space<vmem>>, vector<1x32xf32>
    tpu.vector_store %arg30[%c7_332, %c0_333], %387 {strides = array<i32>} : memref<8x32xf32, #tpu.memory_space<vmem>>, vector<1x32xf32>,
    %c0_334 = arith.constant 0 : index
    %c0_335 = arith.constant 0 : index
    %389 = vector.load %arg30[%c0_334, %c0_335] : memref<8x32xf32, #tpu.memory_space<vmem>>, vector<8x32xf32>
    %cst_336 = arith.constant dense<0.000000e+00> : vector<16x32xf32>
    %390 = tpu.matmul %7, %389, %cst_336 {dimension_numbers = #tpu.dot_dimension_numbers<[1], [0], [0], [1], [0, 0, 1, 1], [], []>} : vector<16x8xf32>, vector<8x32xf32>, vector<16x32xf32> -> vector<16x32xf32>
    %c0_337 = arith.constant 0 : index
    %c0_338 = arith.constant 0 : index
    %391 = vector.load %arg16[%c0_337, %c0_338] : memref<1x32xf32, #tpu.memory_space<vmem>>, vector<1x32xf32>
    %c0_339 = arith.constant 0 : index
    %c0_340 = arith.constant 0 : index
    %c0_341 = arith.constant 0 : index
    %392 = vector.load %arg15[%c0_339, %c0_340, %c0_341] : memref<3x32x32xf32, #tpu.memory_space<vmem>>, vector<1x32x32xf32>
    %393 = vector.shape_cast %392 : vector<1x32x32xf32> to vector<32x32xf32>
    %cst_342 = arith.constant dense<0.000000e+00> : vector<16x32xf32>
    %394 = tpu.matmul %390, %393, %cst_342 {dimension_numbers = #tpu.dot_dimension_numbers<[1], [0], [0], [1], [0, 0, 1, 1], [], []>} : vector<16x32xf32>, vector<32x32xf32>, vector<16x32xf32> -> vector<16x32xf32>
    %cst_343 = arith.constant dense<0.000000e+00> : vector<16x32xf32>
    %395 = tpu.matmul %1, %390, %cst_343 {dimension_numbers = #tpu.dot_dimension_numbers<[1], [0], [0], [1], [0, 0, 1, 1], [], []>} : vector<16x16xf32>, vector<16x32xf32>, vector<16x32xf32> -> vector<16x32xf32>
    %c1_344 = arith.constant 1 : index
    %c0_345 = arith.constant 0 : index
    %c0_346 = arith.constant 0 : index
    %396 = vector.load %arg15[%c1_344, %c0_345, %c0_346] : memref<3x32x32xf32, #tpu.memory_space<vmem>>, vector<1x32x32xf32>
    %397 = vector.shape_cast %396 : vector<1x32x32xf32> to vector<32x32xf32>
    %cst_347 = arith.constant dense<0.000000e+00> : vector<16x32xf32>
    %398 = tpu.matmul %395, %397, %cst_347 {dimension_numbers = #tpu.dot_dimension_numbers<[1], [0], [0], [1], [0, 0, 1, 1], [], []>} : vector<16x32xf32>, vector<32x32xf32>, vector<16x32xf32> -> vector<16x32xf32>
    %399 = arith.addf %394, %398 : vector<16x32xf32>
    %cst_348 = arith.constant dense<0.000000e+00> : vector<16x32xf32>
    %400 = tpu.matmul %3, %395, %cst_348 {dimension_numbers = #tpu.dot_dimension_numbers<[1], [0], [0], [1], [0, 0, 1, 1], [], []>} : vector<16x16xf32>, vector<16x32xf32>, vector<16x32xf32> -> vector<16x32xf32>
    %401 = arith.subf %400, %390 : vector<16x32xf32>
    %c2_349 = arith.constant 2 : index
    %c0_350 = arith.constant 0 : index
    %c0_351 = arith.constant 0 : index
    %402 = vector.load %arg15[%c2_349, %c0_350, %c0_351] : memref<3x32x32xf32, #tpu.memory_space<vmem>>, vector<1x32x32xf32>
    %403 = vector.shape_cast %402 : vector<1x32x32xf32> to vector<32x32xf32>
    %cst_352 = arith.constant dense<0.000000e+00> : vector<16x32xf32>
    %404 = tpu.matmul %401, %403, %cst_352 {dimension_numbers = #tpu.dot_dimension_numbers<[1], [0], [0], [1], [0, 0, 1, 1], [], []>} : vector<16x32xf32>, vector<32x32xf32>, vector<16x32xf32> -> vector<16x32xf32>
    %405 = arith.addf %399, %404 : vector<16x32xf32>
    %406 = vector.broadcast %391 : vector<1x32xf32> to vector<16x32xf32>
    %407 = arith.addf %405, %406 : vector<16x32xf32>
    %cst_353 = arith.constant 0.000000e+00 : f32
    %408 = vector.broadcast %cst_353 : f32 to vector<16x32xf32>
    %409 = arith.cmpf ogt, %407, %408 : vector<16x32xf32>
    %cst_354 = arith.constant 0.000000e+00 : f32
    %410 = vector.broadcast %cst_354 : f32 to vector<16x32xf32>
    %411 = arith.minimumf %407, %410 : vector<16x32xf32>
    %412 = math.exp %411 : vector<16x32xf32>
    %cst_355 = arith.constant 1.000000e+00 : f32
    %413 = vector.broadcast %cst_355 : f32 to vector<16x32xf32>
    %414 = arith.subf %412, %413 : vector<16x32xf32>
    %415 = arith.select %409, %407, %414 : vector<16x32xi1>, vector<16x32xf32>
    %cst_356 = arith.constant dense<0.000000e+00> : vector<32x32xf32>
    %416 = tpu.matmul %6, %415, %cst_356 {dimension_numbers = #tpu.dot_dimension_numbers<[1], [0], [0], [1], [0, 0, 1, 1], [], []>} : vector<32x16xf32>, vector<16x32xf32>, vector<32x32xf32> -> vector<32x32xf32>
    %c0_357 = arith.constant 0 : index
    %c0_358 = arith.constant 0 : index
    %417 = vector.load %arg18[%c0_357, %c0_358] : memref<1x16xf32, #tpu.memory_space<vmem>>, vector<1x16xf32>
    %c0_359 = arith.constant 0 : index
    %c0_360 = arith.constant 0 : index
    %c0_361 = arith.constant 0 : index
    %418 = vector.load %arg17[%c0_359, %c0_360, %c0_361] : memref<3x32x16xf32, #tpu.memory_space<vmem>>, vector<1x32x16xf32>
    %419 = vector.shape_cast %418 : vector<1x32x16xf32> to vector<32x16xf32>
    %cst_362 = arith.constant dense<0.000000e+00> : vector<32x16xf32>
    %420 = tpu.matmul %416, %419, %cst_362 {dimension_numbers = #tpu.dot_dimension_numbers<[1], [0], [0], [1], [0, 0, 1, 1], [], []>} : vector<32x32xf32>, vector<32x16xf32>, vector<32x16xf32> -> vector<32x16xf32>
    %cst_363 = arith.constant dense<0.000000e+00> : vector<32x32xf32>
    %421 = tpu.matmul %0, %416, %cst_363 {dimension_numbers = #tpu.dot_dimension_numbers<[1], [0], [0], [1], [0, 0, 1, 1], [], []>} : vector<32x32xf32>, vector<32x32xf32>, vector<32x32xf32> -> vector<32x32xf32>
    %c1_364 = arith.constant 1 : index
    %c0_365 = arith.constant 0 : index
    %c0_366 = arith.constant 0 : index
    %422 = vector.load %arg17[%c1_364, %c0_365, %c0_366] : memref<3x32x16xf32, #tpu.memory_space<vmem>>, vector<1x32x16xf32>
    %423 = vector.shape_cast %422 : vector<1x32x16xf32> to vector<32x16xf32>
    %cst_367 = arith.constant dense<0.000000e+00> : vector<32x16xf32>
    %424 = tpu.matmul %421, %423, %cst_367 {dimension_numbers = #tpu.dot_dimension_numbers<[1], [0], [0], [1], [0, 0, 1, 1], [], []>} : vector<32x32xf32>, vector<32x16xf32>, vector<32x16xf32> -> vector<32x16xf32>
    %425 = arith.addf %420, %424 : vector<32x16xf32>
    %cst_368 = arith.constant dense<0.000000e+00> : vector<32x32xf32>
    %426 = tpu.matmul %2, %421, %cst_368 {dimension_numbers = #tpu.dot_dimension_numbers<[1], [0], [0], [1], [0, 0, 1, 1], [], []>} : vector<32x32xf32>, vector<32x32xf32>, vector<32x32xf32> -> vector<32x32xf32>
    %427 = arith.subf %426, %416 : vector<32x32xf32>
    %c2_369 = arith.constant 2 : index
    %c0_370 = arith.constant 0 : index
    %c0_371 = arith.constant 0 : index
    %428 = vector.load %arg17[%c2_369, %c0_370, %c0_371] : memref<3x32x16xf32, #tpu.memory_space<vmem>>, vector<1x32x16xf32>
    %429 = vector.shape_cast %428 : vector<1x32x16xf32> to vector<32x16xf32>
    %cst_372 = arith.constant dense<0.000000e+00> : vector<32x16xf32>
    %430 = tpu.matmul %427, %429, %cst_372 {dimension_numbers = #tpu.dot_dimension_numbers<[1], [0], [0], [1], [0, 0, 1, 1], [], []>} : vector<32x32xf32>, vector<32x16xf32>, vector<32x16xf32> -> vector<32x16xf32>
    %431 = arith.addf %425, %430 : vector<32x16xf32>
    %432 = vector.broadcast %417 : vector<1x16xf32> to vector<32x16xf32>
    %433 = arith.addf %431, %432 : vector<32x16xf32>
    %cst_373 = arith.constant 0.000000e+00 : f32
    %434 = vector.broadcast %cst_373 : f32 to vector<32x16xf32>
    %435 = arith.cmpf ogt, %433, %434 : vector<32x16xf32>
    %cst_374 = arith.constant 0.000000e+00 : f32
    %436 = vector.broadcast %cst_374 : f32 to vector<32x16xf32>
    %437 = arith.minimumf %433, %436 : vector<32x16xf32>
    %438 = math.exp %437 : vector<32x16xf32>
    %cst_375 = arith.constant 1.000000e+00 : f32
    %439 = vector.broadcast %cst_375 : f32 to vector<32x16xf32>
    %440 = arith.subf %438, %439 : vector<32x16xf32>
    %441 = arith.select %435, %433, %440 : vector<32x16xi1>, vector<32x16xf32>
    %c0_376 = arith.constant 0 : index
    %c0_377 = arith.constant 0 : index
    %442 = vector.load %arg20[%c0_376, %c0_377] : memref<1x128xf32, #tpu.memory_space<vmem>>, vector<1x128xf32>
    %c0_378 = arith.constant 0 : index
    %c0_379 = arith.constant 0 : index
    %c0_380 = arith.constant 0 : index
    %443 = vector.load %arg19[%c0_378, %c0_379, %c0_380] : memref<3x16x128xf32, #tpu.memory_space<vmem>>, vector<1x16x128xf32>
    %444 = vector.shape_cast %443 : vector<1x16x128xf32> to vector<16x128xf32>
    %cst_381 = arith.constant dense<0.000000e+00> : vector<32x128xf32>
    %445 = tpu.matmul %441, %444, %cst_381 {dimension_numbers = #tpu.dot_dimension_numbers<[1], [0], [0], [1], [0, 0, 1, 1], [], []>} : vector<32x16xf32>, vector<16x128xf32>, vector<32x128xf32> -> vector<32x128xf32>
    %cst_382 = arith.constant dense<0.000000e+00> : vector<32x16xf32>
    %446 = tpu.matmul %0, %441, %cst_382 {dimension_numbers = #tpu.dot_dimension_numbers<[1], [0], [0], [1], [0, 0, 1, 1], [], []>} : vector<32x32xf32>, vector<32x16xf32>, vector<32x16xf32> -> vector<32x16xf32>
    %c1_383 = arith.constant 1 : index
    %c0_384 = arith.constant 0 : index
    %c0_385 = arith.constant 0 : index
    %447 = vector.load %arg19[%c1_383, %c0_384, %c0_385] : memref<3x16x128xf32, #tpu.memory_space<vmem>>, vector<1x16x128xf32>
    %448 = vector.shape_cast %447 : vector<1x16x128xf32> to vector<16x128xf32>
    %cst_386 = arith.constant dense<0.000000e+00> : vector<32x128xf32>
    %449 = tpu.matmul %446, %448, %cst_386 {dimension_numbers = #tpu.dot_dimension_numbers<[1], [0], [0], [1], [0, 0, 1, 1], [], []>} : vector<32x16xf32>, vector<16x128xf32>, vector<32x128xf32> -> vector<32x128xf32>
    %450 = arith.addf %445, %449 : vector<32x128xf32>
    %cst_387 = arith.constant dense<0.000000e+00> : vector<32x16xf32>
    %451 = tpu.matmul %2, %446, %cst_387 {dimension_numbers = #tpu.dot_dimension_numbers<[1], [0], [0], [1], [0, 0, 1, 1], [], []>} : vector<32x32xf32>, vector<32x16xf32>, vector<32x16xf32> -> vector<32x16xf32>
    %452 = arith.subf %451, %441 : vector<32x16xf32>
    %c2_388 = arith.constant 2 : index
    %c0_389 = arith.constant 0 : index
    %c0_390 = arith.constant 0 : index
    %453 = vector.load %arg19[%c2_388, %c0_389, %c0_390] : memref<3x16x128xf32, #tpu.memory_space<vmem>>, vector<1x16x128xf32>
    %454 = vector.shape_cast %453 : vector<1x16x128xf32> to vector<16x128xf32>
    %cst_391 = arith.constant dense<0.000000e+00> : vector<32x128xf32>
    %455 = tpu.matmul %452, %454, %cst_391 {dimension_numbers = #tpu.dot_dimension_numbers<[1], [0], [0], [1], [0, 0, 1, 1], [], []>} : vector<32x16xf32>, vector<16x128xf32>, vector<32x128xf32> -> vector<32x128xf32>
    %456 = arith.addf %450, %455 : vector<32x128xf32>
    %457 = vector.broadcast %442 : vector<1x128xf32> to vector<32x128xf32>
    %458 = arith.addf %456, %457 : vector<32x128xf32>
    %c32 = arith.constant 32 : index
    %c0_392 = arith.constant 0 : index
    %459 = vector.load %arg27[%c32, %c0_392] : memref<64x128xf32, #tpu.memory_space<vmem>>, vector<32x128xf32>
    tpu.vector_store %arg27[%c32, %c0_392], %458 {strides = array<i32>} : memref<64x128xf32, #tpu.memory_space<vmem>>, vector<32x128xf32>,
    return
  }
}

</mosaic_0001>

<bundles_post_ra>
// kernel: _lambda_.1
= control target key start
LH: loop header
LB: loop body
LE: loop exit
PB: predicated region body
PF: predicated region fallthrough
CT: control target
= control target key end

     0   :  { %s13163_s0 = inlined_call_operand.vmem [shape: f32[64,3], index: 0, kind: input, shape index: {}]   ;;  %s13164_s1 = inlined_call_operand.vmem [shape: f32[32,32], index: 1, kind: input, shape index: {}]   ;;  %s13165_s2 = inlined_call_operand.vmem [shape: f32[16,16], index: 2, kind: input, shape index: {}]   ;;  %s13166_s3 = inlined_call_operand.hbm [shape: f32[16,32], index: 3, kind: input, shape index: {}]   ;;  %s13167_s4 = inlined_call_operand.hbm [shape: f32[8,16], index: 4, kind: input, shape index: {}]   ;;  %s13168_s5 = inlined_call_operand.hbm [shape: f32[32,16], index: 5, kind: input, shape index: {}]   ;;  %s13169_s6 = inlined_call_operand.hbm [shape: f32[16,8], index: 6, kind: input, shape index: {}]   ;;  %s13170_s7 = inlined_call_operand.hbm [shape: f32[3,3,16], index: 7, kind: input, shape index: {}]   ;;  %s13171_s8 = inlined_call_operand.vmem [shape: f32[1,16], index: 8, kind: input, shape index: {}, may-alias: {8,18,24}]   ;;  %s13172_s9 = inlined_call_operand.hbm [shape: f32[3,16,32], index: 9, kind: input, shape index: {}]   ;;  %s13173_s10 = inlined_call_operand.vmem [shape: f32[1,32], index: 10, kind: input, shape index: {}, may-alias: {10,16,22}]   ;;  %s13174_s11 = inlined_call_operand.hbm [shape: f32[8,32,64], index: 11, kind: input, shape index: {}]   ;;  %s13175_s12 = inlined_call_operand.vmem [shape: f32[1,64], index: 12, kind: input, shape index: {}]   ;;  %s13176_s13 = inlined_call_operand.hbm [shape: f32[8,64,32], index: 13, kind: input, shape index: {}]   ;;  %s13177_s14 = inlined_call_operand.vmem [shape: f32[8,32], index: 14, kind: input, shape index: {}]   ;;  %s13178_s15 = inlined_call_operand.vmem [shape: f32[3,32,32], index: 15, kind: input, shape index: {}]   ;;  %s13179_s16 = inlined_call_operand.vmem [shape: f32[1,32], index: 16, kind: input, shape index: {}, may-alias: {10,16,22}]   ;;  %s13180_s17 = inlined_call_operand.hbm [shape: f32[3,32,16], index: 17, kind: input, shape index: {}]   ;;  %s13181_s18 = inlined_call_operand.vmem [shape: f32[1,16], index: 18, kind: input, shape index: {}, may-alias: {8,18,24}]   ;;  %s13182_s19 = inlined_call_operand.hbm [shape: f32[3,16,128], index: 19, kind: input, shape index: {}]   ;;  %s13183_s20 = inlined_call_operand.vmem [shape: f32[1,128], index: 20, kind: input, shape index: {}, may-alias: {20,26}]   ;;  %s13184_s21 = inlined_call_operand.hbm [shape: f32[64,32], index: 21, kind: input, shape index: {}]   ;;  %s13185_s22 = inlined_call_operand.vmem [shape: f32[1,32], index: 22, kind: input, shape index: {}, may-alias: {10,16,22}]   ;;  %s13186_s23 = inlined_call_operand.hbm [shape: f32[32,16], index: 23, kind: input, shape index: {}]   ;;  %s13187_s24 = inlined_call_operand.vmem [shape: f32[1,16], index: 24, kind: input, shape index: {}, may-alias: {8,18,24}]   ;;  %s13188_s25 = inlined_call_operand.hbm [shape: f32[16,128], index: 25, kind: input, shape index: {}]   ;;  %s13189_s26 = inlined_call_operand.vmem [shape: f32[1,128], index: 26, kind: input, shape index: {}, may-alias: {20,26}]   ;;  %s13190_s27 = inlined_call_operand.vmem [shape: f32[64,128], index: 27, kind: output, shape index: {0}]   ;;  %s13191_s28 = inlined_call_operand.hbm [shape: f32[2,128], index: 28, kind: output, shape index: {1}]  }
   0x1   :  { %13229 = sst [smem:[#allocation41_spill]] %s13163_s0 }
   0x2   :  { %13230 = sst [smem:[#allocation42_spill]] %s13164_s1 }
   0x3   :  { %13231 = sst [smem:[#allocation43_spill]] %s13165_s2 }
   0x4   :  { %13232 = sst [smem:[#allocation44_spill]] %s13166_s3 }
   0x5   :  { %13233 = sst [smem:[#allocation45_spill]] %s13167_s4 }
   0x6   :  { %13234 = sst [smem:[#allocation46_spill]] %s13168_s5 }
   0x7   :  { %13235 = sst [smem:[#allocation47_spill]] %s13169_s6 }
   0x8   :  { %13236 = sst [smem:[#allocation48_spill]] %s13170_s7 }
   0x9   :  { %13237 = sst [smem:[#allocation49_spill]] %s13171_s8 }
   0xa   :  { %13238 = sst [smem:[#allocation50_spill]] %s13172_s9 }
   0xb   :  { %13239 = sst [smem:[#allocation51_spill]] %s13173_s10 }
   0xc   :  { %13240 = sst [smem:[#allocation52_spill]] %s13174_s11 }
   0xd   :  { %13241 = sst [smem:[#allocation53_spill]] %s13175_s12 }
   0xe   :  { %13242 = sst [smem:[#allocation54_spill]] %s13190_s27 }
   0xf   :  { %13243 = sst [smem:[#allocation55_spill]] %s13191_s28 }
  0x10   :  { %34 = vsyncpa [#allocation5], 0 }
  0x11   :  { %35 = vsyncpa [#allocation8], 0 }
  0x12   :  { %36 = vsyncpa [#allocation11], 0 }
  0x13   :  { %37 = vsyncpa [#allocation14], 0 }
  0x14   :  { %38 = vsyncpa [#allocation17], 0 }
  0x15   :  { %39 = vsyncpa [#allocation20], 0 }
  0x16   :  { %40 = vsyncpa [#allocation23], 0 }
  0x17   :  { %41 = vsyncpa [#allocation6], 0  ;;  %s11630_s8 = smov [#allocation7]   ;;  %s13244_s3 = sld [smem:[#allocation45_spill]] }
  0x18   :  { %s66_s5 = sshll.u32 %s11630_s8, 4  ;;  %s67_s5 = int_to_ptr.vmem [resolvable:$true] %s66_s5 }
  0x1d   :  { %s11306_s6 = scalar_lea.hbm %s13244_s3, 128 }
  0x1e   :  { %p11307_p0 = scmp.ne.s32.totalorder %s13244_s3, %s11306_s6  ;;  %p11310_p1 = scmp.lt.u32.totalorder %s11306_s6, %s13244_s3 }
  0x20   :  { %p11312_p2 = pnand %p11310_p1, %p11307_p0 }
  0x22   :  { %11315 = shalt.err (!%p11312_p2)
}
  0x23   :  { %s11316_s2 = scalar_lea.vmem %s67_s5, 128  ;;  %p11321_p4 = scmp.lt.s32.totalorder %s67_s5, %s67_s5 }
  0x24   :  { %p11317_p3 = scmp.ne.s32.totalorder %s67_s5, %s11316_s2  ;;  %p11322_p5 = scmp.lt.s32.totalorder %s11316_s2, %s11316_s2 }
  0x26   :  { %p11323_p6 = por %p11322_p5, %p11321_p4 }
  0x28   :  { %p11324_p7 = pnand %p11323_p6, %p11317_p3 }
  0x2a   :  { %11327 = shalt.err (!%p11324_p7)
}
  0x2b   :  { %69 = dma.hbm_to_vmem [thread:$0]  %s13244_s3, 128, %s67_s5, [#allocation8]  }
  0x2c   :  { %s11631_s1 = smov [#allocation10]   ;;  %s11632_s8 = smov [#allocation13]  }
  0x2d   :  { %s87_s4 = sshll.u32 %s11631_s1, 4  ;;  %s113_s9 = sshll.u32 %s11632_s8, 4  ;;  %s88_s4 = int_to_ptr.vmem [resolvable:$true] %s87_s4  ;;  %s114_s9 = int_to_ptr.vmem [resolvable:$true] %s113_s9 }
  0x2e   :  { %s13245_s10 = sld [smem:[#allocation47_spill]] }
  0x34   :  { %s11328_s0 = scalar_lea.hbm %s13245_s10, 256 }
  0x35   :  { %p11329_p8 = scmp.ne.s32.totalorder %s13245_s10, %s11328_s0  ;;  %p11332_p9 = scmp.lt.u32.totalorder %s11328_s0, %s13245_s10 }
  0x37   :  { %p11334_p10 = pnand %p11332_p9, %p11329_p8 }
  0x39   :  { %11337 = shalt.err (!%p11334_p10)
}
  0x3a   :  { %s11338_s5 = scalar_lea.vmem %s88_s4, 256  ;;  %p11343_p12 = scmp.lt.s32.totalorder %s88_s4, %s88_s4 }
  0x3b   :  { %p11339_p11 = scmp.ne.s32.totalorder %s88_s4, %s11338_s5  ;;  %p11344_p13 = scmp.lt.s32.totalorder %s11338_s5, %s11338_s5 }
  0x3d   :  { %p11345_p0 = por %p11344_p13, %p11343_p12 }
  0x3f   :  { %p11346_p1 = pnand %p11345_p0, %p11339_p11 }
  0x41   :  { %11349 = shalt.err (!%p11346_p1)
}
  0x42   :  { %s11633_s3 = smov 128   ;;  %s11634_s7 = smov 8  }
  0x43   :  { %93 = dma.hbm_to_vmem [thread:$0]  %s13245_s10, 256, %s88_s4, [#allocation11], %s11633_s3, %s11633_s3, %s11634_s7  }
  0x44   :  { %s13246_s30 = sld [smem:[#allocation50_spill]] }
  0x4a   :  { %s11350_s6 = scalar_lea.hbm %s13246_s30, 768 }
  0x4b   :  { %p11351_p2 = scmp.ne.s32.totalorder %s13246_s30, %s11350_s6  ;;  %p11354_p3 = scmp.lt.u32.totalorder %s11350_s6, %s13246_s30 }
  0x4d   :  { %p11356_p4 = pnand %p11354_p3, %p11351_p2 }
  0x4f   :  { %11359 = shalt.err (!%p11356_p4)
}
  0x50   :  { %s11360_s5 = scalar_lea.vmem %s114_s9, 768  ;;  %p11365_p6 = scmp.lt.s32.totalorder %s114_s9, %s114_s9 }
  0x51   :  { %p11361_p5 = scmp.ne.s32.totalorder %s114_s9, %s11360_s5  ;;  %p11366_p7 = scmp.lt.s32.totalorder %s11360_s5, %s11360_s5 }
  0x53   :  { %p11367_p8 = por %p11366_p7, %p11365_p6 }
  0x55   :  { %p11368_p9 = pnand %p11367_p8, %p11361_p5 }
  0x57   :  { %11371 = shalt.err (!%p11368_p9)
}
  0x58   :  { %119 = dma.hbm_to_vmem [thread:$0]  %s13246_s30, 768, %s114_s9, [#allocation14], %s11633_s3, %s11633_s3, %s11634_s7  }
  0x59   :  { %s11635_s12 = smov [#allocation16]   ;;  %s11636_s28 = smov [#allocation19]  }
  0x5a   :  { %s141_s1 = sshll.u32 %s11635_s12, 4  ;;  %s173_s8 = sshll.u32 %s11636_s28, 4  ;;  %s142_s1 = int_to_ptr.vmem [resolvable:$true] %s141_s1  ;;  %s174_s8 = int_to_ptr.vmem [resolvable:$true] %s173_s8 }
  0x5b   :  { %s11372_s11 = scalar_lea.hbm %s13176_s13, 8192 }
  0x5c   :  { %p11373_p10 = scmp.ne.s32.totalorder %s13176_s13, %s11372_s11  ;;  %p11376_p11 = scmp.lt.u32.totalorder %s11372_s11, %s13176_s13 }
  0x5e   :  { %p11378_p12 = pnand %p11376_p11, %p11373_p10 }
  0x60   :  { %11381 = shalt.err (!%p11378_p12)
}
  0x61   :  { %s11382_s9 = scalar_lea.vmem %s142_s1, 8192  ;;  %p11387_p0 = scmp.lt.s32.totalorder %s142_s1, %s142_s1 }
  0x62   :  { %p11383_p13 = scmp.ne.s32.totalorder %s142_s1, %s11382_s9  ;;  %p11388_p1 = scmp.lt.s32.totalorder %s11382_s9, %s11382_s9 }
  0x64   :  { %p11389_p2 = por %p11388_p1, %p11387_p0 }
  0x66   :  { %p11390_p3 = pnand %p11389_p2, %p11383_p13 }
  0x68   :  { %11393 = shalt.err (!%p11390_p3)
}
  0x69   :  { %147 = dma.hbm_to_vmem [thread:$0]  %s13176_s13, 8192, %s142_s1, [#allocation17], %s11633_s3, %s11633_s3, %s11634_s7  }
  0x6a   :  { %s11394_s12 = scalar_lea.hbm %s13182_s19, 768 }
  0x6b   :  { %p11395_p4 = scmp.ne.s32.totalorder %s13182_s19, %s11394_s12  ;;  %p11398_p5 = scmp.lt.u32.totalorder %s11394_s12, %s13182_s19 }
  0x6d   :  { %p11400_p6 = pnand %p11398_p5, %p11395_p4 }
  0x6f   :  { %11403 = shalt.err (!%p11400_p6)
}
  0x70   :  { %s11404_s29 = scalar_lea.vmem %s174_s8, 768  ;;  %p11409_p8 = scmp.lt.s32.totalorder %s174_s8, %s174_s8 }
  0x71   :  { %p11405_p7 = scmp.ne.s32.totalorder %s174_s8, %s11404_s29  ;;  %p11410_p9 = scmp.lt.s32.totalorder %s11404_s29, %s11404_s29 }
  0x73   :  { %p11411_p10 = por %p11410_p9, %p11409_p8 }
  0x75   :  { %p11412_p11 = pnand %p11411_p10, %p11405_p7 }
  0x77   :  { %11415 = shalt.err (!%p11412_p11)
}
  0x78   :  { %179 = dma.hbm_to_vmem [thread:$0]  %s13182_s19, 768, %s174_s8, [#allocation20], %s11633_s3, %s11633_s3, %s11634_s7  }
  0x79   :  { %s11637_s2 = smov [#allocation22]   ;;  %s11638_s9 = smov [#allocation4]  }
  0x7a   :  { %s201_s5 = sshll.u32 %s11637_s2, 4  ;;  %s53_s30 = sshll.u32 %s11638_s9, 4  ;;  %s202_s5 = int_to_ptr.vmem [resolvable:$true] %s201_s5  ;;  %s54_s30 = int_to_ptr.vmem [resolvable:$true] %s53_s30 }
  0x7b   :  { %s11416_s27 = scalar_lea.hbm %s13186_s23, 512 }
  0x7c   :  { %p11417_p12 = scmp.ne.s32.totalorder %s13186_s23, %s11416_s27  ;;  %p11420_p13 = scmp.lt.u32.totalorder %s11416_s27, %s13186_s23 }
  0x7e   :  { %p11422_p0 = pnand %p11420_p13, %p11417_p12 }
  0x80   :  { %11425 = shalt.err (!%p11422_p0)
}
  0x81   :  { %s11426_s19 = scalar_lea.vmem %s202_s5, 512  ;;  %p11431_p2 = scmp.lt.s32.totalorder %s202_s5, %s202_s5 }
  0x82   :  { %p11427_p1 = scmp.ne.s32.totalorder %s202_s5, %s11426_s19  ;;  %p11432_p3 = scmp.lt.s32.totalorder %s11426_s19, %s11426_s19 }
  0x84   :  { %p11433_p4 = por %p11432_p3, %p11431_p2 }
  0x86   :  { %p11434_p5 = pnand %p11433_p4, %p11427_p1 }
  0x88   :  { %11437 = shalt.err (!%p11434_p5)
}
  0x89   :  { %207 = dma.hbm_to_vmem [thread:$0]  %s13186_s23, 512, %s202_s5, [#allocation23], %s11633_s3, %s11633_s3, %s11634_s7  }
  0x8a   :  { %s13247_s1 = sld [smem:[#allocation44_spill]] }
  0x90   :  { %s11438_s2 = scalar_lea.hbm %s13247_s1, 256 }
  0x91   :  { %p11439_p6 = scmp.ne.s32.totalorder %s13247_s1, %s11438_s2  ;;  %p11442_p7 = scmp.lt.u32.totalorder %s11438_s2, %s13247_s1 }
  0x93   :  { %p11444_p8 = pnand %p11442_p7, %p11439_p6 }
  0x95   :  { %11447 = shalt.err (!%p11444_p8)
}
  0x96   :  { %s11448_s12 = scalar_lea.vmem %s54_s30, 256  ;;  %p11453_p10 = scmp.lt.s32.totalorder %s54_s30, %s54_s30 }
  0x97   :  { %p11449_p9 = scmp.ne.s32.totalorder %s54_s30, %s11448_s12  ;;  %p11454_p11 = scmp.lt.s32.totalorder %s11448_s12, %s11448_s12 }
  0x99   :  { %p11455_p12 = por %p11454_p11, %p11453_p10 }
  0x9b   :  { %p11456_p13 = pnand %p11455_p12, %p11449_p9 }
  0x9d   :  { %11459 = shalt.err (!%p11456_p13)
}
  0x9e   :  { %59 = dma.hbm_to_vmem [thread:$0]  %s13247_s1, 256, %s54_s30, [#allocation5], %s11633_s3, %s11633_s3, %s11634_s7  }
  0x9f   :  { %s11639_s28 = smov [#allocation9]   ;;  %s11640_s0 = smov [#allocation12]  }
  0xa0   :  { %s75_s6 = sshll.u32 %s11639_s28, 4  ;;  %s99_s19 = sshll.u32 %s11640_s0, 4  ;;  %s76_s6 = int_to_ptr.vmem [resolvable:$true] %s75_s6  ;;  %s100_s19 = int_to_ptr.vmem [resolvable:$true] %s99_s19 }
  0xa1   :  { %s13248_s29 = sld [smem:[#allocation46_spill]] }
  0xa7   :  { %s11460_s13 = scalar_lea.hbm %s13248_s29, 512 }
  0xa8   :  { %p11461_p0 = scmp.ne.s32.totalorder %s13248_s29, %s11460_s13  ;;  %p11464_p1 = scmp.lt.u32.totalorder %s11460_s13, %s13248_s29 }
  0xaa   :  { %p11466_p2 = pnand %p11464_p1, %p11461_p0 }
  0xac   :  { %11469 = shalt.err (!%p11466_p2)
}
  0xad   :  { %s11470_s30 = scalar_lea.vmem %s76_s6, 512  ;;  %p11475_p4 = scmp.lt.s32.totalorder %s76_s6, %s76_s6 }
  0xae   :  { %p11471_p3 = scmp.ne.s32.totalorder %s76_s6, %s11470_s30  ;;  %p11476_p5 = scmp.lt.s32.totalorder %s11470_s30, %s11470_s30 }
  0xb0   :  { %p11477_p6 = por %p11476_p5, %p11475_p4 }
  0xb2   :  { %p11478_p7 = pnand %p11477_p6, %p11471_p3 }
  0xb4   :  { %11481 = shalt.err (!%p11478_p7)
}
  0xb5   :  { %81 = dma.hbm_to_vmem [thread:$0]  %s13248_s29, 512, %s76_s6, [#allocation8], %s11633_s3, %s11633_s3, %s11634_s7  }
  0xb6   :  { %s13249_s5 = sld [smem:[#allocation48_spill]] }
  0xbc   :  { %s11482_s28 = scalar_lea.hbm %s13249_s5, 192 }
  0xbd   :  { %p11483_p8 = scmp.ne.s32.totalorder %s13249_s5, %s11482_s28  ;;  %p11486_p9 = scmp.lt.u32.totalorder %s11482_s28, %s13249_s5 }
  0xbf   :  { %p11488_p10 = pnand %p11486_p9, %p11483_p8 }
  0xc1   :  { %11491 = shalt.err (!%p11488_p10)
}
  0xc2   :  { %s11492_s2 = scalar_lea.vmem %s100_s19, 192  ;;  %p11497_p12 = scmp.lt.s32.totalorder %s100_s19, %s100_s19 }
  0xc3   :  { %p11493_p11 = scmp.ne.s32.totalorder %s100_s19, %s11492_s2  ;;  %p11498_p13 = scmp.lt.s32.totalorder %s11492_s2, %s11492_s2 }
  0xc5   :  { %p11499_p0 = por %p11498_p13, %p11497_p12 }
  0xc7   :  { %p11500_p1 = pnand %p11499_p0, %p11493_p11 }
  0xc9   :  { %11503 = shalt.err (!%p11500_p1)
}
  0xca   :  { %s11641_s6 = smov 64   ;;  %s11642_s29 = smov 4  }
  0xcb   :  { %105 = dma.hbm_to_vmem [thread:$0]  %s13249_s5, 192, %s100_s19, [#allocation11], %s11641_s6, %s11641_s6, %s11642_s29  }
  0xcc   :  { %s11643_s10 = smov [#allocation15]   ;;  %s11644_s1 = smov [#allocation18]  }
  0xcd   :  { %s127_s30 = sshll.u32 %s11643_s10, 4  ;;  %s159_s27 = sshll.u32 %s11644_s1, 4  ;;  %s128_s30 = int_to_ptr.vmem [resolvable:$true] %s127_s30  ;;  %s160_s27 = int_to_ptr.vmem [resolvable:$true] %s159_s27 }
  0xce   :  { %s13250_s28 = sld [smem:[#allocation52_spill]] }
  0xd4   :  { %s11504_s0 = scalar_lea.hbm %s13250_s28, 4096 }
  0xd5   :  { %p11505_p2 = scmp.ne.s32.totalorder %s13250_s28, %s11504_s0  ;;  %p11508_p3 = scmp.lt.u32.totalorder %s11504_s0, %s13250_s28 }
  0xd7   :  { %p11510_p4 = pnand %p11508_p3, %p11505_p2 }
  0xd9   :  { %11513 = shalt.err (!%p11510_p4)
}
  0xda   :  { %s11514_s19 = scalar_lea.vmem %s128_s30, 4096  ;;  %p11519_p6 = scmp.lt.s32.totalorder %s128_s30, %s128_s30 }
  0xdb   :  { %p11515_p5 = scmp.ne.s32.totalorder %s128_s30, %s11514_s19  ;;  %p11520_p7 = scmp.lt.s32.totalorder %s11514_s19, %s11514_s19 }
  0xdd   :  { %p11521_p8 = por %p11520_p7, %p11519_p6 }
  0xdf   :  { %p11522_p9 = pnand %p11521_p8, %p11515_p5 }
  0xe1   :  { %11525 = shalt.err (!%p11522_p9)
}
  0xe2   :  { %133 = dma.hbm_to_vmem [thread:$0]  %s13250_s28, 4096, %s128_s30, [#allocation14], %s11633_s3, %s11633_s3, %s11634_s7  }
  0xe3   :  { %s11526_s4 = scalar_lea.hbm %s13180_s17, 1536 }
  0xe4   :  { %p11527_p10 = scmp.ne.s32.totalorder %s13180_s17, %s11526_s4  ;;  %p11530_p11 = scmp.lt.u32.totalorder %s11526_s4, %s13180_s17 }
  0xe6   :  { %p11532_p12 = pnand %p11530_p11, %p11527_p10 }
  0xe8   :  { %11535 = shalt.err (!%p11532_p12)
}
  0xe9   :  { %s11536_s0 = scalar_lea.vmem %s160_s27, 1536  ;;  %p11541_p0 = scmp.lt.s32.totalorder %s160_s27, %s160_s27 }
  0xea   :  { %p11537_p13 = scmp.ne.s32.totalorder %s160_s27, %s11536_s0  ;;  %p11542_p1 = scmp.lt.s32.totalorder %s11536_s0, %s11536_s0 }
  0xec   :  { %p11543_p2 = por %p11542_p1, %p11541_p0 }
  0xee   :  { %p11544_p3 = pnand %p11543_p2, %p11537_p13 }
  0xf0   :  { %11547 = shalt.err (!%p11544_p3)
}
  0xf1   :  { %165 = dma.hbm_to_vmem [thread:$0]  %s13180_s17, 1536, %s160_s27, [#allocation17], %s11633_s3, %s11633_s3, %s11634_s7  }
  0xf2   :  { %s11645_s8 = smov [#allocation21]   ;;  %s11646_s13 = smov [#allocation24]  }
  0xf3   :  { %s187_s11 = sshll.u32 %s11645_s8, 4  ;;  %s215_s2 = sshll.u32 %s11646_s13, 4  ;;  %s188_s11 = int_to_ptr.vmem [resolvable:$true] %s187_s11  ;;  %s216_s2 = int_to_ptr.vmem [resolvable:$true] %s215_s2 }
  0xf4   :  { %s11548_s6 = scalar_lea.hbm %s13184_s21, 1024 }
  0xf5   :  { %p11549_p4 = scmp.ne.s32.totalorder %s13184_s21, %s11548_s6  ;;  %p11552_p5 = scmp.lt.u32.totalorder %s11548_s6, %s13184_s21 }
  0xf7   :  { %p11554_p6 = pnand %p11552_p5, %p11549_p4 }
  0xf9   :  { %11557 = shalt.err (!%p11554_p6)
}
  0xfa   :  { %s11558_s17 = scalar_lea.vmem %s188_s11, 1024  ;;  %p11563_p8 = scmp.lt.s32.totalorder %s188_s11, %s188_s11 }
  0xfb   :  { %p11559_p7 = scmp.ne.s32.totalorder %s188_s11, %s11558_s17  ;;  %p11564_p9 = scmp.lt.s32.totalorder %s11558_s17, %s11558_s17 }
  0xfd   :  { %p11565_p10 = por %p11564_p9, %p11563_p8 }
  0xff   :  { %p11566_p11 = pnand %p11565_p10, %p11559_p7 }
 0x101   :  { %11569 = shalt.err (!%p11566_p11)
}
 0x102   :  { %193 = dma.hbm_to_vmem [thread:$0]  %s13184_s21, 1024, %s188_s11, [#allocation20], %s11633_s3, %s11633_s3, %s11634_s7  }
 0x103   :  { %s11570_s0 = scalar_lea.hbm %s13188_s25, 256 }
 0x104   :  { %p11571_p12 = scmp.ne.s32.totalorder %s13188_s25, %s11570_s0  ;;  %p11574_p13 = scmp.lt.u32.totalorder %s11570_s0, %s13188_s25 }
 0x106   :  { %p11576_p0 = pnand %p11574_p13, %p11571_p12 }
 0x108   :  { %11579 = shalt.err (!%p11576_p0)
}
 0x109   :  { %s11580_s19 = scalar_lea.vmem %s216_s2, 256  ;;  %p11585_p2 = scmp.lt.s32.totalorder %s216_s2, %s216_s2 }
 0x10a   :  { %p11581_p1 = scmp.ne.s32.totalorder %s216_s2, %s11580_s19  ;;  %p11586_p3 = scmp.lt.s32.totalorder %s11580_s19, %s11580_s19 }
 0x10c   :  { %p11587_p4 = por %p11586_p3, %p11585_p2 }
 0x10e   :  { %p11588_p5 = pnand %p11587_p4, %p11581_p1 }
 0x110   :  { %11591 = shalt.err (!%p11588_p5)
}
 0x111   :  { %221 = dma.hbm_to_vmem [thread:$0]  %s13188_s25, 256, %s216_s2, [#allocation23], %s11633_s3, %s11633_s3, %s11634_s7  }
 0x112   :  { %11614 = dma.done.wait [#allocation5], 256  }
 0x113   :  { %11615 = vsyncadd [#allocation5], 4294967040 }
 0x114   :  { %11616 = dma.done.wait [#allocation8], 640  }
 0x115   :  { %11617 = vsyncadd [#allocation8], 4294966656 }
 0x116   :  { %11618 = dma.done.wait [#allocation11], 448  }
 0x117   :  { %11619 = vsyncadd [#allocation11], 4294966848 }
 0x118   :  { %11620 = dma.done.wait [#allocation14], 4864  }
 0x119   :  { %11621 = vsyncadd [#allocation14], 4294962432 }
 0x11a   :  { %11622 = dma.done.wait [#allocation17], 9728  }
 0x11b   :  { %11623 = vsyncadd [#allocation17], 4294957568 }
 0x11c   :  { %11624 = dma.done.wait [#allocation20], 1792  }
 0x11d   :  { %11625 = vsyncadd [#allocation20], 4294965504 }
 0x11e   :  { %11626 = dma.done.wait [#allocation23], 768  }
 0x11f   :  { %11627 = vsyncadd [#allocation23], 4294966528  ;;  %vm296_vm0 = vcmask 261120   ;;  %s13251_s29 = sld [smem:[#allocation41_spill]]  ;;  %s13252_s27 = sld [smem:[#allocation42_spill]]  ;;  %vm409_vm1 = vcmask 1042432  }
 0x120   :  { %v395_v10 = vld [vmem:[#allocation12 + $0x4] sm:$0x7]  ;;  %v295_v12 = vld [vmem:[#allocation12] sm:$0x7]  ;;  %vm396_vm2 = vcmask 23552   ;;  %v12077_v31 = vld [vmem:[#allocation4] sm:$0xff] }
 0x121   :  { %9433 = vmatprep.subr.msk.mxu1 %vm409_vm1, %v395_v10  ;;  %v700_v22 = vld [vmem:[#allocation12 + $0x8] sm:$0x7]  ;;  %s13253_s19 = sld [smem:[#allocation49_spill]]  ;;  %v12090_v63 = vld [vmem:[#allocation4 + $0x8] sm:$0xff]  ;;  %s13254_s5 = sld [smem:[#allocation43_spill]]  ;;  %vm923_vm7 = vcmask 130048  }
 0x122   :  { %9434 = vmatpush3.msk.msra.mxu1 %vm409_vm1, %v395_v10  ;;  %s13255_s23 = sld [smem:[#allocation51_spill]]  ;;  %vm11648_vm14 = vmmov 0   ;;  %s13256_s28 = sld [smem:[#allocation53_spill]]  ;;  %vm2063_vm15 = vcmask 516096  }
 0x123   :  { %9441 = vmatprep.subr.msk.mxu1 %vm409_vm1, %v295_v12 }
 0x125   :  { %v286_v0 = vld [vmem:[%s13251_s29] sm:$0xff]  ;;  %v287_v1 = vld [vmem:[%s13251_s29 + $0x8] sm:$0xff]  ;;  %v11994_v2 = vld [vmem:[%s13251_s29 + $0x10] sm:$0xff] }
 0x126   :  { %v10526_v3 = vpack.c.bf16 %v287_v1, %v286_v0  ;;  %v11999_v4 = vld [vmem:[%s13251_s29 + $0x18] sm:$0xff]  ;;  %v12004_v5 = vld [vmem:[%s13252_s27] sm:$0xff]  ;;  %v12013_v7 = vld [vmem:[%s13252_s27 + $0x8] sm:$0xff] }
 0x127   :  { %v10530_v6 = vpack.c.bf16 %v11999_v4, %v11994_v2  ;;  %9427 = vmatprep.mubr.msk.f32.mxu0 %vm296_vm0, %v12004_v5  ;;  %v12018_v8 = vld [vmem:[%s13252_s27 + $0x10] sm:$0xff]  ;;  %v12027_v9 = vld [vmem:[%s13252_s27 + $0x18] sm:$0xff]  ;;  %v12035_v11 = vadd.f32 %v12004_v5, %v12004_v5  ;;  %v12047_v19 = vadd.f32 %v12013_v7, %v12013_v7  ;;  %v12084_v32 = vld [vmem:[%s13253_s19] ss:$0 sm:$0xff] }
 0x128   :  { %10527 = vmatprep.subr.bf16.mxu0 %v10526_v3  ;;  %v12052_v20 = vadd.f32 %v12018_v8, %v12018_v8  ;;  %v12059_v21 = vadd.f32 %v12027_v9, %v12027_v9 }
 0x129   :  { %10529 = vmatpush3.bf16.msra.mxu0 %v10526_v3 }
 0x12a   :  { %10531 = vmatprep.subr.bf16.mxu0 %v10530_v6 }
 0x12d   :  { %10533 = vmatpush3.bf16.msra.mxu0 %v10530_v6 }
 0x130   :  { %9428 = vmatmul.mubr.msk.f32.vlgmr.msra.gmra.mrb[0].mxu0 %vm296_vm0, %v12013_v7 }
 0x131   :  { %9430 = vmatprep.mubr.msk.f32.mxu0 %vm296_vm0, %v12018_v8 }
 0x134   :  { %9431 = vmatmul.mubr.msk.f32.gmra.mrb[2].mxu0 %vm296_vm0, %v12027_v9 }
 0x135   :  { %9457 = vmatprep.mubr.msk.f32.mxu0 %vm296_vm0, %v12035_v11 }
 0x203   :  { %v9429_v13 = vpop.f32.mrb[0].mxu0 }
 0x204   :  { %v375_v14 = vpop.f32.mrb[1].mxu0 }
 0x205   :  { %v10534_v15 = vpack.c.bf16 %v9429_v13, %v375_v14  ;;  %9435 = vmatprep.mubr.msk.f32.mxu1 %vm396_vm2, %v375_v14  ;;  %v922_v14 = vld [vmem:[#allocation13 + $0x8] sm:$0xff] }
 0x206   :  { %9436 = vmatmul.mubr.msk.f32.vlgmr.msra.gmra.mrb[0].mxu1 %vm396_vm2, %v9429_v13  ;;  %v921_v13 = vld [vmem:[#allocation13] sm:$0xff] }
 0x207   :  { %v9432_v16 = vpop.f32.mrb[2].mxu0  ;;  %10535 = vmatprep.subr.bf16.mxu0 %v10534_v15  ;;  %9442 = vmatpush3.msk.msra.mxu1 %vm409_vm1, %v295_v12  ;;  %v12106_v12 = vld [vmem:[%s13254_s5 + $0x8] sm:$0xff] }
 0x208   :  { %v385_v17 = vpop.f32.mrb[3].mxu0  ;;  %10537 = vmatpush3.bf16.msra.mxu0 %v10534_v15  ;;  %9463 = vmatprep.subr.msk.mxu1 %vm409_vm1, %v700_v22  ;;  %v12112_v15 = vpack.c.bf16 %v922_v14, %v921_v13 }
 0x209   :  { %v10538_v18 = vpack.c.bf16 %v9432_v16, %v385_v17  ;;  %9438 = vmatprep.mubr.msk.f32.mxu1 %vm396_vm2, %v385_v17 }
 0x20a   :  { %9439 = vmatmul.mubr.msk.f32.gmra.mrb[2].mxu1 %vm396_vm2, %v9432_v16 }
 0x20b   :  { %10539 = vmatprep.subr.bf16.mxu0 %v10538_v18  ;;  %9443 = vmatprep.mubr.msk.f32.mxu1 %vm396_vm2, %v286_v0 }
 0x20c   :  { %10541 = vmatpush3.bf16.msra.mxu0 %v10538_v18 }
 0x20e   :  { %9444 = vmatmul.mubr.msk.f32.vlgmr.msra.gmra.mrb[0].mxu1 %vm396_vm2, %v287_v1 }
 0x20f   :  { %9458 = vmatmul.mubr.msk.f32.vlgmr.msra.gmra.mrb[4].mxu0 %vm296_vm0, %v12047_v19  ;;  %9446 = vmatprep.mubr.msk.f32.mxu1 %vm396_vm2, %v11994_v2 }
 0x210   :  { %9460 = vmatprep.mubr.msk.f32.mxu0 %vm296_vm0, %v12052_v20  ;;  %9464 = vmatpush3.msk.msra.mxu1 %vm409_vm1, %v700_v22 }
 0x212   :  { %9447 = vmatmul.mubr.msk.f32.gmra.mrb[2].mxu1 %vm396_vm2, %v11999_v4 }
 0x213   :  { %9461 = vmatmul.mubr.msk.f32.gmra.mrb[6].mxu0 %vm296_vm0, %v12059_v21 }
 0x214   :  { %9479 = vmatprep.mubr.msk.f32.mxu0 %vm296_vm0, %v12077_v31 }
 0x2e2   :  { %v9459_v23 = vpop.f32.mrb[4].mxu0 }
 0x2e3   :  { %v676_v24 = vpop.f32.mrb[5].mxu0  ;;  %v696_v26 = vsub.f32 %v9459_v23, %v287_v1  ;;  %v1006_v1 = vld [vmem:[#allocation13 + $0x10] sm:$0xff]  ;;  %v12125_v23 = vadd.f32 %v12106_v12, %v12106_v12 }
 0x2e4   :  { %v695_v25 = vsub.f32 %v676_v24, %v286_v0  ;;  %v12097_v0 = vld [vmem:[%s13254_s5] sm:$0xff]  ;;  %v1254_v24 = vld [vmem:[#allocation13 + $0x20] sm:$0xff] }
 0x2e5   :  { %v12116_v16 = vadd.f32 %v12097_v0, %v12097_v0 }
 0x2e6   :  { %v9462_v27 = vpop.f32.mrb[6].mxu0  ;;  %9465 = vmatprep.mubr.msk.f32.mxu1 %vm396_vm2, %v695_v25  ;;  %v1255_v25 = vld [vmem:[#allocation13 + $0x28] sm:$0xff] }
 0x2e7   :  { %v686_v28 = vpop.f32.mrb[7].mxu0  ;;  %9466 = vmatmul.mubr.msk.f32.vlgmr.msra.gmra.mrb[0].mxu1 %vm396_vm2, %v696_v26  ;;  %v698_v30 = vsub.f32 %v9462_v27, %v11999_v4  ;;  %v12132_v26 = vpack.c.bf16 %v1255_v25, %v1254_v24  ;;  %v12139_v27 = vld [vmem:[%s13251_s29 + $0x20] sm:$0xff] }
 0x2e8   :  { %v697_v29 = vsub.f32 %v686_v28, %v11994_v2  ;;  %v1007_v2 = vld [vmem:[#allocation13 + $0x18] sm:$0xff] }
 0x2e9   :  { %v12101_v10 = vpack.c.bf16 %v1007_v2, %v1006_v1  ;;  %v12144_v28 = vld [vmem:[%s13251_s29 + $0x28] sm:$0xff] }
 0x2ea   :  { %9468 = vmatprep.mubr.msk.f32.mxu1 %vm396_vm2, %v697_v29  ;;  %v10621_v29 = vpack.c.bf16 %v12144_v28, %v12139_v27 }
 0x2eb   :  { %9469 = vmatmul.mubr.msk.f32.gmra.mrb[2].mxu1 %vm396_vm2, %v698_v30 }
 0x2ec   :  { %9507 = vmatprep.mubr.msk.f32.mxu1 %vm923_vm7, %v12116_v16 }
 0x3ba   :  { %v9467_v33 = vpop.f32.mrb[0].mxu1 }
 0x3bb   :  { %v812_v34 = vadd.f32 %v9467_v33, %v12084_v32  ;;  %v782_v35 = vpop.f32.mrb[1].mxu1  ;;  %v12151_v33 = vld [vmem:[%s13251_s29 + $0x30] sm:$0xff] }
 0x3bc   :  { %v811_v36 = vadd.f32 %v12084_v32, %v782_v35 }
 0x3bd   :  { %v820_v37 = vmin.f32 %v812_v34, 0.0  ;;  %vm816_vm3 = vcmp.gt.f32.partialorder %v812_v34, 0.0 }
 0x3be   :  { %v819_v38 = vmin.f32 %v811_v36, 0.0  ;;  %v9470_v39 = vpop.f32.mrb[2].mxu1  ;;  %vm815_vm4 = vcmp.gt.f32.partialorder %v811_v36, 0.0 }
 0x3bf   :  { %v825_v40 = vmul.f32 1.442695, %v820_v37  ;;  %v814_v41 = vadd.f32 %v9470_v39, %v12084_v32  ;;  %v792_v42 = vpop.f32.mrb[3].mxu1  ;;  %v2152_v39 = vld [vmem:[#allocation12 + $0x4] sm:$0x7] }
 0x3c0   :  { %v823_v43 = vmul.f32 1.442695, %v819_v38  ;;  %v813_v44 = vadd.f32 %v12084_v32, %v792_v42 }
 0x3c1   :  { %11252 = vpow2.f32 %v825_v40  ;;  %v822_v45 = vmin.f32 %v814_v41, 0.0  ;;  %vm818_vm5 = vcmp.gt.f32.partialorder %v814_v41, 0.0  ;;  %v2066_v40 = vld [vmem:[#allocation12] sm:$0x7] }
 0x3c2   :  { %11254 = vpow2.f32 %v823_v43  ;;  %v821_v46 = vmin.f32 %v813_v44, 0.0  ;;  %vm817_vm6 = vcmp.gt.f32.partialorder %v813_v44, 0.0 }
 0x3c3   :  { %v829_v47 = vmul.f32 1.442695, %v822_v45 }
 0x3c4   :  { %v827_v48 = vmul.f32 1.442695, %v821_v46 }
 0x3c5   :  { %11256 = vpow2.f32 %v829_v47 }
 0x3c6   :  { %11258 = vpow2.f32 %v827_v48 }
 0x3cb   :  { %v11253_v49 = vpop.eup %11252 }
 0x3cc   :  { %v11255_v50 = vpop.eup %11254  ;;  %v8593_v51 = vadd.f32 -1.0, %v11253_v49 }
 0x3cd   :  { %v8592_v52 = vadd.f32 -1.0, %v11255_v50 }
 0x3ce   :  { %v836_v53 = vsel %vm816_vm3, %v812_v34, %v8593_v51  ;;  %v12156_v34 = vld [vmem:[%s13251_s29 + $0x38] sm:$0xff]  ;;  %vm3791_vm3 = vcmask 523264  }
 0x3cf   :  { %v11257_v54 = vpop.eup %11256  ;;  %v835_v55 = vsel %vm815_vm4, %v811_v36, %v8592_v52  ;;  %v10625_v38 = vpack.c.bf16 %v12156_v34, %v12151_v33  ;;  %vm4112_vm4 = vcmask 253952  }
 0x3d0   :  { %v11259_v56 = vpop.eup %11258  ;;  %v8595_v57 = vadd.f32 -1.0, %v11257_v54  ;;  %v10542_v58 = vpack.c.bf16 %v836_v53, %v835_v55 }
 0x3d1   :  { %v8594_v59 = vadd.f32 -1.0, %v11259_v56 }
 0x3d2   :  { %10543 = vmatprep.subr.bf16.mxu0 %v10542_v58  ;;  %v838_v60 = vsel %vm818_vm5, %v814_v41, %v8595_v57  ;;  %vm4690_vm5 = vcmask 64512  }
 0x3d3   :  { %10545 = vmatpush3.bf16.msra.mxu0 %v10542_v58  ;;  %v837_v61 = vsel %vm817_vm6, %v813_v44, %v8594_v59 }
 0x3d4   :  { %v10546_v62 = vpack.c.bf16 %v838_v60, %v837_v61  ;;  %v2442_v60 = vld [vmem:[#allocation12 + $0x8] sm:$0x7] }
 0x3d6   :  { %10547 = vmatprep.subr.bf16.mxu0 %v10546_v62 }
 0x3d7   :  { %10549 = vmatpush3.bf16.msra.mxu0 %v10546_v62 }
 0x3da   :  { %9480 = vmatmul.mubr.msk.f32.vlgmr.msra.gmra.mrb[8].mxu0 %vm296_vm0, %v12090_v63 }
 0x3db   :  { %9486 = vmatprep.mubr.msk.f32.mxu0 %vm923_vm7, %v12097_v0 }
 0x4ad   :  { %v9481_v3 = vpop.f32.mrb[8].mxu0 }
 0x4ae   :  { %v911_v4 = vpop.f32.mrb[9].mxu0 }
 0x4af   :  { %v10550_v6 = vpack.c.bf16 %v9481_v3, %v911_v4 }
 0x4b1   :  { %10551 = vmatprep.subr.bf16.mxu0 %v10550_v6 }
 0x4b2   :  { %10553 = vmatpush3.bf16.msra.mxu0 %v10550_v6 }
 0x4b3   :  { %10555 = vmatprep.subr.bf16.mxu0 %v12101_v10 }
 0x4b5   :  { %9487 = vmatmul.mubr.msk.f32.vlgmr.msra.gmra.mrb[10].mxu0 %vm923_vm7, %v12106_v12 }
 0x4b6   :  { %10557 = vmatpush3.bf16.msra.mxu0 %v12101_v10 }
 0x4b7   :  { %10559 = vmatprep.subr.bf16.mxu0 %v12112_v15 }
 0x588   :  { %v9488_v17 = vpop.f32.mrb[10].mxu0 }
 0x589   :  { %v996_v18 = vpop.f32.mrb[11].mxu0 }
 0x58a   :  { %v10562_v22 = vpack.c.bf16 %v9488_v17, %v996_v18  ;;  %9493 = vmatprep.mubr.msk.f32.mxu0 %vm923_vm7, %v996_v18 }
 0x58b   :  { %9494 = vmatmul.mubr.msk.f32.vlgmr.msra.gmra.mrb[12].mxu0 %vm923_vm7, %v9488_v17 }
 0x58c   :  { %9500 = vmatprep.mubr.msk.f32.mxu0 %vm923_vm7, %v911_v4  ;;  %10563 = vmatprep.subr.bf16.mxu1 %v10562_v22 }
 0x58d   :  { %10565 = vmatpush3.bf16.msra.mxu1 %v10562_v22  ;;  %10561 = vmatpush3.bf16.msra.mxu0 %v12112_v15 }
 0x58e   :  { %10567 = vmatprep.subr.bf16.mxu0 %v12132_v26 }
 0x590   :  { %9508 = vmatmul.mubr.msk.f32.vlgmr.msra.gmra.mrb[4].mxu1 %vm923_vm7, %v12125_v23 }
 0x593   :  { %9501 = vmatmul.mubr.msk.f32.vlgmr.msra.gmra.mrb[12].mxu0 %vm923_vm7, %v9481_v3 }
 0x594   :  { %10569 = vmatpush3.bf16.msra.mxu0 %v12132_v26 }
 0x595   :  { %10622 = vmatprep.subr.bf16.mxu0 %v10621_v29 }
 0x663   :  { %v9509_v30 = vpop.f32.mrb[4].mxu1 }
 0x664   :  { %v1252_v35 = vsub.f32 %v9509_v30, %v9481_v3  ;;  %v1242_v36 = vpop.f32.mrb[5].mxu1 }
 0x665   :  { %v1251_v37 = vsub.f32 %v1242_v36, %v911_v4 }
 0x667   :  { %9514 = vmatprep.mubr.msk.f32.mxu0 %vm923_vm7, %v1251_v37 }
 0x668   :  { %9515 = vmatmul.mubr.msk.f32.vlgmr.msra.gmra.mrb[12].mxu0 %vm923_vm7, %v1252_v35 }
 0x669   :  { %10624 = vmatpush3.bf16.msra.mxu0 %v10621_v29  ;;  %9620 = vmatprep.mubr.msk.f32.mxu0 %vm296_vm0, %v12004_v5  ;;  %v13213_v5 = vmov 0.0|0.0  }
 0x66a   :  { %10626 = vmatprep.subr.bf16.mxu0 %v10625_v38  ;;  %10570 = vmatprep.subr.bf16.mxu1 %v13213_v5 }
 0x66d   :  { %10628 = vmatpush3.bf16.msra.mxu0 %v10625_v38 }
 0x66e   :  { %9626 = vmatprep.subr.msk.mxu0 %vm409_vm1, %v2152_v39 }
 0x670   :  { %9621 = vmatmul.mubr.msk.f32.vlgmr.msra.gmra.mrb[14].mxu0 %vm296_vm0, %v12013_v7  ;;  %v12177_v7 = vld [vmem:[%s13255_s23] ss:$0 sm:$0xff]  ;;  %s13269_s23 = sld [smem:[#allocation54_spill]] }
 0x671   :  { %9623 = vmatprep.mubr.msk.f32.mxu0 %vm296_vm0, %v12018_v8  ;;  %9627 = vmatpush3.msk.msra.mxu0 %vm409_vm1, %v2152_v39 }
 0x672   :  { %9634 = vmatprep.subr.msk.mxu0 %vm409_vm1, %v2066_v40 }
 0x674   :  { %9624 = vmatmul.mubr.msk.f32.gmra.mrb[16].mxu0 %vm296_vm0, %v12027_v9 }
 0x73b   :  { %v9516_v8 = vpop.f32.mrb[12].mxu0 }
 0x73c   :  { %v1346_v41 = vadd.f32 %v9516_v8, %v12177_v7  ;;  %v1328_v9 = vpop.f32.mrb[13].mxu0 }
 0x73d   :  { %v1345_v42 = vadd.f32 %v12177_v7, %v1328_v9 }
 0x73e   :  { %v1350_v43 = vmin.f32 %v1346_v41, 0.0  ;;  %vm1348_vm8 = vcmp.gt.f32.partialorder %v1346_v41, 0.0 }
 0x73f   :  { %v1349_v44 = vmin.f32 %v1345_v42, 0.0  ;;  %vm1347_vm9 = vcmp.gt.f32.partialorder %v1345_v42, 0.0 }
 0x740   :  { %v1353_v45 = vmul.f32 1.442695, %v1350_v43 }
 0x741   :  { %v1351_v46 = vmul.f32 1.442695, %v1349_v44 }
 0x742   :  { %11260 = vpow2.f32 %v1353_v45 }
 0x743   :  { %11262 = vpow2.f32 %v1351_v46  ;;  %v9622_v47 = vpop.f32.mrb[14].mxu0 }
 0x744   :  { %v2133_v48 = vpop.f32.mrb[15].mxu0 }
 0x745   :  { %v10629_v49 = vpack.c.bf16 %v9622_v47, %v2133_v48  ;;  %9628 = vmatprep.mubr.msk.f32.mxu0 %vm396_vm2, %v2133_v48 }
 0x746   :  { %9629 = vmatmul.mubr.msk.f32.vlgmr.msra.gmra.mrb[18].mxu0 %vm396_vm2, %v9622_v47 }
 0x747   :  { %v9625_v50 = vpop.f32.mrb[16].mxu0  ;;  %9635 = vmatpush3.msk.msra.mxu0 %vm409_vm1, %v2066_v40 }
 0x748   :  { %v2143_v51 = vpop.f32.mrb[17].mxu0  ;;  %10630 = vmatprep.subr.bf16.mxu0 %v10629_v49 }
 0x749   :  { %v10633_v52 = vpack.c.bf16 %v9625_v50, %v2143_v51  ;;  %9631 = vmatprep.mubr.msk.f32.mxu0 %vm396_vm2, %v2143_v51 }
 0x74a   :  { %9632 = vmatmul.mubr.msk.f32.gmra.mrb[20].mxu0 %vm396_vm2, %v9625_v50 }
 0x74b   :  { %9636 = vmatprep.mubr.msk.f32.mxu0 %vm396_vm2, %v12139_v27 }
 0x74c   :  { %v11261_v53 = vpop.eup %11260 }
 0x74d   :  { %v11263_v54 = vpop.eup %11262  ;;  %v8610_v55 = vadd.f32 -1.0, %v11261_v53 }
 0x74e   :  { %v8609_v56 = vadd.f32 -1.0, %v11263_v54  ;;  %9637 = vmatmul.mubr.msk.f32.vlgmr.msra.gmra.mrb[18].mxu0 %vm396_vm2, %v12144_v28 }
 0x74f   :  { %v1358_v57 = vsel %vm1348_vm8, %v1346_v41, %v8610_v55  ;;  %10632 = vmatpush3.bf16.msra.mxu0 %v10629_v49  ;;  %9639 = vmatprep.mubr.msk.f32.mxu0 %vm396_vm2, %v12151_v33  ;;  %v1434_v55 = vld [vmem:[#allocation15 + $0x10] sm:$0xff] }
 0x750   :  { %v1357_v58 = vsel %vm1347_vm9, %v1345_v42, %v8609_v56  ;;  %10634 = vmatprep.subr.bf16.mxu0 %v10633_v52 }
 0x751   :  { %v10571_v59 = vpack.c.bf16 %v1358_v57, %v1357_v58  ;;  %v1435_v58 = vld [vmem:[#allocation15 + $0x18] sm:$0xff] }
 0x752   :  { %9640 = vmatmul.mubr.msk.f32.gmra.mrb[20].mxu0 %vm396_vm2, %v12156_v34 }
 0x753   :  { %10636 = vmatpush3.bf16.msra.mxu0 %v10633_v52  ;;  %10572 = vmatpush3.bf16.msra.mxu1 %v10571_v59  ;;  %v13211_v52 = vmov 0.0  }
 0x754   :  { %9650 = vmatprep.mubr.msk.f32.mxu0 %vm296_vm0, %v12035_v11  ;;  %10573 = vmatprep.subr.bf16.mxu1 %v13213_v5 }
 0x755   :  { %9656 = vmatprep.subr.msk.mxu0 %vm409_vm1, %v2442_v60  ;;  %9521 = vmatprep.mubr.msk.f32.mxu1 %vm11648_vm14, %v13211_v52 }
 0x756   :  { %9651 = vmatmul.mubr.msk.f32.vlgmr.msra.gmra.mrb[22].mxu0 %vm296_vm0, %v12047_v19 }
 0x757   :  { %9653 = vmatprep.mubr.msk.f32.mxu0 %vm296_vm0, %v12052_v20  ;;  %9657 = vmatpush3.msk.msra.mxu0 %vm409_vm1, %v2442_v60  ;;  %v12261_v60 = vpack.c.bf16 %v1435_v58, %v1434_v55  ;;  %v1987_v55 = vld [vmem:[#allocation15 + $0xf0] sm:$0xff]  ;;  %v1988_v58 = vld [vmem:[#allocation15 + $0xf8] sm:$0xff] }
 0x75a   :  { %9654 = vmatmul.mubr.msk.f32.gmra.mrb[24].mxu0 %vm296_vm0, %v12059_v21 }
 0x829   :  { %v9652_v61 = vpop.f32.mrb[22].mxu0 }
 0x82a   :  { %v2419_v62 = vpop.f32.mrb[23].mxu0  ;;  %v2439_v2 = vsub.f32 %v9652_v61, %v12144_v28  ;;  %v1511_v61 = vld [vmem:[#allocation15 + $0x20] sm:$0xff] }
 0x82b   :  { %v2438_v1 = vsub.f32 %v2419_v62, %v12139_v27  ;;  %v1512_v62 = vld [vmem:[#allocation15 + $0x28] sm:$0xff] }
 0x82d   :  { %v9655_v3 = vpop.f32.mrb[24].mxu0  ;;  %9658 = vmatprep.mubr.msk.f32.mxu0 %vm396_vm2, %v2438_v1  ;;  %v1513_v1 = vld [vmem:[#allocation15 + $0x30] sm:$0xff] }
 0x82e   :  { %v2429_v4 = vpop.f32.mrb[25].mxu0  ;;  %9659 = vmatmul.mubr.msk.f32.vlgmr.msra.gmra.mrb[18].mxu0 %vm396_vm2, %v2439_v2  ;;  %v2441_v13 = vsub.f32 %v9655_v3, %v12156_v34  ;;  %v1514_v2 = vld [vmem:[#allocation15 + $0x38] sm:$0xff] }
 0x82f   :  { %v2440_v6 = vsub.f32 %v2429_v4, %v12151_v33  ;;  %v12271_v3 = vpack.c.bf16 %v1514_v2, %v1513_v1  ;;  %v1590_v4 = vld [vmem:[#allocation15 + $0x40] sm:$0xff] }
 0x831   :  { %9661 = vmatprep.mubr.msk.f32.mxu0 %vm396_vm2, %v2440_v6  ;;  %v1591_v6 = vld [vmem:[#allocation15 + $0x48] sm:$0xff] }
 0x832   :  { %9662 = vmatmul.mubr.msk.f32.gmra.mrb[20].mxu0 %vm396_vm2, %v2441_v13 }
 0x833   :  { %9672 = vmatprep.mubr.msk.f32.mxu0 %vm296_vm0, %v12077_v31 }
 0x901   :  { %v9660_v14 = vpop.f32.mrb[18].mxu0 }
 0x902   :  { %v2554_v17 = vadd.f32 %v9660_v14, %v12084_v32  ;;  %v2524_v18 = vpop.f32.mrb[19].mxu0  ;;  %v12278_v14 = vpack.c.bf16 %v1591_v6, %v1590_v4 }
 0x903   :  { %v2553_v22 = vadd.f32 %v12084_v32, %v2524_v18  ;;  %v1593_v18 = vld [vmem:[#allocation15 + $0x58] sm:$0xff] }
 0x904   :  { %v2562_v24 = vmin.f32 %v2554_v17, 0.0  ;;  %vm2558_vm10 = vcmp.gt.f32.partialorder %v2554_v17, 0.0 }
 0x905   :  { %v2561_v25 = vmin.f32 %v2553_v22, 0.0  ;;  %v9663_v27 = vpop.f32.mrb[20].mxu0  ;;  %vm2557_vm11 = vcmp.gt.f32.partialorder %v2553_v22, 0.0 }
 0x906   :  { %v2567_v28 = vmul.f32 1.442695, %v2562_v24  ;;  %v2556_v29 = vadd.f32 %v9663_v27, %v12084_v32  ;;  %v2534_v30 = vpop.f32.mrb[21].mxu0  ;;  %v1669_v24 = vld [vmem:[#allocation15 + $0x60] sm:$0xff] }
 0x907   :  { %v2565_v33 = vmul.f32 1.442695, %v2561_v25  ;;  %v2555_v34 = vadd.f32 %v12084_v32, %v2534_v30  ;;  %v1670_v25 = vld [vmem:[#allocation15 + $0x68] sm:$0xff]  ;;  %v1672_v30 = vld [vmem:[#allocation15 + $0x78] sm:$0xff] }
 0x908   :  { %11264 = vpow2.f32 %v2567_v28  ;;  %v2564_v35 = vmin.f32 %v2556_v29, 0.0  ;;  %vm2560_vm12 = vcmp.gt.f32.partialorder %v2556_v29, 0.0  ;;  %v12290_v28 = vpack.c.bf16 %v1670_v25, %v1669_v24 }
 0x909   :  { %11266 = vpow2.f32 %v2565_v33  ;;  %v2563_v31 = vmin.f32 %v2555_v34, 0.0  ;;  %vm2559_vm13 = vcmp.gt.f32.partialorder %v2555_v34, 0.0 }
 0x90a   :  { %v2571_v36 = vmul.f32 1.442695, %v2564_v35  ;;  %v1749_v35 = vld [vmem:[#allocation15 + $0x88] sm:$0xff] }
 0x90b   :  { %v2569_v37 = vmul.f32 1.442695, %v2563_v31 }
 0x90c   :  { %11268 = vpow2.f32 %v2571_v36 }
 0x90d   :  { %11270 = vpow2.f32 %v2569_v37  ;;  %v1750_v37 = vld [vmem:[#allocation15 + $0x90] sm:$0xff] }
 0x912   :  { %v11265_v38 = vpop.eup %11264 }
 0x913   :  { %v11267_v39 = vpop.eup %11266  ;;  %v8645_v40 = vadd.f32 -1.0, %v11265_v38  ;;  %v1751_v38 = vld [vmem:[#allocation15 + $0x98] sm:$0xff] }
 0x914   :  { %v8644_v8 = vadd.f32 -1.0, %v11267_v39  ;;  %v12307_v39 = vpack.c.bf16 %v1751_v38, %v1750_v37 }
 0x915   :  { %v2578_v41 = vsel %vm2558_vm10, %v2554_v17, %v8645_v40  ;;  %v1592_v17 = vld [vmem:[#allocation15 + $0x50] sm:$0xff]  ;;  %v1827_v40 = vld [vmem:[#allocation15 + $0xa0] sm:$0xff] }
 0x916   :  { %v11269_v9 = vpop.eup %11268  ;;  %v2577_v42 = vsel %vm2557_vm11, %v2553_v22, %v8644_v8  ;;  %v12283_v22 = vpack.c.bf16 %v1593_v18, %v1592_v17  ;;  %v1828_v8 = vld [vmem:[#allocation15 + $0xa8] sm:$0xff] }
 0x917   :  { %v11271_v43 = vpop.eup %11270  ;;  %v8647_v44 = vadd.f32 -1.0, %v11269_v9  ;;  %v10637_v32 = vpack.c.bf16 %v2578_v41, %v2577_v42  ;;  %v12314_v9 = vpack.c.bf16 %v1828_v8, %v1827_v40  ;;  %v1829_v42 = vld [vmem:[#allocation15 + $0xb0] sm:$0xff] }
 0x918   :  { %v8646_v45 = vadd.f32 -1.0, %v11271_v43  ;;  %v1830_v43 = vld [vmem:[#allocation15 + $0xb8] sm:$0xff] }
 0x919   :  { %10638 = vmatprep.subr.bf16.mxu0 %v10637_v32  ;;  %v2580_v46 = vsel %vm2560_vm12, %v2556_v29, %v8647_v44  ;;  %v1671_v29 = vld [vmem:[#allocation15 + $0x70] sm:$0xff]  ;;  %v12319_v44 = vpack.c.bf16 %v1830_v43, %v1829_v42 }
 0x91a   :  { %10640 = vmatpush3.bf16.msra.mxu0 %v10637_v32  ;;  %v2579_v47 = vsel %vm2559_vm13, %v2555_v34, %v8646_v45  ;;  %v12295_v33 = vpack.c.bf16 %v1672_v30, %v1671_v29  ;;  %v1748_v34 = vld [vmem:[#allocation15 + $0x80] sm:$0xff]  ;;  %v1907_v45 = vld [vmem:[#allocation15 + $0xc8] sm:$0xff] }
 0x91b   :  { %v10641_v48 = vpack.c.bf16 %v2580_v46, %v2579_v47  ;;  %v12302_v36 = vpack.c.bf16 %v1749_v35, %v1748_v34  ;;  %v1906_v32 = vld [vmem:[#allocation15 + $0xc0] sm:$0xff] }
 0x91c   :  { %v12326_v47 = vpack.c.bf16 %v1907_v45, %v1906_v32  ;;  %v3778_v45 = vld [vmem:[#allocation21 + $0x10] sm:$0xff] }
 0x91d   :  { %10642 = vmatprep.subr.bf16.mxu0 %v10641_v48 }
 0x91e   :  { %10644 = vmatpush3.bf16.msra.mxu0 %v10641_v48  ;;  %v1908_v48 = vld [vmem:[#allocation15 + $0xd0] sm:$0xff] }
 0x921   :  { %9673 = vmatmul.mubr.msk.f32.vlgmr.msra.gmra.mrb[26].mxu0 %vm296_vm0, %v12090_v63  ;;  %v12234_v63 = vld [vmem:[#allocation7] sm:$0xff] }
 0x922   :  { %9679 = vmatprep.mubr.msk.f32.mxu0 %vm923_vm7, %v12097_v0  ;;  %9522 = vmatmul.mubr.msk.f32.vlgmr.msra.gmra.mrb[6].mxu1 %vm923_vm7, %v12234_v63 }
 0x923   :  { %9532 = vmatprep.mubr.msk.f32.mxu1 %vm11648_vm14, %v13211_v52 }
 0x9f4   :  { %v12223_v49 = vpop.f32.mrb[26].mxu0 }
 0x9f5   :  { %v12225_v50 = vpop.f32.mrb[27].mxu0  ;;  %v12256_v56 = vpop.f32.mrb[6].mxu1 }
 0x9f6   :  { %v10645_v51 = vpack.c.bf16 %v12223_v49, %v12225_v50  ;;  %v9523_v59 = vpop.f32.mrb[7].mxu1  ;;  %v1515_v13 = vrot.slane %v12256_v56, 1  ;;  %v1594_v27 = vrot.slane %v12256_v56, 2  ;;  %v1673_v31 = vrot.slane %v12256_v56, 3 }
 0x9f7   :  { %v1752_v41 = vrot.slane %v12256_v56, 4  ;;  %v1831_v46 = vrot.slane %v12256_v56, 5  ;;  %v12343_v59 = vpack.c.bf16 %v1988_v58, %v1987_v55  ;;  %v4287_v55 = vld [vmem:[#allocation16 + $0xf8] sm:$0xff]  ;;  %v3782_v58 = vld [vmem:[#allocation21 + $0x30] sm:$0xff] }
 0x9f8   :  { %10646 = vmatprep.subr.bf16.mxu0 %v10645_v51 }
 0x9f9   :  { %10648 = vmatpush3.bf16.msra.mxu0 %v10645_v51  ;;  %v1909_v51 = vld [vmem:[#allocation15 + $0xd8] sm:$0xff] }
 0x9fa   :  { %10650 = vmatprep.subr.bf16.mxu0 %v12101_v10 }
 0x9fc   :  { %9680 = vmatmul.mubr.msk.f32.vlgmr.msra.gmra.mrb[28].mxu0 %vm923_vm7, %v12106_v12 }
 0x9fd   :  { %10652 = vmatpush3.bf16.msra.mxu0 %v12101_v10  ;;  %v1432_v10 = vld [vmem:[#allocation15] sm:$0xff] }
 0x9fe   :  { %10654 = vmatprep.subr.bf16.mxu0 %v12112_v15 }
 0xacf   :  { %v9681_v53 = vpop.f32.mrb[28].mxu0 }
 0xad0   :  { %v2725_v54 = vpop.f32.mrb[29].mxu0 }
 0xad1   :  { %v10657_v12 = vpack.c.bf16 %v9681_v53, %v2725_v54  ;;  %9686 = vmatprep.mubr.msk.f32.mxu0 %vm923_vm7, %v2725_v54  ;;  %v1985_v54 = vld [vmem:[#allocation15 + $0xe0] sm:$0xff] }
 0xad2   :  { %9687 = vmatmul.mubr.msk.f32.vlgmr.msra.gmra.mrb[30].mxu0 %vm923_vm7, %v9681_v53  ;;  %v12331_v53 = vpack.c.bf16 %v1909_v51, %v1908_v48  ;;  %v4284_v48 = vld [vmem:[#allocation16 + $0xe0] sm:$0xff]  ;;  %v4285_v51 = vld [vmem:[#allocation16 + $0xe8] sm:$0xff] }
 0xad3   :  { %10656 = vmatpush3.bf16.msra.mxu0 %v12112_v15  ;;  %9693 = vmatprep.mubr.msk.f32.mxu0 %vm923_vm7, %v12225_v50  ;;  %v1433_v15 = vld [vmem:[#allocation15 + $0x8] sm:$0xff] }
 0xad4   :  { %10658 = vmatprep.subr.bf16.mxu0 %v10657_v12  ;;  %v12258_v57 = vpack.c.bf16 %v1433_v15, %v1432_v10  ;;  %v1910_v10 = vrot.slane %v12256_v56, 6 }
 0xad6   :  { %10575 = vmatpush3.bf16.msra.mxu1 %v12258_v57 }
 0xad7   :  { %10576 = vmatprep.subr.bf16.mxu1 %v13213_v5 }
 0xada   :  { %9694 = vmatmul.mubr.msk.f32.vlgmr.msra.gmra.mrb[30].mxu0 %vm923_vm7, %v12223_v49  ;;  %10578 = vmatpush3.bf16.msra.mxu1 %v12261_v60 }
 0xadb   :  { %10660 = vmatpush3.bf16.msra.mxu0 %v10657_v12  ;;  %9700 = vmatprep.mubr.msk.f32.mxu0 %vm923_vm7, %v12116_v16  ;;  %v1986_v12 = vld [vmem:[#allocation15 + $0xe8] sm:$0xff] }
 0xadc   :  { %10662 = vmatprep.subr.bf16.mxu0 %v12132_v26  ;;  %10579 = vmatprep.subr.bf16.mxu1 %v13213_v5  ;;  %v12338_v15 = vpack.c.bf16 %v1986_v12, %v1985_v54  ;;  %v3780_v54 = vld [vmem:[#allocation21 + $0x20] sm:$0xff]  ;;  %v3781_v12 = vld [vmem:[#allocation21 + $0x28] sm:$0xff] }
 0xadd   :  { %9533 = vmatmul.mubr.msk.f32.vlgmr.msra.gmra.mrb[8].mxu1 %vm296_vm0, %v12256_v56 }
 0xade   :  { %9701 = vmatmul.mubr.msk.f32.vlgmr.msra.gmra.mrb[32].mxu0 %vm923_vm7, %v12125_v23  ;;  %9543 = vmatprep.mubr.msk.f32.mxu1 %vm11648_vm14, %v13211_v52 }
 0xadf   :  { %10664 = vmatpush3.bf16.msra.mxu0 %v12132_v26  ;;  %v12265_v26 = vpack.c.bf16 %v1512_v62, %v1511_v61  ;;  %v1989_v61 = vrot.slane %v12256_v56, 7  ;;  %v12363_v56 = vld [vmem:[%s13256_s28] sm:$0x1] }
 0xae0   :  { %10716 = vmatprep.subr.bf16.mxu0 %v13213_v5 }
 0xae1   :  { %10581 = vmatpush3.bf16.msra.mxu1 %v12265_v26 }
 0xae2   :  { %10582 = vmatprep.subr.bf16.mxu1 %v13213_v5 }
 0xae5   :  { %10584 = vmatpush3.bf16.msra.mxu1 %v12271_v3 }
 0xae6   :  { %10585 = vmatprep.subr.bf16.mxu1 %v13213_v5 }
 0xae8   :  { %9544 = vmatmul.mubr.msk.f32.vlgmr.msra.gmra.mrb[8].mxu1 %vm296_vm0, %v1515_v13 }
 0xae9   :  { %10587 = vmatpush3.bf16.msra.mxu1 %v12278_v14  ;;  %9554 = vmatprep.mubr.msk.f32.mxu1 %vm11648_vm14, %v13211_v52 }
 0xaea   :  { %10588 = vmatprep.subr.bf16.mxu1 %v13213_v5 }
 0xaed   :  { %10590 = vmatpush3.bf16.msra.mxu1 %v12283_v22 }
 0xaee   :  { %10591 = vmatprep.subr.bf16.mxu1 %v13213_v5 }
 0xaf0   :  { %9555 = vmatmul.mubr.msk.f32.vlgmr.msra.gmra.mrb[8].mxu1 %vm296_vm0, %v1594_v27 }
 0xaf1   :  { %10593 = vmatpush3.bf16.msra.mxu1 %v12290_v28  ;;  %9565 = vmatprep.mubr.msk.f32.mxu1 %vm11648_vm14, %v13211_v52 }
 0xaf2   :  { %10594 = vmatprep.subr.bf16.mxu1 %v13213_v5 }
 0xaf5   :  { %10596 = vmatpush3.bf16.msra.mxu1 %v12295_v33 }
 0xaf6   :  { %10597 = vmatprep.subr.bf16.mxu1 %v13213_v5 }
 0xaf8   :  { %9566 = vmatmul.mubr.msk.f32.vlgmr.msra.gmra.mrb[8].mxu1 %vm296_vm0, %v1673_v31 }
 0xaf9   :  { %10599 = vmatpush3.bf16.msra.mxu1 %v12302_v36  ;;  %9576 = vmatprep.mubr.msk.f32.mxu1 %vm11648_vm14, %v13211_v52 }
 0xafa   :  { %10600 = vmatprep.subr.bf16.mxu1 %v13213_v5 }
 0xafd   :  { %10602 = vmatpush3.bf16.msra.mxu1 %v12307_v39 }
 0xafe   :  { %10603 = vmatprep.subr.bf16.mxu1 %v13213_v5 }
 0xb00   :  { %9577 = vmatmul.mubr.msk.f32.vlgmr.msra.gmra.mrb[8].mxu1 %vm296_vm0, %v1752_v41  ;;  %v3777_v41 = vld [vmem:[#allocation21 + $0x8] sm:$0xff] }
 0xb01   :  { %10605 = vmatpush3.bf16.msra.mxu1 %v12314_v9  ;;  %9587 = vmatprep.mubr.msk.f32.mxu1 %vm11648_vm14, %v13211_v52 }
 0xb02   :  { %10606 = vmatprep.subr.bf16.mxu1 %v13213_v5 }
 0xb05   :  { %10608 = vmatpush3.bf16.msra.mxu1 %v12319_v44 }
 0xb06   :  { %10609 = vmatprep.subr.bf16.mxu1 %v13213_v5 }
 0xb08   :  { %9588 = vmatmul.mubr.msk.f32.vlgmr.msra.gmra.mrb[8].mxu1 %vm296_vm0, %v1831_v46  ;;  %v3779_v46 = vld [vmem:[#allocation21 + $0x18] sm:$0xff] }
 0xb09   :  { %10611 = vmatpush3.bf16.msra.mxu1 %v12326_v47  ;;  %9598 = vmatprep.mubr.msk.f32.mxu1 %vm11648_vm14, %v13211_v52 }
 0xb0a   :  { %10612 = vmatprep.subr.bf16.mxu1 %v13213_v5 }
 0xb0d   :  { %10614 = vmatpush3.bf16.msra.mxu1 %v12331_v53 }
 0xb0e   :  { %10615 = vmatprep.subr.bf16.mxu1 %v13213_v5 }
 0xb10   :  { %9599 = vmatmul.mubr.msk.f32.vlgmr.msra.gmra.mrb[8].mxu1 %vm296_vm0, %v1910_v10  ;;  %v10723_v10 = vpack.c.bf16 %v3781_v12, %v3780_v54 }
 0xb11   :  { %10617 = vmatpush3.bf16.msra.mxu1 %v12338_v15  ;;  %9609 = vmatprep.mubr.msk.f32.mxu1 %vm11648_vm14, %v13211_v52 }
 0xb12   :  { %10618 = vmatprep.subr.bf16.mxu1 %v13213_v5 }
 0xb15   :  { %10620 = vmatpush3.bf16.msra.mxu1 %v12343_v59 }
 0xb16   :  { %10665 = vmatprep.subr.bf16.mxu1 %v13213_v5 }
 0xb18   :  { %9610 = vmatmul.mubr.msk.f32.vlgmr.msra.gmra.mrb[8].mxu1 %vm296_vm0, %v1989_v61  ;;  %v3783_v61 = vld [vmem:[#allocation21 + $0x38] sm:$0xff] }
 0xb19   :  { %9714 = vmatprep.mubr.msk.f32.mxu1 %vm11648_vm14, %v13211_v52 }
 0xbb1   :  { %v9702_v62 = vpop.f32.mrb[32].mxu0 }
 0xbb2   :  { %v2974_v1 = vsub.f32 %v9702_v62, %v12223_v49  ;;  %v2964_v2 = vpop.f32.mrb[33].mxu0  ;;  %v10726_v62 = vpack.c.bf16 %v3783_v61, %v3782_v58  ;;  %v3951_v58 = vld [vmem:[#allocation24] sm:$0xff] }
 0xbb3   :  { %v2973_v4 = vsub.f32 %v2964_v2, %v12225_v50 }
 0xbb5   :  { %9707 = vmatprep.mubr.msk.f32.mxu0 %vm923_vm7, %v2973_v4 }
 0xbb6   :  { %9708 = vmatmul.mubr.msk.f32.vlgmr.msra.gmra.mrb[30].mxu0 %vm923_vm7, %v2974_v1 }
 0xbb7   :  { %9821 = vmatprep.mubr.msk.f32.mxu0 %vm11648_vm14, %v13211_v52 }
 0xbeb   :  { %v2058_v6 = vpop.f32.mrb[8].mxu1 }
 0xbec   :  { %v11137_v13 = vadd.f32 %v2058_v6, %v12363_v56  ;;  %v9611_v49 = vpop.f32.mrb[9].mxu1  ;;  %v4444_v6 = vld [vmem:[#allocation16 + $0x140] sm:$0xff] }
 0xbed   :  { %v3866_v49 = vld [vmem:[#allocation22] sm:$0xff] }
 0xbee   :  { %2064 = vst.msk [vmem:[#allocation2] sm:$0x1] %vm2063_vm15, %v11137_v13  ;;  %v4445_v13 = vld [vmem:[#allocation16 + $0x148] sm:$0xff] }
 0xc89   :  { %v9709_v50 = vpop.f32.mrb[30].mxu0 }
 0xc8a   :  { %v3067_v17 = vadd.f32 %v9709_v50, %v12177_v7  ;;  %v3049_v18 = vpop.f32.mrb[31].mxu0  ;;  %v3867_v50 = vld [vmem:[#allocation22 + $0x8] sm:$0xff] }
 0xc8b   :  { %v3066_v24 = vadd.f32 %v12177_v7, %v3049_v18  ;;  %v3776_v7 = vld [vmem:[#allocation21] sm:$0xff] }
 0xc8c   :  { %v3071_v25 = vmin.f32 %v3067_v17, 0.0  ;;  %vm3069_vm1 = vcmp.gt.f32.partialorder %v3067_v17, 0.0  ;;  %v10717_v42 = vpack.c.bf16 %v3777_v41, %v3776_v7  ;;  %v4446_v18 = vld [vmem:[#allocation16 + $0x150] sm:$0xff]  ;;  %v4611_v41 = vld [vmem:[#allocation16 + $0x1d8] sm:$0xff] }
 0xc8d   :  { %v3070_v27 = vmin.f32 %v3066_v24, 0.0  ;;  %vm3068_vm2 = vcmp.gt.f32.partialorder %v3066_v24, 0.0  ;;  %v4610_v7 = vld [vmem:[#allocation16 + $0x1d0] sm:$0xff] }
 0xc8e   :  { %v3074_v29 = vmul.f32 1.442695, %v3071_v25  ;;  %10718 = vmatpush3.bf16.msra.mxu0 %v10717_v42  ;;  %v10729_v25 = vpack.c.bf16 %v3867_v50, %v3866_v49  ;;  %v10825_v42 = vpack.c.bf16 %v4611_v41, %v4610_v7  ;;  %v4119_v41 = vld [vmem:[#allocation16 + $0x60] sm:$0xff] }
 0xc8f   :  { %v3072_v30 = vmul.f32 1.442695, %v3070_v27  ;;  %10719 = vmatprep.subr.bf16.mxu0 %v13213_v5 }
 0xc90   :  { %11272 = vpow2.f32 %v3074_v29  ;;  %v4448_v29 = vld [vmem:[#allocation16 + $0x160] sm:$0xff] }
 0xc91   :  { %11274 = vpow2.f32 %v3072_v30  ;;  %v4449_v30 = vld [vmem:[#allocation16 + $0x168] sm:$0xff] }
 0xc9a   :  { %v11273_v34 = vpop.eup %11272 }
 0xc9b   :  { %v11275_v35 = vpop.eup %11274  ;;  %v8662_v31 = vadd.f32 -1.0, %v11273_v34  ;;  %v10804_v34 = vpack.c.bf16 %v4449_v30, %v4448_v29  ;;  %v4040_v30 = vld [vmem:[#allocation16 + $0x30] sm:$0xff] }
 0xc9c   :  { %v8661_v37 = vadd.f32 -1.0, %v11275_v35  ;;  %v4450_v35 = vld [vmem:[#allocation16 + $0x170] sm:$0xff] }
 0xc9d   :  { %v3079_v38 = vsel %vm3069_vm1, %v3067_v17, %v8662_v31  ;;  %v10798_v17 = vpack.c.bf16 %v4445_v13, %v4444_v6  ;;  %v4451_v31 = vld [vmem:[#allocation16 + $0x178] sm:$0xff] }
 0xc9e   :  { %v3078_v40 = vsel %vm3068_vm2, %v3066_v24, %v8661_v37  ;;  %v4447_v24 = vld [vmem:[#allocation16 + $0x158] sm:$0xff]  ;;  %v10807_v37 = vpack.c.bf16 %v4451_v31, %v4450_v35  ;;  %v4115_v31 = vld [vmem:[#allocation16 + $0x40] sm:$0xff] }
 0xc9f   :  { %v10666_v8 = vpack.c.bf16 %v3079_v38, %v3078_v40  ;;  %v4608_v38 = vld [vmem:[#allocation16 + $0x1c0] sm:$0xff]  ;;  %v4609_v40 = vld [vmem:[#allocation16 + $0x1c8] sm:$0xff] }
 0xca1   :  { %10667 = vmatpush3.bf16.msra.mxu1 %v10666_v8  ;;  %v10822_v8 = vpack.c.bf16 %v4609_v40, %v4608_v38  ;;  %v4117_v40 = vld [vmem:[#allocation16 + $0x50] sm:$0xff] }
 0xca2   :  { %10668 = vmatprep.subr.bf16.mxu1 %v13213_v5 }
 0xca4   :  { %9715 = vmatmul.mubr.msk.f32.vlgmr.msra.gmra.mrb[10].mxu1 %vm923_vm7, %v12234_v63 }
 0xca5   :  { %10670 = vmatpush3.bf16.msra.mxu1 %v12258_v57  ;;  %9725 = vmatprep.mubr.msk.f32.mxu1 %vm11648_vm14, %v13211_v52 }
 0xca6   :  { %10671 = vmatprep.subr.bf16.mxu1 %v13213_v5 }
 0xca9   :  { %10673 = vmatpush3.bf16.msra.mxu1 %v12261_v60 }
 0xcaa   :  { %10674 = vmatprep.subr.bf16.mxu1 %v13213_v5 }
 0xd77   :  { %v3146_v43 = vpop.f32.mrb[10].mxu1 }
 0xd78   :  { %9726 = vmatmul.mubr.msk.f32.vlgmr.msra.gmra.mrb[12].mxu1 %vm296_vm0, %v3146_v43  ;;  %v9716_v63 = vpop.f32.mrb[11].mxu1  ;;  %v3232_v57 = vrot.slane %v3146_v43, 1  ;;  %v3310_v60 = vrot.slane %v3146_v43, 2 }
 0xd79   :  { %10676 = vmatpush3.bf16.msra.mxu1 %v12265_v26  ;;  %9736 = vmatprep.mubr.msk.f32.mxu1 %vm11648_vm14, %v13211_v52  ;;  %v3388_v26 = vrot.slane %v3146_v43, 3  ;;  %v4613_v63 = vld [vmem:[#allocation16 + $0x1e8] sm:$0xff] }
 0xd7a   :  { %10677 = vmatprep.subr.bf16.mxu1 %v13213_v5 }
 0xd7d   :  { %10679 = vmatpush3.bf16.msra.mxu1 %v12271_v3  ;;  %v3466_v3 = vrot.slane %v3146_v43, 4 }
 0xd7e   :  { %10680 = vmatprep.subr.bf16.mxu1 %v13213_v5 }
 0xd80   :  { %9737 = vmatmul.mubr.msk.f32.vlgmr.msra.gmra.mrb[12].mxu1 %vm296_vm0, %v3232_v57 }
 0xd81   :  { %10682 = vmatpush3.bf16.msra.mxu1 %v12278_v14  ;;  %9747 = vmatprep.mubr.msk.f32.mxu1 %vm11648_vm14, %v13211_v52  ;;  %v3544_v14 = vrot.slane %v3146_v43, 5 }
 0xd82   :  { %10683 = vmatprep.subr.bf16.mxu1 %v13213_v5 }
 0xd85   :  { %10685 = vmatpush3.bf16.msra.mxu1 %v12283_v22  ;;  %v3622_v22 = vrot.slane %v3146_v43, 6 }
 0xd86   :  { %10686 = vmatprep.subr.bf16.mxu1 %v13213_v5 }
 0xd88   :  { %9748 = vmatmul.mubr.msk.f32.vlgmr.msra.gmra.mrb[12].mxu1 %vm296_vm0, %v3310_v60  ;;  %v4614_v60 = vld [vmem:[#allocation16 + $0x1f0] sm:$0xff] }
 0xd89   :  { %10688 = vmatpush3.bf16.msra.mxu1 %v12290_v28  ;;  %9758 = vmatprep.mubr.msk.f32.mxu1 %vm11648_vm14, %v13211_v52  ;;  %v4280_v28 = vld [vmem:[#allocation16 + $0xc0] sm:$0xff] }
 0xd8a   :  { %10689 = vmatprep.subr.bf16.mxu1 %v13213_v5 }
 0xd8d   :  { %10691 = vmatpush3.bf16.msra.mxu1 %v12295_v33  ;;  %v4281_v33 = vld [vmem:[#allocation16 + $0xc8] sm:$0xff] }
 0xd8e   :  { %10692 = vmatprep.subr.bf16.mxu1 %v13213_v5 }
 0xd90   :  { %9759 = vmatmul.mubr.msk.f32.vlgmr.msra.gmra.mrb[12].mxu1 %vm296_vm0, %v3388_v26  ;;  %v4615_v26 = vld [vmem:[#allocation16 + $0x1f8] sm:$0xff] }
 0xd91   :  { %10694 = vmatpush3.bf16.msra.mxu1 %v12302_v36  ;;  %9769 = vmatprep.mubr.msk.f32.mxu1 %vm11648_vm14, %v13211_v52  ;;  %v10774_v36 = vpack.c.bf16 %v4281_v33, %v4280_v28  ;;  %v12470_v33 = vld [vmem:[%s13177_s14] sm:$0xff] }
 0xd92   :  { %10695 = vmatprep.subr.bf16.mxu1 %v13213_v5  ;;  %v13204_v12 = vrot.slane %v12470_v33, 7 }
 0xd95   :  { %10697 = vmatpush3.bf16.msra.mxu1 %v12307_v39  ;;  %v3700_v39 = vrot.slane %v3146_v43, 7  ;;  %v4612_v43 = vld [vmem:[#allocation16 + $0x1e0] sm:$0xff] }
 0xd96   :  { %10698 = vmatprep.subr.bf16.mxu1 %v13213_v5  ;;  %v10828_v57 = vpack.c.bf16 %v4613_v63, %v4612_v43  ;;  %v4121_v63 = vld [vmem:[#allocation16 + $0x70] sm:$0xff] }
 0xd98   :  { %9770 = vmatmul.mubr.msk.f32.vlgmr.msra.gmra.mrb[12].mxu1 %vm296_vm0, %v3466_v3  ;;  %v10831_v3 = vpack.c.bf16 %v4615_v26, %v4614_v60  ;;  %v4198_v26 = vld [vmem:[#allocation16 + $0x80] sm:$0xff] }
 0xd99   :  { %10700 = vmatpush3.bf16.msra.mxu1 %v12314_v9  ;;  %9780 = vmatprep.mubr.msk.f32.mxu1 %vm11648_vm14, %v13211_v52  ;;  %v4282_v9 = vld [vmem:[#allocation16 + $0xd0] sm:$0xff] }
 0xd9a   :  { %10701 = vmatprep.subr.bf16.mxu1 %v13213_v5 }
 0xd9d   :  { %10703 = vmatpush3.bf16.msra.mxu1 %v12319_v44  ;;  %v4283_v44 = vld [vmem:[#allocation16 + $0xd8] sm:$0xff] }
 0xd9e   :  { %10704 = vmatprep.subr.bf16.mxu1 %v13213_v5  ;;  %v10777_v32 = vpack.c.bf16 %v4283_v44, %v4282_v9 }
 0xda0   :  { %9781 = vmatmul.mubr.msk.f32.vlgmr.msra.gmra.mrb[12].mxu1 %vm296_vm0, %v3544_v14  ;;  %v3868_v14 = vld [vmem:[#allocation22 + $0x10] sm:$0xff] }
 0xda1   :  { %10706 = vmatpush3.bf16.msra.mxu1 %v12326_v47  ;;  %9791 = vmatprep.mubr.msk.f32.mxu1 %vm11648_vm14, %v13211_v52  ;;  %v10720_v47 = vpack.c.bf16 %v3779_v46, %v3778_v45 }
 0xda2   :  { %10707 = vmatprep.subr.bf16.mxu1 %v13213_v5 }
 0xda3   :  { %10721 = vmatpush3.bf16.msra.mxu0 %v10720_v47 }
 0xda4   :  { %10722 = vmatprep.subr.bf16.mxu0 %v13213_v5 }
 0xda5   :  { %10709 = vmatpush3.bf16.msra.mxu1 %v12331_v53  ;;  %v10780_v53 = vpack.c.bf16 %v4285_v51, %v4284_v48  ;;  %v13205_v48 = vrot.slane %v12470_v33, 5 }
 0xda6   :  { %10710 = vmatprep.subr.bf16.mxu1 %v13213_v5 }
 0xda7   :  { %10724 = vmatpush3.bf16.msra.mxu0 %v10723_v10 }
 0xda8   :  { %9792 = vmatmul.mubr.msk.f32.vlgmr.msra.gmra.mrb[12].mxu1 %vm296_vm0, %v3622_v22  ;;  %10725 = vmatprep.subr.bf16.mxu0 %v13213_v5  ;;  %v3869_v22 = vld [vmem:[#allocation22 + $0x18] sm:$0xff] }
 0xda9   :  { %10712 = vmatpush3.bf16.msra.mxu1 %v12338_v15  ;;  %9802 = vmatprep.mubr.msk.f32.mxu1 %vm11648_vm14, %v13211_v52  ;;  %v4286_v15 = vld [vmem:[#allocation16 + $0xf0] sm:$0xff]  ;;  %v10732_v28 = vpack.c.bf16 %v3869_v22, %v3868_v14 }
 0xdaa   :  { %10713 = vmatprep.subr.bf16.mxu1 %v13213_v5  ;;  %v4200_v22 = vld [vmem:[#allocation16 + $0x90] sm:$0xff] }
 0xdab   :  { %10727 = vmatpush3.bf16.msra.mxu0 %v10726_v62  ;;  %v8674_v62 = vld [vmem:[%s13187_s24] ss:$0 sm:$0xff] }
 0xdac   :  { %10728 = vmatprep.subr.bf16.mxu0 %v13213_v5 }
 0xdad   :  { %10715 = vmatpush3.bf16.msra.mxu1 %v12343_v59  ;;  %v10783_v59 = vpack.c.bf16 %v4287_v55, %v4286_v15 }
 0xdae   :  { %10773 = vmatprep.subr.bf16.mxu1 %v13213_v5 }
 0xdb0   :  { %9803 = vmatmul.mubr.msk.f32.vlgmr.msra.gmra.mrb[12].mxu1 %vm296_vm0, %v3700_v39  ;;  %v8672_v39 = vld [vmem:[%s13185_s22] ss:$0 sm:$0xff] }
 0xdb1   :  { %10775 = vmatpush3.bf16.msra.mxu1 %v10774_v36  ;;  %9915 = vmatprep.mubr.msk.f32.mxu1 %vm11648_vm14, %v13211_v52  ;;  %v13206_v36 = vrot.slane %v12470_v33, 3 }
 0xdb2   :  { %10776 = vmatprep.subr.bf16.mxu1 %v13213_v5 }
 0xdb5   :  { %10778 = vmatpush3.bf16.msra.mxu1 %v10777_v32 }
 0xdb6   :  { %10779 = vmatprep.subr.bf16.mxu1 %v13213_v5 }
 0xdb9   :  { %10781 = vmatpush3.bf16.msra.mxu1 %v10780_v53 }
 0xdba   :  { %10782 = vmatprep.subr.bf16.mxu1 %v13213_v5 }
 0xdbd   :  { %10784 = vmatpush3.bf16.msra.mxu1 %v10783_v59  ;;  %v3952_v59 = vld [vmem:[#allocation24 + $0x8] sm:$0xff] }
 0xdbe   :  { %10797 = vmatprep.subr.bf16.mxu1 %v13213_v5  ;;  %v10735_v61 = vpack.c.bf16 %v3952_v59, %v3951_v58  ;;  %v4367_v58 = vld [vmem:[#allocation16 + $0x128] sm:$0xff] }
 0xe83   :  { %v3769_v1 = vpop.f32.mrb[12].mxu1 }
 0xe84   :  { %v11138_v2 = vadd.f32 %v3769_v1, %v12363_v56  ;;  %v9804_v4 = vpop.f32.mrb[13].mxu1  ;;  %v10801_v56 = vpack.c.bf16 %v4447_v24, %v4446_v18  ;;  %v4034_v1 = vld [vmem:[#allocation16] sm:$0xff]  ;;  %v4037_v18 = vld [vmem:[#allocation16 + $0x18] sm:$0xff] }
 0xe86   :  { %3774 = vst.msk [vmem:[#allocation2 + $0x1] sm:$0x1] %vm2063_vm15, %v11138_v2  ;;  %v4035_v2 = vld [vmem:[#allocation16 + $0x8] sm:$0xff] }
 0xe87   :  { %v12494_v49 = vpack.c.bf16 %v4035_v2, %v4034_v1  ;;  %v4526_v2 = vld [vmem:[#allocation16 + $0x180] sm:$0xff] }
 0xe8d   :  { %v12440_v27 = vld [vmem:[#allocation2] sm:$0x3] }
 0xe8e   :  { %9822 = vmatmul.mubr.msk.f32.vlgmr.msra.gmra.mrb[34].mxu0 %vm3791_vm3, %v12440_v27  ;;  %9916 = vmatmul.mubr.msk.f32.vlgmr.msra.gmra.mrb[14].mxu1 %vm3791_vm3, %v12440_v27 }
 0xe8f   :  { %10799 = vmatpush3.bf16.msra.mxu1 %v10798_v17  ;;  %9953 = vmatprep.mubr.msk.f32.mxu1 %vm11648_vm14, %v13211_v52  ;;  %v4036_v17 = vld [vmem:[#allocation16 + $0x10] sm:$0xff] }
 0xe90   :  { %10800 = vmatprep.subr.bf16.mxu1 %v13213_v5  ;;  %10730 = vmatpush3.bf16.msra.mxu0 %v10729_v25  ;;  %v12498_v24 = vpack.c.bf16 %v4037_v18, %v4036_v17  ;;  %v4038_v25 = vld [vmem:[#allocation16 + $0x20] sm:$0xff] }
 0xe91   :  { %10731 = vmatprep.subr.bf16.mxu0 %v13213_v5  ;;  %9832 = vmatprep.mubr.msk.f32.mxu0 %vm11648_vm14, %v13211_v52  ;;  %v4530_v18 = vld [vmem:[#allocation16 + $0x1a0] sm:$0xff] }
 0xe93   :  { %10802 = vmatpush3.bf16.msra.mxu1 %v10801_v56  ;;  %v4039_v56 = vld [vmem:[#allocation16 + $0x28] sm:$0xff] }
 0xe94   :  { %10803 = vmatprep.subr.bf16.mxu1 %v13213_v5  ;;  %10733 = vmatpush3.bf16.msra.mxu0 %v10732_v28  ;;  %v12504_v29 = vpack.c.bf16 %v4039_v56, %v4038_v25  ;;  %v4201_v28 = vld [vmem:[#allocation16 + $0x98] sm:$0xff]  ;;  %v4531_v25 = vld [vmem:[#allocation16 + $0x1a8] sm:$0xff] }
 0xe95   :  { %10734 = vmatprep.subr.bf16.mxu0 %v13213_v5  ;;  %v12584_v56 = vpack.c.bf16 %v4531_v25, %v4530_v18  ;;  %v8691_v18 = vld [vmem:[%s13178_s15 + $0x28] sm:$0xff]  ;;  %v8692_v25 = vld [vmem:[%s13178_s15 + $0x30] sm:$0xff] }
 0xe97   :  { %10805 = vmatpush3.bf16.msra.mxu1 %v10804_v34  ;;  %v4041_v34 = vld [vmem:[#allocation16 + $0x38] sm:$0xff] }
 0xe98   :  { %10806 = vmatprep.subr.bf16.mxu1 %v13213_v5  ;;  %v12508_v35 = vpack.c.bf16 %v4041_v34, %v4040_v30  ;;  %v4532_v30 = vld [vmem:[#allocation16 + $0x1b0] sm:$0xff]  ;;  %v4533_v34 = vld [vmem:[#allocation16 + $0x1b8] sm:$0xff] }
 0xe9b   :  { %10808 = vmatpush3.bf16.msra.mxu1 %v10807_v37  ;;  %v4116_v37 = vld [vmem:[#allocation16 + $0x48] sm:$0xff] }
 0xe9c   :  { %10821 = vmatprep.subr.bf16.mxu1 %v13213_v5  ;;  %v12512_v38 = vpack.c.bf16 %v4116_v37, %v4115_v31  ;;  %v12588_v31 = vpack.c.bf16 %v4533_v34, %v4532_v30  ;;  %v12594_v37 = vld [vmem:[#allocation10] sm:$0xff] }
 0xe9d   :  { %v8693_v34 = vld [vmem:[%s13178_s15 + $0x38] sm:$0xff] }
 0xe9e   :  { %9954 = vmatmul.mubr.msk.f32.vlgmr.msra.gmra.mrb[16].mxu1 %vm3791_vm3, %v12440_v27 }
 0xe9f   :  { %10823 = vmatpush3.bf16.msra.mxu1 %v10822_v8  ;;  %9991 = vmatprep.mubr.msk.f32.mxu1 %vm11648_vm14, %v13211_v52  ;;  %v4118_v8 = vld [vmem:[#allocation16 + $0x58] sm:$0xff] }
 0xea0   :  { %10824 = vmatprep.subr.bf16.mxu1 %v13213_v5  ;;  %v12518_v7 = vpack.c.bf16 %v4118_v8, %v4117_v40  ;;  %v8676_v40 = vld [vmem:[%s13189_s26] ss:$0 sm:$0xff] }
 0xea3   :  { %10826 = vmatpush3.bf16.msra.mxu1 %v10825_v42  ;;  %v4120_v42 = vld [vmem:[#allocation16 + $0x68] sm:$0xff] }
 0xea4   :  { %10827 = vmatprep.subr.bf16.mxu1 %v13213_v5  ;;  %v12524_v43 = vpack.c.bf16 %v4120_v42, %v4119_v41 }
 0xea7   :  { %10829 = vmatpush3.bf16.msra.mxu1 %v10828_v57  ;;  %v4122_v57 = vld [vmem:[#allocation16 + $0x78] sm:$0xff] }
 0xea8   :  { %10830 = vmatprep.subr.bf16.mxu1 %v13213_v5  ;;  %v12528_v60 = vpack.c.bf16 %v4122_v57, %v4121_v63 }
 0xeab   :  { %10832 = vmatpush3.bf16.msra.mxu1 %v10831_v3  ;;  %v4199_v3 = vld [vmem:[#allocation16 + $0x88] sm:$0xff] }
 0xeac   :  { %v12532_v14 = vpack.c.bf16 %v4199_v3, %v4198_v26  ;;  %v13207_v3 = vrot.slane %v12470_v33, 1 }
 0xeae   :  { %9992 = vmatmul.mubr.msk.f32.vlgmr.msra.gmra.mrb[18].mxu1 %vm3791_vm3, %v12440_v27 }
 0xeaf   :  { %10003 = vmatprep.mubr.msk.f32.mxu1 %vm923_vm7, %v12097_v0 }
 0xf61   :  { %v3861_v9 = vpop.f32.mrb[34].mxu0  ;;  %v4356_v0 = vpop.f32.mrb[14].mxu1 }
 0xf62   :  { %v3862_v44 = vadd.f32 %v8672_v39, %v3861_v9  ;;  %v4357_v32 = vadd.f32 %v4356_v0, %v13206_v36  ;;  %v9823_v45 = vpop.f32.mrb[35].mxu0  ;;  %v9917_v46 = vpop.f32.mrb[15].mxu1  ;;  %v12538_v39 = vpack.c.bf16 %v4201_v28, %v4200_v22  ;;  %v4202_v9 = vld [vmem:[#allocation16 + $0xa0] sm:$0xff]  ;;  %v4203_v0 = vld [vmem:[#allocation16 + $0xa8] sm:$0xff] }
 0xf63   :  { %v4205_v45 = vld [vmem:[#allocation16 + $0xb8] sm:$0xff] }
 0xf64   :  { %v3865_v47 = vmax.f32 %v3862_v44, 0.0  ;;  %4360 = vst.msk [vmem:[#allocation3 + $0x3] sm:$0x1] %vm4112_vm4, %v4357_v32  ;;  %v12544_v44 = vpack.c.bf16 %v4203_v0, %v4202_v9  ;;  %v4204_v32 = vld [vmem:[#allocation16 + $0xb0] sm:$0xff]  ;;  %v13210_v0 = vrot.slane %v12470_v33, 2 }
 0xf65   :  { %v12548_v46 = vpack.c.bf16 %v4205_v45, %v4204_v32 }
 0xf66   :  { %9833 = vmatmul.mubr.msk.f32.vlgmr.msra.gmra.mrb[36].mxu0 %vm296_vm0, %v3865_v47  ;;  %v4362_v47 = vld [vmem:[#allocation16 + $0x100] sm:$0xff] }
 0xf67   :  { %9839 = vmatprep.mubr.msk.f32.mxu0 %vm11648_vm14, %v13211_v52  ;;  %10736 = vmatpush3.bf16.msra.mxu0 %v10735_v61  ;;  %v4368_v61 = vld [vmem:[#allocation16 + $0x130] sm:$0xff] }
 0xf68   :  { %10737 = vmatprep.subr.bf16.mxu0 %v13213_v5 }
 0xf71   :  { %v4520_v51 = vpop.f32.mrb[16].mxu1 }
 0xf72   :  { %v4521_v53 = vadd.f32 %v4520_v51, %v13205_v48  ;;  %v9955_v54 = vpop.f32.mrb[17].mxu1  ;;  %v4363_v51 = vld [vmem:[#allocation16 + $0x108] sm:$0xff]  ;;  %v5305_v48 = vld [vmem:[#allocation18 + $0x18] sm:$0xff] }
 0xf73   :  { %v4364_v54 = vld [vmem:[#allocation16 + $0x110] sm:$0xff] }
 0xf74   :  { %4524 = vst.msk [vmem:[#allocation3 + $0x5] sm:$0x1] %vm4112_vm4, %v4521_v53  ;;  %v12552_v53 = vpack.c.bf16 %v4363_v51, %v4362_v47  ;;  %v13209_v51 = vrot.slane %v12470_v33, 4 }
 0xf81   :  { %v4684_v10 = vpop.f32.mrb[18].mxu1 }
 0xf82   :  { %v4685_v15 = vadd.f32 %v4684_v10, %v13204_v12  ;;  %v9993_v55 = vpop.f32.mrb[19].mxu1  ;;  %v4365_v10 = vld [vmem:[#allocation16 + $0x118] sm:$0xff]  ;;  %v12752_v12 = vld [vmem:[%s13252_s27 + $0x8] sm:$0xff] }
 0xf83   :  { %v4366_v55 = vld [vmem:[#allocation16 + $0x120] sm:$0xff] }
 0xf84   :  { %4688 = vst.msk [vmem:[#allocation3 + $0x7] sm:$0x1] %vm4112_vm4, %v4685_v15  ;;  %v12558_v15 = vpack.c.bf16 %v4365_v10, %v4364_v54  ;;  %v12564_v59 = vpack.c.bf16 %v4367_v58, %v4366_v55  ;;  %v13208_v58 = vrot.slane %v12470_v33, 6 }
0x1039   :  { %v3946_v4 = vpop.f32.mrb[36].mxu0 }
0x103a   :  { %v3947_v6 = vadd.f32 %v8674_v62, %v3946_v4  ;;  %v9834_v13 = vpop.f32.mrb[37].mxu0  ;;  %v4369_v62 = vld [vmem:[#allocation16 + $0x138] sm:$0xff]  ;;  %v4527_v4 = vld [vmem:[#allocation16 + $0x188] sm:$0xff] }
0x103b   :  { %v12568_v1 = vpack.c.bf16 %v4369_v62, %v4368_v61  ;;  %v4528_v13 = vld [vmem:[#allocation16 + $0x190] sm:$0xff] }
0x103c   :  { %v3950_v50 = vmax.f32 %v3947_v6, 0.0  ;;  %v12572_v6 = vpack.c.bf16 %v4527_v4, %v4526_v2 }
0x103e   :  { %9840 = vmatmul.mubr.msk.f32.vlgmr.msra.gmra.mrb[38].mxu0 %vm923_vm7, %v3950_v50  ;;  %v4529_v50 = vld [vmem:[#allocation16 + $0x198] sm:$0xff] }
0x103f   :  { %10739 = vmatpush3.bf16.msra.mxu0 %v12494_v49  ;;  %9858 = vmatprep.mubr.msk.f32.mxu0 %vm11648_vm14, %v13211_v52  ;;  %v12578_v17 = vpack.c.bf16 %v4529_v50, %v4528_v13  ;;  %v12619_v13 = vld [vmem:[#allocation10 + $0x8] sm:$0xff] }
0x1040   :  { %10740 = vmatprep.subr.bf16.mxu0 %v13213_v5  ;;  %v8690_v50 = vld [vmem:[%s13178_s15 + $0x20] sm:$0xff] }
0x1041   :  { %v12632_v30 = vpack.c.bf16 %v8691_v18, %v8690_v50 }
0x1043   :  { %10742 = vmatpush3.bf16.msra.mxu0 %v12498_v24 }
0x1044   :  { %10743 = vmatprep.subr.bf16.mxu0 %v13213_v5 }
0x1047   :  { %10745 = vmatpush3.bf16.msra.mxu0 %v12504_v29 }
0x1048   :  { %10746 = vmatprep.subr.bf16.mxu0 %v13213_v5 }
0x104b   :  { %10748 = vmatpush3.bf16.msra.mxu0 %v12508_v35 }
0x104c   :  { %10749 = vmatprep.subr.bf16.mxu0 %v13213_v5 }
0x104e   :  { %9859 = vmatmul.mubr.msk.f32.vlgmr.msra.gmra.mrb[40].mxu0 %vm3791_vm3, %v12440_v27 }
0x104f   :  { %10751 = vmatpush3.bf16.msra.mxu0 %v12512_v38  ;;  %9877 = vmatprep.mubr.msk.f32.mxu0 %vm11648_vm14, %v13211_v52 }
0x1050   :  { %10752 = vmatprep.subr.bf16.mxu0 %v13213_v5 }
0x1053   :  { %10754 = vmatpush3.bf16.msra.mxu0 %v12518_v7 }
0x1054   :  { %10755 = vmatprep.subr.bf16.mxu0 %v13213_v5 }
0x1057   :  { %10757 = vmatpush3.bf16.msra.mxu0 %v12524_v43 }
0x1058   :  { %10758 = vmatprep.subr.bf16.mxu0 %v13213_v5 }
0x105b   :  { %10760 = vmatpush3.bf16.msra.mxu0 %v12528_v60 }
0x105c   :  { %10761 = vmatprep.subr.bf16.mxu0 %v13213_v5 }
0x105e   :  { %9878 = vmatmul.mubr.msk.f32.vlgmr.msra.gmra.mrb[42].mxu0 %vm3791_vm3, %v12440_v27 }
0x105f   :  { %10763 = vmatpush3.bf16.msra.mxu0 %v12532_v14  ;;  %9896 = vmatprep.mubr.msk.f32.mxu0 %vm11648_vm14, %v13211_v52 }
0x1060   :  { %10764 = vmatprep.subr.bf16.mxu0 %v13213_v5 }
0x1063   :  { %10766 = vmatpush3.bf16.msra.mxu0 %v12538_v39 }
0x1064   :  { %10767 = vmatprep.subr.bf16.mxu0 %v13213_v5 }
0x1067   :  { %10769 = vmatpush3.bf16.msra.mxu0 %v12544_v44 }
0x1068   :  { %10770 = vmatprep.subr.bf16.mxu0 %v13213_v5 }
0x106b   :  { %10772 = vmatpush3.bf16.msra.mxu0 %v12548_v46 }
0x106c   :  { %10785 = vmatprep.subr.bf16.mxu0 %v13213_v5 }
0x106e   :  { %9897 = vmatmul.mubr.msk.f32.vlgmr.msra.gmra.mrb[44].mxu0 %vm3791_vm3, %v12440_v27 }
0x106f   :  { %10787 = vmatpush3.bf16.msra.mxu0 %v12552_v53  ;;  %9934 = vmatprep.mubr.msk.f32.mxu0 %vm11648_vm14, %v13211_v52 }
0x1070   :  { %10788 = vmatprep.subr.bf16.mxu0 %v13213_v5 }
0x1073   :  { %10790 = vmatpush3.bf16.msra.mxu0 %v12558_v15 }
0x1074   :  { %10791 = vmatprep.subr.bf16.mxu0 %v13213_v5 }
0x1077   :  { %10793 = vmatpush3.bf16.msra.mxu0 %v12564_v59 }
0x1078   :  { %10794 = vmatprep.subr.bf16.mxu0 %v13213_v5 }
0x107b   :  { %10796 = vmatpush3.bf16.msra.mxu0 %v12568_v1 }
0x107c   :  { %10809 = vmatprep.subr.bf16.mxu0 %v13213_v5 }
0x107e   :  { %9935 = vmatmul.mubr.msk.f32.vlgmr.msra.gmra.mrb[46].mxu0 %vm3791_vm3, %v12440_v27 }
0x107f   :  { %10811 = vmatpush3.bf16.msra.mxu0 %v12572_v6  ;;  %9972 = vmatprep.mubr.msk.f32.mxu0 %vm11648_vm14, %v13211_v52  ;;  %v5681_v52 = vld [vmem:[#allocation18 + $0x48] sm:$0xff] }
0x1080   :  { %10812 = vmatprep.subr.bf16.mxu0 %v13213_v5 }
0x1083   :  { %10814 = vmatpush3.bf16.msra.mxu0 %v12578_v17 }
0x1084   :  { %10815 = vmatprep.subr.bf16.mxu0 %v13213_v5 }
0x1087   :  { %10817 = vmatpush3.bf16.msra.mxu0 %v12584_v56 }
0x1088   :  { %10818 = vmatprep.subr.bf16.mxu0 %v13213_v5 }
0x108b   :  { %10820 = vmatpush3.bf16.msra.mxu0 %v12588_v31 }
0x108e   :  { %9973 = vmatmul.mubr.msk.f32.vlgmr.msra.gmra.mrb[48].mxu0 %vm3791_vm3, %v12440_v27 }
0x108f   :  { %9996 = vmatprep.mubr.msk.f32.mxu0 %vm4690_vm5, %v12594_v37 }
0x1111   :  { %v4029_v8 = vpop.f32.mrb[38].mxu0 }
0x1112   :  { %v4030_v41 = vadd.f32 %v8676_v40, %v4029_v8  ;;  %v9841_v42 = vpop.f32.mrb[39].mxu0  ;;  %v12637_v40 = vpack.c.bf16 %v8693_v34, %v8692_v25 }
0x1114   :  { %4033 = vst [vmem:[#allocation25] sm:$0x3] %v4030_v41 }
0x1121   :  { %v4108_v63 = vpop.f32.mrb[40].mxu0 }
0x1122   :  { %v4109_v57 = vadd.f32 %v4108_v63, %v12470_v33  ;;  %v9860_v26 = vpop.f32.mrb[41].mxu0  ;;  %v12646_v63 = vld [vmem:[%s13254_s5 + $0x8] sm:$0xff] }
0x1123   :  { %v4774_v26 = vld [vmem:[%s13178_s15 + $0x8] sm:$0xff] }
0x1124   :  { %4113 = vst.msk [vmem:[#allocation3] sm:$0x1] %vm4112_vm4, %v4109_v57  ;;  %v4773_v57 = vld [vmem:[%s13178_s15] sm:$0xff] }
0x1131   :  { %v4192_v22 = vpop.f32.mrb[42].mxu0 }
0x1132   :  { %v4193_v28 = vadd.f32 %v4192_v22, %v13207_v3  ;;  %v9879_v9 = vpop.f32.mrb[43].mxu0  ;;  %v12658_v22 = vpack.c.bf16 %v4774_v26, %v4773_v57  ;;  %v12709_v57 = vld [vmem:[%s13179_s16] ss:$0 sm:$0xff] }
0x1133   :  { %v4776_v9 = vld [vmem:[%s13178_s15 + $0x18] sm:$0xff] }
0x1134   :  { %4196 = vst.msk [vmem:[#allocation3 + $0x1] sm:$0x1] %vm4112_vm4, %v4193_v28  ;;  %v4775_v28 = vld [vmem:[%s13178_s15 + $0x10] sm:$0xff] }
0x1141   :  { %v4274_v32 = vpop.f32.mrb[44].mxu0 }
0x1142   :  { %v4275_v45 = vadd.f32 %v4274_v32, %v13210_v0  ;;  %v9898_v47 = vpop.f32.mrb[45].mxu0  ;;  %v5680_v0 = vld [vmem:[#allocation18 + $0x40] sm:$0xff] }
0x1143   :  { %v12667_v47 = vpack.c.bf16 %v4776_v9, %v4775_v28 }
0x1144   :  { %4278 = vst.msk [vmem:[#allocation3 + $0x2] sm:$0x1] %vm4112_vm4, %v4275_v45 }
0x1151   :  { %v4438_v54 = vpop.f32.mrb[46].mxu0 }
0x1152   :  { %v4439_v10 = vadd.f32 %v4438_v54, %v13209_v51  ;;  %v9936_v55 = vpop.f32.mrb[47].mxu0 }
0x1153   :  { %v8701_v55 = vld [vmem:[%s13178_s15 + $0x48] sm:$0xff] }
0x1154   :  { %4442 = vst.msk [vmem:[#allocation3 + $0x4] sm:$0x1] %vm4112_vm4, %v4439_v10  ;;  %v8700_v10 = vld [vmem:[%s13178_s15 + $0x40] sm:$0xff] }
0x1161   :  { %v4602_v61 = vpop.f32.mrb[48].mxu0 }
0x1162   :  { %v4603_v62 = vadd.f32 %v4602_v61, %v13208_v58  ;;  %v9974_v2 = vpop.f32.mrb[49].mxu0  ;;  %v12680_v61 = vpack.c.bf16 %v8701_v55, %v8700_v10 }
0x1163   :  { %v8703_v2 = vld [vmem:[%s13178_s15 + $0x58] sm:$0xff] }
0x1164   :  { %4606 = vst.msk [vmem:[#allocation3 + $0x6] sm:$0x1] %vm4112_vm4, %v4603_v62  ;;  %v8702_v62 = vld [vmem:[%s13178_s15 + $0x50] sm:$0xff] }
0x116b   :  { %v4689_v4 = vld [vmem:[#allocation3] sm:$0xff] }
0x116c   :  { %9994 = vmatprep.subr.mxu0 %v4689_v4 }
0x116d   :  { %9995 = vmatpush3.msra.mxu0 %v4689_v4  ;;  %v12694_v4 = vpack.c.bf16 %v8703_v2, %v8702_v62 }
0x116e   :  { %9997 = vmatmul.mubr.msk.f32.vlgmr.msra.gmra.mrb[50].mxu0 %vm4690_vm5, %v12619_v13  ;;  %10838 = vmatprep.subr.bf16.mxu0 %v12632_v30 }
0x116f   :  { %10840 = vmatpush3.bf16.msra.mxu0 %v12632_v30 }
0x1170   :  { %10842 = vmatprep.subr.bf16.mxu0 %v12637_v40 }
0x1173   :  { %10844 = vmatpush3.bf16.msra.mxu0 %v12637_v40 }
0x1174   :  { %10846 = vmatprep.subr.bf16.mxu0 %v12658_v22 }
0x1241   :  { %v9998_v8 = vpop.f32.mrb[50].mxu0 }
0x1242   :  { %v4763_v41 = vpop.f32.mrb[51].mxu0 }
0x1243   :  { %v10833_v42 = vpack.c.bf16 %v9998_v8, %v4763_v41 }
0x1245   :  { %10834 = vmatprep.subr.bf16.mxu1 %v10833_v42 }
0x1246   :  { %10836 = vmatpush3.bf16.msra.mxu1 %v10833_v42  ;;  %v12702_v42 = vld [vmem:[#allocation9] sm:$0xff] }
0x1249   :  { %10004 = vmatmul.mubr.msk.f32.vlgmr.msra.gmra.mrb[20].mxu1 %vm923_vm7, %v12646_v63 }
0x124a   :  { %10032 = vmatprep.mubr.msk.f32.mxu1 %vm923_vm7, %v12116_v16 }
0x131c   :  { %v10005_v32 = vpop.f32.mrb[20].mxu1 }
0x131d   :  { %v4843_v45 = vpop.f32.mrb[21].mxu1 }
0x131e   :  { %v10853_v54 = vpack.c.bf16 %v10005_v32, %v4843_v45  ;;  %10014 = vmatprep.mubr.msk.f32.mxu0 %vm296_vm0, %v4843_v45 }
0x131f   :  { %10015 = vmatmul.mubr.msk.f32.vlgmr.msra.gmra.mrb[52].mxu0 %vm296_vm0, %v10005_v32 }
0x1320   :  { %10848 = vmatpush3.bf16.msra.mxu0 %v12658_v22  ;;  %10025 = vmatprep.mubr.msk.f32.mxu0 %vm296_vm0, %v4763_v41 }
0x1321   :  { %10854 = vmatprep.subr.bf16.mxu1 %v10853_v54  ;;  %10850 = vmatprep.subr.bf16.mxu0 %v12667_v47 }
0x1322   :  { %10856 = vmatpush3.bf16.msra.mxu1 %v10853_v54 }
0x1324   :  { %10852 = vmatpush3.bf16.msra.mxu0 %v12667_v47 }
0x1325   :  { %10033 = vmatmul.mubr.msk.f32.vlgmr.msra.gmra.mrb[22].mxu1 %vm923_vm7, %v12125_v23  ;;  %10858 = vmatprep.subr.bf16.mxu0 %v12680_v61 }
0x1326   :  { %10050 = vmatprep.mubr.msk.f32.mxu1 %vm923_vm7, %v12702_v42 }
0x1327   :  { %10026 = vmatmul.mubr.msk.f32.vlgmr.msra.gmra.mrb[52].mxu0 %vm296_vm0, %v9998_v8 }
0x1328   :  { %10860 = vmatpush3.bf16.msra.mxu0 %v12680_v61 }
0x1329   :  { %10862 = vmatprep.subr.bf16.mxu0 %v12694_v4 }
0x132c   :  { %10864 = vmatpush3.bf16.msra.mxu0 %v12694_v4 }
0x13f8   :  { %v10034_v50 = vpop.f32.mrb[22].mxu1 }
0x13f9   :  { %v5095_v18 = vsub.f32 %v10034_v50, %v9998_v8  ;;  %v5085_v25 = vpop.f32.mrb[23].mxu1 }
0x13fa   :  { %v5094_v34 = vsub.f32 %v5085_v25, %v4763_v41 }
0x13fc   :  { %10043 = vmatprep.mubr.msk.f32.mxu0 %vm296_vm0, %v5094_v34  ;;  %v12713_v34 = vld [vmem:[#allocation9 + $0x8] sm:$0xff] }
0x13fd   :  { %10044 = vmatmul.mubr.msk.f32.vlgmr.msra.gmra.mrb[52].mxu0 %vm296_vm0, %v5095_v18 }
0x13fe   :  { %10106 = vmatprep.mubr.msk.f32.mxu0 %vm296_vm0, %v12035_v11 }
0x14d0   :  { %v10045_v8 = vpop.f32.mrb[52].mxu0 }
0x14d1   :  { %v5191_v41 = vadd.f32 %v10045_v8, %v12709_v57  ;;  %v5173_v26 = vpop.f32.mrb[53].mxu0  ;;  %v12715_v8 = vld [vmem:[#allocation9 + $0x10] sm:$0xff] }
0x14d2   :  { %v5190_v28 = vadd.f32 %v12709_v57, %v5173_v26  ;;  %v12721_v26 = vld [vmem:[#allocation9 + $0x18] sm:$0xff] }
0x14d3   :  { %v5195_v9 = vmin.f32 %v5191_v41, 0.0  ;;  %vm5193_vm6 = vcmp.gt.f32.partialorder %v5191_v41, 0.0 }
0x14d4   :  { %v5194_v32 = vmin.f32 %v5190_v28, 0.0  ;;  %vm5192_vm8 = vcmp.gt.f32.partialorder %v5190_v28, 0.0 }
0x14d5   :  { %v5198_v45 = vmul.f32 1.442695, %v5195_v9 }
0x14d6   :  { %v5196_v54 = vmul.f32 1.442695, %v5194_v32 }
0x14d7   :  { %11276 = vpow2.f32 %v5198_v45  ;;  %v5392_v45 = vld [vmem:[#allocation18 + $0x20] sm:$0xff] }
0x14d8   :  { %11278 = vpow2.f32 %v5196_v54  ;;  %v5393_v54 = vld [vmem:[#allocation18 + $0x28] sm:$0xff] }
0x14e1   :  { %v11277_v10 = vpop.eup %11276 }
0x14e2   :  { %v11279_v55 = vpop.eup %11278  ;;  %v8708_v62 = vadd.f32 -1.0, %v11277_v10 }
0x14e3   :  { %v8707_v2 = vadd.f32 -1.0, %v11279_v55 }
0x14e4   :  { %v5203_v50 = vsel %vm5193_vm6, %v5191_v41, %v8708_v62  ;;  %v12728_v41 = vld [vmem:[%s13252_s27] sm:$0xff] }
0x14e5   :  { %v5202_v18 = vsel %vm5192_vm8, %v5190_v28, %v8707_v2  ;;  %13257 = vst [vmem:[#allocation34_spill] sm:$0xff] %v12728_v41  ;;  %v12744_v2 = vpack.c.bf16 %v5393_v54, %v5392_v45  ;;  %v12768_v45 = vld [vmem:[%s13252_s27 + $0x18] sm:$0xff] }
0x14e6   :  { %v10865_v25 = vpack.c.bf16 %v5203_v50, %v5202_v18  ;;  %v5394_v50 = vld [vmem:[#allocation18 + $0x30] sm:$0xff]  ;;  %v5395_v18 = vld [vmem:[#allocation18 + $0x38] sm:$0xff]  ;;  %v5302_v54 = vld [vmem:[#allocation18] sm:$0xff] }
0x14e7   :  { %13258 = vst [vmem:[#allocation35_spill] sm:$0xff] %v12744_v2 }
0x14e8   :  { %10866 = vmatprep.subr.bf16.mxu1 %v10865_v25 }
0x14e9   :  { %10868 = vmatpush3.bf16.msra.mxu1 %v10865_v25  ;;  %v12747_v25 = vpack.c.bf16 %v5395_v18, %v5394_v50  ;;  %v5304_v18 = vld [vmem:[#allocation18 + $0x10] sm:$0xff] }
0x14ea   :  { %v12776_v58 = vpack.c.bf16 %v5305_v48, %v5304_v18 }
0x14eb   :  { %13259 = vst [vmem:[#allocation36_spill] sm:$0xff] %v12747_v25 }
0x14ec   :  { %10051 = vmatmul.mubr.msk.f32.vlgmr.msra.gmra.mrb[24].mxu1 %vm923_vm7, %v12713_v34  ;;  %13261 = vst [vmem:[#allocation38_spill] sm:$0xff] %v12776_v58 }
0x14ed   :  { %10053 = vmatprep.mubr.msk.f32.mxu1 %vm923_vm7, %v12715_v8 }
0x14f0   :  { %10054 = vmatmul.mubr.msk.f32.gmra.mrb[26].mxu1 %vm923_vm7, %v12721_v26 }
0x14f1   :  { %10064 = vmatprep.mubr.msk.f32.mxu1 %vm296_vm0, %v12728_v41 }
0x15bf   :  { %v12732_v28 = vpop.f32.mrb[24].mxu1 }
0x15c0   :  { %v12734_v9 = vpop.f32.mrb[25].mxu1 }
0x15c1   :  { %v10869_v32 = vpack.c.bf16 %v12732_v28, %v12734_v9 }
0x15c3   :  { %v12738_v10 = vpop.f32.mrb[26].mxu1  ;;  %10870 = vmatprep.subr.bf16.mxu1 %v10869_v32 }
0x15c4   :  { %v12740_v55 = vpop.f32.mrb[27].mxu1  ;;  %10872 = vmatpush3.bf16.msra.mxu1 %v10869_v32  ;;  %v12759_v32 = vld [vmem:[%s13252_s27 + $0x10] sm:$0xff] }
0x15c5   :  { %v10873_v62 = vpack.c.bf16 %v12738_v10, %v12740_v55 }
0x15c7   :  { %10874 = vmatprep.subr.bf16.mxu1 %v10873_v62 }
0x15c8   :  { %10876 = vmatpush3.bf16.msra.mxu1 %v10873_v62  ;;  %v5303_v62 = vld [vmem:[#allocation18 + $0x8] sm:$0xff] }
0x15c9   :  { %10878 = vmatprep.subr.bf16.mxu1 %v12744_v2  ;;  %v12773_v50 = vpack.c.bf16 %v5303_v62, %v5302_v54  ;;  %v12782_v62 = vpack.c.bf16 %v5681_v52, %v5680_v0  ;;  %v5683_v52 = vld [vmem:[#allocation18 + $0x58] sm:$0xff] }
0x15cb   :  { %10065 = vmatmul.mubr.msk.f32.vlgmr.msra.gmra.mrb[28].mxu1 %vm296_vm0, %v12752_v12  ;;  %13260 = vst [vmem:[#allocation37_spill] sm:$0xff] %v12773_v50  ;;  %13262 = vst [vmem:[#allocation39_spill] sm:$0xff] %v12782_v62 }
0x15cc   :  { %10067 = vmatprep.mubr.msk.f32.mxu1 %vm296_vm0, %v12759_v32  ;;  %10880 = vmatpush3.bf16.msra.mxu1 %v12744_v2 }
0x15cd   :  { %10882 = vmatprep.subr.bf16.mxu1 %v12747_v25 }
0x15cf   :  { %10068 = vmatmul.mubr.msk.f32.gmra.mrb[30].mxu1 %vm296_vm0, %v12768_v45 }
0x15d0   :  { %10884 = vmatpush3.bf16.msra.mxu1 %v12747_v25 }
0x15d1   :  { %10886 = vmatprep.subr.bf16.mxu1 %v12773_v50 }
0x169e   :  { %v10066_v36 = vpop.f32.mrb[28].mxu1 }
0x169f   :  { %v5372_v3 = vpop.f32.mrb[29].mxu1 }
0x16a0   :  { %v10893_v51 = vpack.c.bf16 %v10066_v36, %v5372_v3  ;;  %10078 = vmatprep.mubr.msk.f32.mxu1 %vm296_vm0, %v5372_v3 }
0x16a1   :  { %10079 = vmatmul.mubr.msk.f32.vlgmr.msra.gmra.mrb[32].mxu1 %vm296_vm0, %v10066_v36 }
0x16a2   :  { %v10069_v5 = vpop.f32.mrb[30].mxu1  ;;  %10888 = vmatpush3.bf16.msra.mxu1 %v12773_v50  ;;  %10894 = vmatprep.subr.bf16.mxu0 %v10893_v51 }
0x16a3   :  { %v5382_v54 = vpop.f32.mrb[31].mxu1  ;;  %10896 = vmatpush3.bf16.msra.mxu0 %v10893_v51  ;;  %10890 = vmatprep.subr.bf16.mxu1 %v12776_v58 }
0x16a4   :  { %v10897_v25 = vpack.c.bf16 %v10069_v5, %v5382_v54  ;;  %10081 = vmatprep.mubr.msk.f32.mxu1 %vm296_vm0, %v5382_v54 }
0x16a5   :  { %10082 = vmatmul.mubr.msk.f32.gmra.mrb[34].mxu1 %vm296_vm0, %v10069_v5  ;;  %v5682_v5 = vld [vmem:[#allocation18 + $0x50] sm:$0xff] }
0x16a6   :  { %10892 = vmatpush3.bf16.msra.mxu1 %v12776_v58  ;;  %10092 = vmatprep.mubr.msk.f32.mxu1 %vm296_vm0, %v12734_v9  ;;  %v12805_v36 = vpack.c.bf16 %v5683_v52, %v5682_v5 }
0x16a7   :  { %10898 = vmatprep.subr.bf16.mxu0 %v10897_v25  ;;  %10902 = vmatprep.subr.bf16.mxu1 %v12782_v62 }
0x16a8   :  { %10900 = vmatpush3.bf16.msra.mxu0 %v10897_v25  ;;  %13263 = vst [vmem:[#allocation40_spill] sm:$0xff] %v12805_v36 }
0x16a9   :  { %10093 = vmatmul.mubr.msk.f32.vlgmr.msra.gmra.mrb[32].mxu1 %vm296_vm0, %v12732_v28 }
0x16aa   :  { %10095 = vmatprep.mubr.msk.f32.mxu1 %vm296_vm0, %v12740_v55  ;;  %10904 = vmatpush3.bf16.msra.mxu1 %v12782_v62 }
0x16ab   :  { %10107 = vmatmul.mubr.msk.f32.vlgmr.msra.gmra.mrb[54].mxu0 %vm296_vm0, %v12047_v19  ;;  %10906 = vmatprep.subr.bf16.mxu1 %v12805_v36 }
0x16ac   :  { %10109 = vmatprep.mubr.msk.f32.mxu0 %vm296_vm0, %v12052_v20 }
0x16ad   :  { %10096 = vmatmul.mubr.msk.f32.gmra.mrb[34].mxu1 %vm296_vm0, %v12738_v10 }
0x16ae   :  { %10908 = vmatpush3.bf16.msra.mxu1 %v12805_v36 }
0x16af   :  { %10110 = vmatmul.mubr.msk.f32.gmra.mrb[56].mxu0 %vm296_vm0, %v12059_v21 }
0x16b0   :  { %10134 = vmatprep.mubr.msk.f32.mxu0 %vm296_vm0, %v12728_v41 }
0x177e   :  { %v10108_v48 = vpop.f32.mrb[54].mxu0 }
0x177f   :  { %v5676_v3 = vsub.f32 %v10108_v48, %v12732_v28  ;;  %v5656_v0 = vpop.f32.mrb[55].mxu0  ;;  %v12822_v28 = vld [vmem:[%s13181_s18] ss:$0 sm:$0xff] }
0x1780   :  { %v5675_v51 = vsub.f32 %v5656_v0, %v12734_v9 }
0x1782   :  { %v10111_v25 = vpop.f32.mrb[56].mxu0  ;;  %10120 = vmatprep.mubr.msk.f32.mxu1 %vm296_vm0, %v5675_v51 }
0x1783   :  { %v5678_v18 = vsub.f32 %v10111_v25, %v12738_v10  ;;  %v5666_v54 = vpop.f32.mrb[57].mxu0  ;;  %10121 = vmatmul.mubr.msk.f32.vlgmr.msra.gmra.mrb[32].mxu1 %vm296_vm0, %v5676_v3 }
0x1784   :  { %v5677_v5 = vsub.f32 %v5666_v54, %v12740_v55 }
0x1786   :  { %10123 = vmatprep.mubr.msk.f32.mxu1 %vm296_vm0, %v5677_v5 }
0x1787   :  { %10124 = vmatmul.mubr.msk.f32.gmra.mrb[34].mxu1 %vm296_vm0, %v5678_v18 }
0x1788   :  { %10168 = vmatprep.mubr.msk.f32.mxu1 %vm296_vm0, %v12035_v11 }
0x1856   :  { %v10122_v9 = vpop.f32.mrb[32].mxu1 }
0x1857   :  { %v5792_v10 = vadd.f32 %v10122_v9, %v12822_v28  ;;  %v5762_v52 = vpop.f32.mrb[33].mxu1 }
0x1858   :  { %v5791_v48 = vadd.f32 %v12822_v28, %v5762_v52 }
0x1859   :  { %v5800_v3 = vmin.f32 %v5792_v10, 0.0  ;;  %vm5796_vm9 = vcmp.gt.f32.partialorder %v5792_v10, 0.0 }
0x185a   :  { %v5799_v55 = vmin.f32 %v5791_v48, 0.0  ;;  %v10125_v0 = vpop.f32.mrb[34].mxu1  ;;  %vm5795_vm10 = vcmp.gt.f32.partialorder %v5791_v48, 0.0 }
0x185b   :  { %v5805_v51 = vmul.f32 1.442695, %v5800_v3  ;;  %v5794_v25 = vadd.f32 %v10125_v0, %v12822_v28  ;;  %v5772_v18 = vpop.f32.mrb[35].mxu1 }
0x185c   :  { %v5803_v54 = vmul.f32 1.442695, %v5799_v55  ;;  %v5793_v5 = vadd.f32 %v12822_v28, %v5772_v18 }
0x185d   :  { %11280 = vpow2.f32 %v5805_v51  ;;  %v5802_v36 = vmin.f32 %v5794_v25, 0.0  ;;  %vm5798_vm11 = vcmp.gt.f32.partialorder %v5794_v25, 0.0 }
0x185e   :  { %11282 = vpow2.f32 %v5803_v54  ;;  %v5801_v62 = vmin.f32 %v5793_v5, 0.0  ;;  %vm5797_vm12 = vcmp.gt.f32.partialorder %v5793_v5, 0.0 }
0x185f   :  { %v5809_v58 = vmul.f32 1.442695, %v5802_v36 }
0x1860   :  { %v5807_v50 = vmul.f32 1.442695, %v5801_v62 }
0x1861   :  { %11284 = vpow2.f32 %v5809_v58  ;;  %v5908_v58 = vld [vmem:[#allocation19 + $0x10] sm:$0xff] }
0x1862   :  { %11286 = vpow2.f32 %v5807_v50  ;;  %v5909_v50 = vld [vmem:[#allocation19 + $0x18] sm:$0xff] }
0x1867   :  { %v11281_v9 = vpop.eup %11280 }
0x1868   :  { %v11283_v52 = vpop.eup %11282  ;;  %v8735_v2 = vadd.f32 -1.0, %v11281_v9 }
0x1869   :  { %v8734_v41 = vadd.f32 -1.0, %v11283_v52 }
0x186a   :  { %v12828_v3 = vsel %vm5796_vm9, %v5792_v10, %v8735_v2  ;;  %v12840_v2 = vpack.c.bf16 %v5909_v50, %v5908_v58  ;;  %v5820_v10 = vld [vmem:[#allocation19] sm:$0xff]  ;;  %v13265_v58 = vmov 0.0   ;;  %v6557_v50 = vld [vmem:[#allocation16 + $0xf0] sm:$0xff] }
0x186b   :  { %v11285_v0 = vpop.eup %11284  ;;  %v12830_v55 = vsel %vm5795_vm10, %v5791_v48, %v8734_v41  ;;  %v5821_v48 = vld [vmem:[#allocation19 + $0x8] sm:$0xff] }
0x186c   :  { %v11287_v18 = vpop.eup %11286  ;;  %v8737_v51 = vadd.f32 -1.0, %v11285_v0  ;;  %v10909_v54 = vpack.c.bf16 %v12828_v3, %v12830_v55 }
0x186d   :  { %v8736_v62 = vadd.f32 -1.0, %v11287_v18 }
0x186e   :  { %v12834_v36 = vsel %vm5798_vm11, %v5794_v25, %v8737_v51  ;;  %10910 = vmatprep.subr.bf16.mxu0 %v10909_v54  ;;  %v12850_v25 = vpack.c.bf16 %v5821_v48, %v5820_v10  ;;  %v6710_v10 = vld [vmem:[#allocation16 + $0x148] sm:$0xff] }
0x186f   :  { %v12836_v9 = vsel %vm5797_vm12, %v5793_v5, %v8736_v62  ;;  %10912 = vmatpush3.bf16.msra.mxu0 %v10909_v54  ;;  %v13264_v62 = vmov 0.0|0.0  }
0x1870   :  { %v10913_v41 = vpack.c.bf16 %v12834_v36, %v12836_v9 }
0x1872   :  { %10914 = vmatprep.subr.bf16.mxu0 %v10913_v41 }
0x1873   :  { %10916 = vmatpush3.bf16.msra.mxu0 %v10913_v41  ;;  %v6709_v41 = vld [vmem:[#allocation16 + $0x140] sm:$0xff] }
0x1874   :  { %10918 = vmatprep.subr.bf16.mxu0 %v12840_v2 }
0x1876   :  { %10135 = vmatmul.mubr.msk.f32.vlgmr.msra.gmra.mrb[58].mxu0 %vm296_vm0, %v12752_v12 }
0x1877   :  { %10137 = vmatprep.mubr.msk.f32.mxu0 %vm296_vm0, %v12759_v32  ;;  %10920 = vmatpush3.bf16.msra.mxu0 %v12840_v2 }
0x1878   :  { %10922 = vmatprep.subr.bf16.mxu0 %v12850_v25 }
0x187a   :  { %10138 = vmatmul.mubr.msk.f32.gmra.mrb[60].mxu0 %vm296_vm0, %v12768_v45 }
0x1949   :  { %v10136_v5 = vpop.f32.mrb[58].mxu0 }
0x194a   :  { %v5888_v52 = vpop.f32.mrb[59].mxu0 }
0x194b   :  { %v10925_v0 = vpack.c.bf16 %v10136_v5, %v5888_v52  ;;  %10144 = vmatprep.mubr.msk.f32.mxu0 %vm923_vm7, %v5888_v52 }
0x194c   :  { %10145 = vmatmul.mubr.msk.f32.vlgmr.msra.gmra.mrb[62].mxu0 %vm923_vm7, %v10136_v5  ;;  %v13266_v5 = vrot.slane %v12470_v33, 2 }
0x194d   :  { %v10139_v18 = vpop.f32.mrb[60].mxu0  ;;  %10926 = vmatprep.subr.bf16.mxu1 %v10925_v0  ;;  %10924 = vmatpush3.bf16.msra.mxu0 %v12850_v25 }
0x194e   :  { %v5898_v51 = vpop.f32.mrb[61].mxu0  ;;  %10928 = vmatpush3.bf16.msra.mxu1 %v10925_v0 }
0x194f   :  { %v10929_v54 = vpack.c.bf16 %v10139_v18, %v5898_v51  ;;  %10147 = vmatprep.mubr.msk.f32.mxu0 %vm923_vm7, %v5898_v51  ;;  %v6711_v51 = vld [vmem:[#allocation16 + $0x150] sm:$0xff] }
0x1950   :  { %10148 = vmatmul.mubr.msk.f32.gmra.mrb[64].mxu0 %vm923_vm7, %v10139_v18  ;;  %v10998_v18 = vpack.c.bf16 %v6710_v10, %v6709_v41 }
0x1951   :  { %10154 = vmatprep.mubr.msk.f32.mxu0 %vm923_vm7, %v12830_v55  ;;  %10930 = vmatprep.subr.bf16.mxu1 %v10929_v54 }
0x1952   :  { %10932 = vmatpush3.bf16.msra.mxu1 %v10929_v54  ;;  %v6712_v54 = vld [vmem:[#allocation16 + $0x158] sm:$0xff] }
0x1953   :  { %10937 = vmatprep.subr.bf16.mxu1 %v13264_v62 }
0x1954   :  { %10155 = vmatmul.mubr.msk.f32.vlgmr.msra.gmra.mrb[62].mxu0 %vm923_vm7, %v12828_v3 }
0x1955   :  { %10157 = vmatprep.mubr.msk.f32.mxu0 %vm923_vm7, %v12836_v9  ;;  %10169 = vmatmul.mubr.msk.f32.vlgmr.msra.gmra.mrb[36].mxu1 %vm296_vm0, %v12047_v19 }
0x1956   :  { %10939 = vmatpush3.bf16.msra.mxu1 %v12494_v49  ;;  %10171 = vmatprep.mubr.msk.f32.mxu1 %vm296_vm0, %v12052_v20  ;;  %v12883_v49 = vrot.slane %v12440_v27, 1  ;;  %v6194_v27 = vld [vmem:[#allocation19 + $0x20] sm:$0xff] }
0x1957   :  { %10940 = vmatprep.subr.bf16.mxu1 %v13264_v62 }
0x1958   :  { %10158 = vmatmul.mubr.msk.f32.gmra.mrb[64].mxu0 %vm923_vm7, %v12834_v36 }
0x1959   :  { %10172 = vmatmul.mubr.msk.f32.gmra.mrb[38].mxu1 %vm296_vm0, %v12059_v21 }
0x195a   :  { %10942 = vmatpush3.bf16.msra.mxu1 %v12498_v24  ;;  %10200 = vmatprep.mubr.msk.f32.mxu1 %vm11648_vm14, %v13265_v58  ;;  %v6195_v24 = vld [vmem:[#allocation19 + $0x28] sm:$0xff] }
0x195b   :  { %10943 = vmatprep.subr.bf16.mxu1 %v13264_v62 }
0x195e   :  { %10945 = vmatpush3.bf16.msra.mxu1 %v12504_v29  ;;  %v12925_v29 = vpack.c.bf16 %v6195_v24, %v6194_v27  ;;  %v11001_v27 = vpack.c.bf16 %v6712_v54, %v6711_v51  ;;  %v6713_v24 = vld [vmem:[#allocation16 + $0x160] sm:$0xff]  ;;  %v13270_v54 = vrot.slane %v12470_v33, 1 }
0x195f   :  { %10946 = vmatprep.subr.bf16.mxu1 %v13264_v62 }
0x1960   :  { %10934 = vmatprep.subr.bf16.mxu0 %v12925_v29 }
0x1961   :  { %10936 = vmatpush3.bf16.msra.mxu0 %v12925_v29 }
0x1962   :  { %10948 = vmatpush3.bf16.msra.mxu1 %v12508_v35  ;;  %10949 = vmatprep.subr.bf16.mxu0 %v13264_v62 }
0x1963   :  { %10961 = vmatprep.subr.bf16.mxu1 %v13264_v62 }
0x1965   :  { %10201 = vmatmul.mubr.msk.f32.vlgmr.msra.gmra.mrb[40].mxu1 %vm3791_vm3, %v12883_v49 }
0x1966   :  { %10963 = vmatpush3.bf16.msra.mxu1 %v12532_v14  ;;  %10238 = vmatprep.mubr.msk.f32.mxu1 %vm11648_vm14, %v13265_v58 }
0x1967   :  { %10964 = vmatprep.subr.bf16.mxu1 %v13264_v62 }
0x196a   :  { %10966 = vmatpush3.bf16.msra.mxu1 %v12538_v39 }
0x196b   :  { %10967 = vmatprep.subr.bf16.mxu1 %v13264_v62 }
0x196e   :  { %10969 = vmatpush3.bf16.msra.mxu1 %v12544_v44 }
0x196f   :  { %10970 = vmatprep.subr.bf16.mxu1 %v13264_v62 }
0x1972   :  { %10972 = vmatpush3.bf16.msra.mxu1 %v12548_v46 }
0x1973   :  { %10985 = vmatprep.subr.bf16.mxu1 %v13264_v62 }
0x1975   :  { %10239 = vmatmul.mubr.msk.f32.vlgmr.msra.gmra.mrb[42].mxu1 %vm3791_vm3, %v12883_v49 }
0x1976   :  { %10987 = vmatpush3.bf16.msra.mxu1 %v12552_v53  ;;  %10276 = vmatprep.mubr.msk.f32.mxu1 %vm11648_vm14, %v13265_v58 }
0x1977   :  { %10988 = vmatprep.subr.bf16.mxu1 %v13264_v62 }
0x197a   :  { %10990 = vmatpush3.bf16.msra.mxu1 %v12558_v15 }
0x197b   :  { %10991 = vmatprep.subr.bf16.mxu1 %v13264_v62 }
0x197e   :  { %10993 = vmatpush3.bf16.msra.mxu1 %v12564_v59 }
0x197f   :  { %10994 = vmatprep.subr.bf16.mxu1 %v13264_v62 }
0x1982   :  { %10996 = vmatpush3.bf16.msra.mxu1 %v12568_v1  ;;  %v6552_v1 = vld [vmem:[#allocation16 + $0xc8] sm:$0xff] }
0x1983   :  { %11009 = vmatprep.subr.bf16.mxu1 %v13264_v62 }
0x1985   :  { %10277 = vmatmul.mubr.msk.f32.vlgmr.msra.gmra.mrb[44].mxu1 %vm3791_vm3, %v12883_v49 }
0x1986   :  { %11011 = vmatpush3.bf16.msra.mxu1 %v12572_v6  ;;  %10314 = vmatprep.mubr.msk.f32.mxu1 %vm11648_vm14, %v13265_v58 }
0x1987   :  { %11012 = vmatprep.subr.bf16.mxu1 %v13264_v62 }
0x198a   :  { %11014 = vmatpush3.bf16.msra.mxu1 %v12578_v17 }
0x198b   :  { %11015 = vmatprep.subr.bf16.mxu1 %v13264_v62 }
0x198e   :  { %11017 = vmatpush3.bf16.msra.mxu1 %v12584_v56 }
0x198f   :  { %11018 = vmatprep.subr.bf16.mxu1 %v13264_v62 }
0x1992   :  { %11020 = vmatpush3.bf16.msra.mxu1 %v12588_v31 }
0x1995   :  { %10315 = vmatmul.mubr.msk.f32.vlgmr.msra.gmra.mrb[46].mxu1 %vm3791_vm3, %v12883_v49 }
0x1996   :  { %10338 = vmatprep.mubr.msk.f32.mxu1 %vm4690_vm5, %v12594_v37  ;;  %v6554_v37 = vld [vmem:[#allocation16 + $0xd8] sm:$0xff] }
0x1a28   :  { %v10170_v35 = vpop.f32.mrb[36].mxu1 }
0x1a29   :  { %v6170_v14 = vpop.f32.mrb[37].mxu1  ;;  %v6190_v44 = vsub.f32 %v10170_v35, %v12828_v3  ;;  %v6555_v3 = vld [vmem:[#allocation16 + $0xe0] sm:$0xff]  ;;  %v6714_v35 = vld [vmem:[#allocation16 + $0x168] sm:$0xff] }
0x1a2a   :  { %v6189_v39 = vsub.f32 %v6170_v14, %v12830_v55  ;;  %v6556_v55 = vld [vmem:[#allocation16 + $0xe8] sm:$0xff]  ;;  %v11004_v14 = vpack.c.bf16 %v6714_v35, %v6713_v24 }
0x1a2c   :  { %v10173_v46 = vpop.f32.mrb[38].mxu1  ;;  %10178 = vmatprep.mubr.msk.f32.mxu0 %vm923_vm7, %v6189_v39  ;;  %v6715_v39 = vld [vmem:[#allocation16 + $0x170] sm:$0xff] }
0x1a2d   :  { %v6180_v53 = vpop.f32.mrb[39].mxu1  ;;  %10179 = vmatmul.mubr.msk.f32.vlgmr.msra.gmra.mrb[62].mxu0 %vm923_vm7, %v6190_v44  ;;  %v6192_v59 = vsub.f32 %v10173_v46, %v12834_v36  ;;  %v6558_v36 = vld [vmem:[#allocation16 + $0xf8] sm:$0xff] }
0x1a2e   :  { %v6191_v15 = vsub.f32 %v6180_v53, %v12836_v9  ;;  %10951 = vmatpush3.bf16.msra.mxu0 %v12512_v38  ;;  %v6551_v38 = vld [vmem:[#allocation16 + $0xc0] sm:$0xff]  ;;  %v10983_v9 = vpack.c.bf16 %v6558_v36, %v6557_v50  ;;  %v6716_v44 = vld [vmem:[#allocation16 + $0x178] sm:$0xff] }
0x1a2f   :  { %10952 = vmatprep.subr.bf16.mxu0 %v13264_v62  ;;  %v10974_v31 = vpack.c.bf16 %v6552_v1, %v6551_v38  ;;  %v11007_v46 = vpack.c.bf16 %v6716_v44, %v6715_v39  ;;  %v6867_v53 = vld [vmem:[#allocation16 + $0x1c0] sm:$0xff]  ;;  %v13267_v38 = vrot.slane %v12470_v33, 4 }
0x1a30   :  { %10181 = vmatprep.mubr.msk.f32.mxu0 %vm923_vm7, %v6191_v15  ;;  %v6868_v15 = vld [vmem:[#allocation16 + $0x1c8] sm:$0xff] }
0x1a31   :  { %10182 = vmatmul.mubr.msk.f32.gmra.mrb[64].mxu0 %vm923_vm7, %v6192_v59 }
0x1a32   :  { %10954 = vmatpush3.bf16.msra.mxu0 %v12518_v7  ;;  %10219 = vmatprep.mubr.msk.f32.mxu0 %vm11648_vm14, %v13265_v58  ;;  %v6553_v7 = vld [vmem:[#allocation16 + $0xd0] sm:$0xff] }
0x1a33   :  { %10955 = vmatprep.subr.bf16.mxu0 %v13264_v62 }
0x1a36   :  { %10957 = vmatpush3.bf16.msra.mxu0 %v12524_v43  ;;  %v10977_v43 = vpack.c.bf16 %v6554_v37, %v6553_v7  ;;  %v6871_v37 = vld [vmem:[#allocation16 + $0x1e0] sm:$0xff] }
0x1a37   :  { %10958 = vmatprep.subr.bf16.mxu0 %v13264_v62 }
0x1a38   :  { %v6388_v6 = vpop.f32.mrb[40].mxu1 }
0x1a39   :  { %v6389_v17 = vadd.f32 %v6388_v6, %v12470_v33  ;;  %v10202_v56 = vpop.f32.mrb[41].mxu1 }
0x1a3a   :  { %10960 = vmatpush3.bf16.msra.mxu0 %v12528_v60  ;;  %v10980_v60 = vpack.c.bf16 %v6556_v55, %v6555_v3  ;;  %v6869_v56 = vld [vmem:[#allocation16 + $0x1d0] sm:$0xff] }
0x1a3b   :  { %6392 = vst.msk [vmem:[#allocation3] sm:$0x1] %vm4112_vm4, %v6389_v17  ;;  %10973 = vmatprep.subr.bf16.mxu0 %v13264_v62  ;;  %v11022_v17 = vpack.c.bf16 %v6868_v15, %v6867_v53  ;;  %v6873_v55 = vld [vmem:[#allocation16 + $0x1f0] sm:$0xff]  ;;  %v13272_v53 = vrot.slane %v12470_v33, 5 }
0x1a3d   :  { %10220 = vmatmul.mubr.msk.f32.vlgmr.msra.gmra.mrb[66].mxu0 %vm3791_vm3, %v12883_v49 }
0x1a3e   :  { %10975 = vmatpush3.bf16.msra.mxu0 %v10974_v31  ;;  %10257 = vmatprep.mubr.msk.f32.mxu0 %vm11648_vm14, %v13265_v58  ;;  %v6870_v31 = vld [vmem:[#allocation16 + $0x1d8] sm:$0xff] }
0x1a3f   :  { %10976 = vmatprep.subr.bf16.mxu0 %v13264_v62  ;;  %v11025_v7 = vpack.c.bf16 %v6870_v31, %v6869_v56  ;;  %v11305_v31 = vld [vmem:[%s13254_s5] sm:$0xff]  ;;  %s11650_s5 = smov [#allocation25]  }
0x1a40   :  { %s8551_s14 = sshll.u32 %s11650_s5, 4  ;;  %s8552_s14 = int_to_ptr.vmem [resolvable:$true] %s8551_s14 }
0x1a41   :  { %s11592_s22 = scalar_lea.vmem %s8552_s14, 32  ;;  %p11597_p7 = scmp.lt.s32.totalorder %s8552_s14, %s8552_s14 }
0x1a42   :  { %10978 = vmatpush3.bf16.msra.mxu0 %v10977_v43  ;;  %v6872_v43 = vld [vmem:[#allocation16 + $0x1e8] sm:$0xff]  ;;  %p11593_p6 = scmp.ne.s32.totalorder %s8552_s14, %s11592_s22  ;;  %p11598_p8 = scmp.lt.s32.totalorder %s11592_s22, %s11592_s22 }
0x1a43   :  { %10979 = vmatprep.subr.bf16.mxu0 %v13264_v62  ;;  %v11028_v3 = vpack.c.bf16 %v6872_v43, %v6871_v37 }
0x1a44   :  { %p11599_p9 = por %p11598_p8, %p11597_p7 }
0x1a46   :  { %10981 = vmatpush3.bf16.msra.mxu0 %v10980_v60  ;;  %v6874_v60 = vld [vmem:[#allocation16 + $0x1f8] sm:$0xff]  ;;  %p11600_p10 = pnand %p11599_p9, %p11593_p6 }
0x1a47   :  { %10982 = vmatprep.subr.bf16.mxu0 %v13264_v62  ;;  %v11031_v50 = vpack.c.bf16 %v6874_v60, %v6873_v55 }
0x1a48   :  { %v6546_v48 = vpop.f32.mrb[42].mxu1 }
0x1a49   :  { %v6547_v52 = vadd.f32 %v6546_v48, %v13266_v5  ;;  %v10240_v0 = vpop.f32.mrb[43].mxu1 }
0x1a4a   :  { %10984 = vmatpush3.bf16.msra.mxu0 %v10983_v9  ;;  %v13268_v9 = vrot.slane %v12470_v33, 6 }
0x1a4b   :  { %6550 = vst.msk [vmem:[#allocation3 + $0x2] sm:$0x1] %vm4112_vm4, %v6547_v52  ;;  %10997 = vmatprep.subr.bf16.mxu0 %v13264_v62 }
0x1a4d   :  { %10258 = vmatmul.mubr.msk.f32.vlgmr.msra.gmra.mrb[68].mxu0 %vm3791_vm3, %v12883_v49 }
0x1a4e   :  { %10999 = vmatpush3.bf16.msra.mxu0 %v10998_v18  ;;  %10295 = vmatprep.mubr.msk.f32.mxu0 %vm11648_vm14, %v13265_v58 }
0x1a4f   :  { %11000 = vmatprep.subr.bf16.mxu0 %v13264_v62 }
0x1a52   :  { %11002 = vmatpush3.bf16.msra.mxu0 %v11001_v27 }
0x1a53   :  { %11003 = vmatprep.subr.bf16.mxu0 %v13264_v62 }
0x1a56   :  { %11005 = vmatpush3.bf16.msra.mxu0 %v11004_v14  ;;  %v13271_v14 = vrot.slane %v12470_v33, 3 }
0x1a57   :  { %11006 = vmatprep.subr.bf16.mxu0 %v13264_v62 }
0x1a58   :  { %v6704_v59 = vpop.f32.mrb[44].mxu1 }
0x1a59   :  { %v6705_v1 = vadd.f32 %v6704_v59, %v13267_v38  ;;  %v10278_v6 = vpop.f32.mrb[45].mxu1 }
0x1a5a   :  { %11008 = vmatpush3.bf16.msra.mxu0 %v11007_v46 }
0x1a5b   :  { %6708 = vst.msk [vmem:[#allocation3 + $0x4] sm:$0x1] %vm4112_vm4, %v6705_v1  ;;  %11021 = vmatprep.subr.bf16.mxu0 %v13264_v62  ;;  %v13273_v1 = vrot.slane %v12470_v33, 7 }
0x1a5d   :  { %10296 = vmatmul.mubr.msk.f32.vlgmr.msra.gmra.mrb[70].mxu0 %vm3791_vm3, %v12883_v49 }
0x1a5e   :  { %11023 = vmatpush3.bf16.msra.mxu0 %v11022_v17  ;;  %10333 = vmatprep.mubr.msk.f32.mxu0 %vm11648_vm14, %v13265_v58  ;;  %v12989_v58 = vld [vmem:[%s13183_s20] ss:$0 sm:$0xff] }
0x1a5f   :  { %11024 = vmatprep.subr.bf16.mxu0 %v13264_v62 }
0x1a62   :  { %11026 = vmatpush3.bf16.msra.mxu0 %v11025_v7 }
0x1a63   :  { %11027 = vmatprep.subr.bf16.mxu0 %v13264_v62 }
0x1a66   :  { %11029 = vmatpush3.bf16.msra.mxu0 %v11028_v3 }
0x1a67   :  { %11030 = vmatprep.subr.bf16.mxu0 %v13264_v62 }
0x1a68   :  { %v6862_v36 = vpop.f32.mrb[46].mxu1 }
0x1a69   :  { %v6863_v41 = vadd.f32 %v6862_v36, %v13268_v9  ;;  %v10316_v10 = vpop.f32.mrb[47].mxu1 }
0x1a6a   :  { %11032 = vmatpush3.bf16.msra.mxu0 %v11031_v50 }
0x1a6b   :  { %6866 = vst.msk [vmem:[#allocation3 + $0x6] sm:$0x1] %vm4112_vm4, %v6863_v41 }
0x1a6d   :  { %10334 = vmatmul.mubr.msk.f32.vlgmr.msra.gmra.mrb[72].mxu0 %vm3791_vm3, %v12883_v49 }
0x1a6e   :  { %10374 = vmatprep.mubr.msk.f32.mxu0 %vm923_vm7, %v12116_v16 }
0x1b00   :  { %v10180_v62 = vpop.f32.mrb[62].mxu0 }
0x1b01   :  { %v6304_v48 = vadd.f32 %v10180_v62, %v12989_v58  ;;  %v6274_v5 = vpop.f32.mrb[63].mxu0 }
0x1b02   :  { %v6303_v52 = vadd.f32 %v12989_v58, %v6274_v5 }
0x1b03   :  { %6308 = vst [vmem:[%s13269_s23 + $0x8] sm:$0xff] %v6304_v48 }
0x1b04   :  { %6307 = vst [vmem:[%s13269_s23] sm:$0xff] %v6303_v52  ;;  %v10183_v16 = vpop.f32.mrb[64].mxu0 }
0x1b05   :  { %v6306_v49 = vadd.f32 %v10183_v16, %v12989_v58  ;;  %v6284_v0 = vpop.f32.mrb[65].mxu0 }
0x1b06   :  { %v6305_v18 = vadd.f32 %v12989_v58, %v6284_v0 }
0x1b07   :  { %6310 = vst [vmem:[%s13269_s23 + $0x18] sm:$0xff] %v6306_v49 }
0x1b08   :  { %6309 = vst [vmem:[%s13269_s23 + $0x10] sm:$0xff] %v6305_v18 }
0x1b10   :  { %v6467_v51 = vpop.f32.mrb[66].mxu0 }
0x1b11   :  { %v6468_v27 = vadd.f32 %v6467_v51, %v13270_v54  ;;  %v10221_v24 = vpop.f32.mrb[67].mxu0 }
0x1b13   :  { %6471 = vst.msk [vmem:[#allocation3 + $0x1] sm:$0x1] %vm4112_vm4, %v6468_v27 }
0x1b20   :  { %v6625_v35 = vpop.f32.mrb[68].mxu0 }
0x1b21   :  { %v6626_v39 = vadd.f32 %v6625_v35, %v13271_v14  ;;  %v10259_v44 = vpop.f32.mrb[69].mxu0 }
0x1b23   :  { %6629 = vst.msk [vmem:[#allocation3 + $0x3] sm:$0x1] %vm4112_vm4, %v6626_v39  ;;  %v13278_v39 = vld [vmem:[#allocation38_spill] sm:$0xff] }
0x1b30   :  { %v6783_v46 = vpop.f32.mrb[70].mxu0 }
0x1b31   :  { %v6784_v15 = vadd.f32 %v6783_v46, %v13272_v53  ;;  %v10297_v59 = vpop.f32.mrb[71].mxu0  ;;  %v13279_v46 = vld [vmem:[#allocation39_spill] sm:$0xff]  ;;  %v13280_v53 = vld [vmem:[#allocation40_spill] sm:$0xff] }
0x1b33   :  { %6787 = vst.msk [vmem:[#allocation3 + $0x5] sm:$0x1] %vm4112_vm4, %v6784_v15 }
0x1b40   :  { %v6941_v38 = vpop.f32.mrb[72].mxu0 }
0x1b41   :  { %v6942_v6 = vadd.f32 %v6941_v38, %v13273_v1  ;;  %v10335_v17 = vpop.f32.mrb[73].mxu0 }
0x1b43   :  { %6945 = vst.msk [vmem:[#allocation3 + $0x7] sm:$0x1] %vm4112_vm4, %v6942_v6 }
0x1b4a   :  { %v6946_v56 = vld [vmem:[#allocation3] sm:$0xff] }
0x1b4b   :  { %10336 = vmatprep.subr.mxu1 %v6946_v56 }
0x1b4c   :  { %10337 = vmatpush3.msra.mxu1 %v6946_v56 }
0x1b4d   :  { %10339 = vmatmul.mubr.msk.f32.vlgmr.msra.gmra.mrb[48].mxu1 %vm4690_vm5, %v12619_v13 }
0x1b4e   :  { %10345 = vmatprep.mubr.msk.f32.mxu1 %vm923_vm7, %v11305_v31 }
0x1c20   :  { %v10340_v7 = vpop.f32.mrb[48].mxu1 }
0x1c21   :  { %v7013_v37 = vpop.f32.mrb[49].mxu1 }
0x1c22   :  { %v11033_v43 = vpack.c.bf16 %v10340_v7, %v7013_v37 }
0x1c24   :  { %11034 = vmatprep.subr.bf16.mxu1 %v11033_v43 }
0x1c25   :  { %11036 = vmatpush3.bf16.msra.mxu1 %v11033_v43 }
0x1c26   :  { %11038 = vmatprep.subr.bf16.mxu1 %v12632_v30 }
0x1c28   :  { %10346 = vmatmul.mubr.msk.f32.vlgmr.msra.gmra.mrb[50].mxu1 %vm923_vm7, %v12646_v63 }
0x1c29   :  { %11040 = vmatpush3.bf16.msra.mxu1 %v12632_v30 }
0x1c2a   :  { %11042 = vmatprep.subr.bf16.mxu1 %v12637_v40 }
0x1c2d   :  { %11044 = vmatpush3.bf16.msra.mxu1 %v12637_v40 }
0x1c2e   :  { %11046 = vmatprep.subr.bf16.mxu1 %v12658_v22 }
0x1cfb   :  { %v10347_v33 = vpop.f32.mrb[50].mxu1 }
0x1cfc   :  { %v7093_v13 = vpop.f32.mrb[51].mxu1 }
0x1cfd   :  { %v11053_v3 = vpack.c.bf16 %v10347_v33, %v7093_v13  ;;  %10356 = vmatprep.mubr.msk.f32.mxu1 %vm296_vm0, %v7093_v13 }
0x1cfe   :  { %10357 = vmatmul.mubr.msk.f32.vlgmr.msra.gmra.mrb[52].mxu1 %vm296_vm0, %v10347_v33 }
0x1cff   :  { %11048 = vmatpush3.bf16.msra.mxu1 %v12658_v22  ;;  %10367 = vmatprep.mubr.msk.f32.mxu1 %vm296_vm0, %v7013_v37 }
0x1d00   :  { %11054 = vmatprep.subr.bf16.mxu0 %v11053_v3  ;;  %11050 = vmatprep.subr.bf16.mxu1 %v12667_v47 }
0x1d01   :  { %11056 = vmatpush3.bf16.msra.mxu0 %v11053_v3 }
0x1d03   :  { %11052 = vmatpush3.bf16.msra.mxu1 %v12667_v47 }
0x1d04   :  { %10375 = vmatmul.mubr.msk.f32.vlgmr.msra.gmra.mrb[74].mxu0 %vm923_vm7, %v12125_v23  ;;  %11058 = vmatprep.subr.bf16.mxu1 %v12680_v61 }
0x1d05   :  { %10392 = vmatprep.mubr.msk.f32.mxu0 %vm923_vm7, %v12702_v42 }
0x1d06   :  { %10368 = vmatmul.mubr.msk.f32.vlgmr.msra.gmra.mrb[52].mxu1 %vm296_vm0, %v10340_v7 }
0x1d07   :  { %11060 = vmatpush3.bf16.msra.mxu1 %v12680_v61 }
0x1d08   :  { %11062 = vmatprep.subr.bf16.mxu1 %v12694_v4 }
0x1d0b   :  { %11064 = vmatpush3.bf16.msra.mxu1 %v12694_v4 }
0x1dd7   :  { %v10376_v30 = vpop.f32.mrb[74].mxu0 }
0x1dd8   :  { %v7344_v40 = vsub.f32 %v10376_v30, %v10340_v7  ;;  %v7334_v63 = vpop.f32.mrb[75].mxu0 }
0x1dd9   :  { %v7343_v22 = vsub.f32 %v7334_v63, %v7013_v37 }
0x1ddb   :  { %10385 = vmatprep.mubr.msk.f32.mxu1 %vm296_vm0, %v7343_v22 }
0x1ddc   :  { %10386 = vmatmul.mubr.msk.f32.vlgmr.msra.gmra.mrb[52].mxu1 %vm296_vm0, %v7344_v40 }
0x1ddd   :  { %10448 = vmatprep.mubr.msk.f32.mxu1 %vm296_vm0, %v12035_v11 }
0x1eaf   :  { %v10387_v23 = vpop.f32.mrb[52].mxu1 }
0x1eb0   :  { %v7439_v47 = vadd.f32 %v10387_v23, %v12709_v57  ;;  %v7421_v42 = vpop.f32.mrb[53].mxu1 }
0x1eb1   :  { %v7438_v61 = vadd.f32 %v12709_v57, %v7421_v42  ;;  %v13274_v57 = vld [vmem:[#allocation34_spill] sm:$0xff] }
0x1eb2   :  { %v7443_v55 = vmin.f32 %v7439_v47, 0.0  ;;  %vm7441_vm13 = vcmp.gt.f32.partialorder %v7439_v47, 0.0 }
0x1eb3   :  { %v7442_v60 = vmin.f32 %v7438_v61, 0.0  ;;  %vm7440_vm14 = vcmp.gt.f32.partialorder %v7438_v61, 0.0 }
0x1eb4   :  { %v7446_v4 = vmul.f32 1.442695, %v7443_v55 }
0x1eb5   :  { %v7444_v50 = vmul.f32 1.442695, %v7442_v60 }
0x1eb6   :  { %11288 = vpow2.f32 %v7446_v4 }
0x1eb7   :  { %11290 = vpow2.f32 %v7444_v50 }
0x1ec0   :  { %v11289_v36 = vpop.eup %11288 }
0x1ec1   :  { %v11291_v9 = vpop.eup %11290  ;;  %v8789_v41 = vadd.f32 -1.0, %v11289_v36 }
0x1ec2   :  { %v8788_v10 = vadd.f32 -1.0, %v11291_v9 }
0x1ec3   :  { %v7451_v62 = vsel %vm7441_vm13, %v7439_v47, %v8789_v41 }
0x1ec4   :  { %v7450_v48 = vsel %vm7440_vm14, %v7438_v61, %v8788_v10 }
0x1ec5   :  { %v11065_v5 = vpack.c.bf16 %v7451_v62, %v7450_v48 }
0x1ec7   :  { %11066 = vmatprep.subr.bf16.mxu0 %v11065_v5 }
0x1ec8   :  { %11068 = vmatpush3.bf16.msra.mxu0 %v11065_v5 }
0x1ecb   :  { %10393 = vmatmul.mubr.msk.f32.vlgmr.msra.gmra.mrb[76].mxu0 %vm923_vm7, %v12713_v34  ;;  %v13275_v34 = vld [vmem:[#allocation35_spill] sm:$0xff] }
0x1ecc   :  { %10395 = vmatprep.mubr.msk.f32.mxu0 %vm923_vm7, %v12715_v8  ;;  %v13276_v8 = vld [vmem:[#allocation36_spill] sm:$0xff] }
0x1ecf   :  { %10396 = vmatmul.mubr.msk.f32.gmra.mrb[78].mxu0 %vm923_vm7, %v12721_v26  ;;  %v13277_v26 = vld [vmem:[#allocation37_spill] sm:$0xff] }
0x1ed0   :  { %10406 = vmatprep.mubr.msk.f32.mxu0 %vm296_vm0, %v13274_v57 }
0x1f9e   :  { %v10394_v52 = vpop.f32.mrb[76].mxu0 }
0x1f9f   :  { %v7518_v16 = vpop.f32.mrb[77].mxu0 }
0x1fa0   :  { %v11069_v49 = vpack.c.bf16 %v10394_v52, %v7518_v16 }
0x1fa2   :  { %v10397_v0 = vpop.f32.mrb[78].mxu0  ;;  %11070 = vmatprep.subr.bf16.mxu0 %v11069_v49 }
0x1fa3   :  { %v7528_v18 = vpop.f32.mrb[79].mxu0  ;;  %11072 = vmatpush3.bf16.msra.mxu0 %v11069_v49 }
0x1fa4   :  { %v11073_v51 = vpack.c.bf16 %v10397_v0, %v7528_v18 }
0x1fa6   :  { %11074 = vmatprep.subr.bf16.mxu0 %v11073_v51 }
0x1fa7   :  { %11076 = vmatpush3.bf16.msra.mxu0 %v11073_v51 }
0x1fa8   :  { %11078 = vmatprep.subr.bf16.mxu0 %v13275_v34 }
0x1faa   :  { %10407 = vmatmul.mubr.msk.f32.vlgmr.msra.gmra.mrb[80].mxu0 %vm296_vm0, %v12752_v12 }
0x1fab   :  { %10409 = vmatprep.mubr.msk.f32.mxu0 %vm296_vm0, %v12759_v32  ;;  %11080 = vmatpush3.bf16.msra.mxu0 %v13275_v34 }
0x1fac   :  { %11082 = vmatprep.subr.bf16.mxu0 %v13276_v8 }
0x1fae   :  { %10410 = vmatmul.mubr.msk.f32.gmra.mrb[82].mxu0 %vm296_vm0, %v12768_v45 }
0x1faf   :  { %11084 = vmatpush3.bf16.msra.mxu0 %v13276_v8 }
0x1fb0   :  { %11086 = vmatprep.subr.bf16.mxu0 %v13277_v26 }
0x207d   :  { %v10408_v54 = vpop.f32.mrb[80].mxu0 }
0x207e   :  { %v7608_v27 = vpop.f32.mrb[81].mxu0 }
0x207f   :  { %v11093_v24 = vpack.c.bf16 %v10408_v54, %v7608_v27  ;;  %10420 = vmatprep.mubr.msk.f32.mxu0 %vm296_vm0, %v7608_v27 }
0x2080   :  { %10421 = vmatmul.mubr.msk.f32.vlgmr.msra.gmra.mrb[84].mxu0 %vm296_vm0, %v10408_v54 }
0x2081   :  { %v10411_v35 = vpop.f32.mrb[82].mxu0  ;;  %11088 = vmatpush3.bf16.msra.mxu0 %v13277_v26  ;;  %11094 = vmatprep.subr.bf16.mxu1 %v11093_v24 }
0x2082   :  { %v7618_v14 = vpop.f32.mrb[83].mxu0  ;;  %11096 = vmatpush3.bf16.msra.mxu1 %v11093_v24  ;;  %11090 = vmatprep.subr.bf16.mxu0 %v13278_v39 }
0x2083   :  { %v11097_v44 = vpack.c.bf16 %v10411_v35, %v7618_v14  ;;  %10423 = vmatprep.mubr.msk.f32.mxu0 %vm296_vm0, %v7618_v14 }
0x2084   :  { %10424 = vmatmul.mubr.msk.f32.gmra.mrb[86].mxu0 %vm296_vm0, %v10411_v35 }
0x2085   :  { %11092 = vmatpush3.bf16.msra.mxu0 %v13278_v39  ;;  %10434 = vmatprep.mubr.msk.f32.mxu0 %vm296_vm0, %v7518_v16 }
0x2086   :  { %11098 = vmatprep.subr.bf16.mxu1 %v11097_v44  ;;  %11102 = vmatprep.subr.bf16.mxu0 %v13279_v46 }
0x2087   :  { %11100 = vmatpush3.bf16.msra.mxu1 %v11097_v44 }
0x2088   :  { %10435 = vmatmul.mubr.msk.f32.vlgmr.msra.gmra.mrb[84].mxu0 %vm296_vm0, %v10394_v52 }
0x2089   :  { %10437 = vmatprep.mubr.msk.f32.mxu0 %vm296_vm0, %v7528_v18  ;;  %11104 = vmatpush3.bf16.msra.mxu0 %v13279_v46 }
0x208a   :  { %10449 = vmatmul.mubr.msk.f32.vlgmr.msra.gmra.mrb[54].mxu1 %vm296_vm0, %v12047_v19  ;;  %11106 = vmatprep.subr.bf16.mxu0 %v13280_v53 }
0x208b   :  { %10451 = vmatprep.mubr.msk.f32.mxu1 %vm296_vm0, %v12052_v20 }
0x208c   :  { %10438 = vmatmul.mubr.msk.f32.gmra.mrb[86].mxu0 %vm296_vm0, %v10397_v0 }
0x208d   :  { %11108 = vmatpush3.bf16.msra.mxu0 %v13280_v53 }
0x208e   :  { %10452 = vmatmul.mubr.msk.f32.gmra.mrb[56].mxu1 %vm296_vm0, %v12059_v21 }
0x208f   :  { %10476 = vmatprep.mubr.msk.f32.mxu1 %vm296_vm0, %v13274_v57 }
0x215d   :  { %v10450_v15 = vpop.f32.mrb[54].mxu1 }
0x215e   :  { %v7911_v59 = vsub.f32 %v10450_v15, %v10394_v52  ;;  %v7891_v38 = vpop.f32.mrb[55].mxu1 }
0x215f   :  { %v7910_v1 = vsub.f32 %v7891_v38, %v7518_v16 }
0x2161   :  { %v10453_v6 = vpop.f32.mrb[56].mxu1  ;;  %10462 = vmatprep.mubr.msk.f32.mxu0 %vm296_vm0, %v7910_v1 }
0x2162   :  { %v7913_v17 = vsub.f32 %v10453_v6, %v10397_v0  ;;  %v7901_v56 = vpop.f32.mrb[57].mxu1  ;;  %10463 = vmatmul.mubr.msk.f32.vlgmr.msra.gmra.mrb[84].mxu0 %vm296_vm0, %v7911_v59 }
0x2163   :  { %v7912_v31 = vsub.f32 %v7901_v56, %v7528_v18 }
0x2165   :  { %10465 = vmatprep.mubr.msk.f32.mxu0 %vm296_vm0, %v7912_v31 }
0x2166   :  { %10466 = vmatmul.mubr.msk.f32.gmra.mrb[86].mxu0 %vm296_vm0, %v7913_v17 }
0x2167   :  { %10510 = vmatprep.mubr.msk.f32.mxu0 %vm296_vm0, %v12035_v11 }
0x2235   :  { %v10464_v7 = vpop.f32.mrb[84].mxu0 }
0x2236   :  { %v8026_v37 = vadd.f32 %v10464_v7, %v12822_v28  ;;  %v7996_v43 = vpop.f32.mrb[85].mxu0 }
0x2237   :  { %v8025_v33 = vadd.f32 %v12822_v28, %v7996_v43 }
0x2238   :  { %v8034_v13 = vmin.f32 %v8026_v37, 0.0  ;;  %vm8030_vm15 = vcmp.gt.f32.partialorder %v8026_v37, 0.0 }
0x2239   :  { %v8033_v3 = vmin.f32 %v8025_v33, 0.0  ;;  %v10467_v30 = vpop.f32.mrb[86].mxu0  ;;  %vm8029_vm1 = vcmp.gt.f32.partialorder %v8025_v33, 0.0 }
0x223a   :  { %v8039_v40 = vmul.f32 1.442695, %v8034_v13  ;;  %v8028_v63 = vadd.f32 %v10467_v30, %v12822_v28  ;;  %v8006_v22 = vpop.f32.mrb[87].mxu0 }
0x223b   :  { %v8037_v23 = vmul.f32 1.442695, %v8033_v3  ;;  %v8027_v47 = vadd.f32 %v12822_v28, %v8006_v22 }
0x223c   :  { %11292 = vpow2.f32 %v8039_v40  ;;  %v8036_v42 = vmin.f32 %v8028_v63, 0.0  ;;  %vm8032_vm2 = vcmp.gt.f32.partialorder %v8028_v63, 0.0 }
0x223d   :  { %11294 = vpow2.f32 %v8037_v23  ;;  %v8035_v11 = vmin.f32 %v8027_v47, 0.0  ;;  %vm8031_vm3 = vcmp.gt.f32.partialorder %v8027_v47, 0.0 }
0x223e   :  { %v8043_v61 = vmul.f32 1.442695, %v8036_v42 }
0x223f   :  { %v8041_v55 = vmul.f32 1.442695, %v8035_v11 }
0x2240   :  { %11296 = vpow2.f32 %v8043_v61 }
0x2241   :  { %11298 = vpow2.f32 %v8041_v55 }
0x2246   :  { %v11293_v60 = vpop.eup %11292 }
0x2247   :  { %v11295_v4 = vpop.eup %11294  ;;  %v8816_v50 = vadd.f32 -1.0, %v11293_v60 }
0x2248   :  { %v8815_v36 = vadd.f32 -1.0, %v11295_v4 }
0x2249   :  { %v8050_v9 = vsel %vm8030_vm15, %v8026_v37, %v8816_v50 }
0x224a   :  { %v11297_v41 = vpop.eup %11296  ;;  %v8049_v10 = vsel %vm8029_vm1, %v8025_v33, %v8815_v36 }
0x224b   :  { %v11299_v62 = vpop.eup %11298  ;;  %v8818_v48 = vadd.f32 -1.0, %v11297_v41  ;;  %v11109_v28 = vpack.c.bf16 %v8050_v9, %v8049_v10 }
0x224c   :  { %v8817_v5 = vadd.f32 -1.0, %v11299_v62 }
0x224d   :  { %v8052_v57 = vsel %vm8032_vm2, %v8028_v63, %v8818_v48  ;;  %11110 = vmatprep.subr.bf16.mxu1 %v11109_v28 }
0x224e   :  { %v8051_v52 = vsel %vm8031_vm3, %v8027_v47, %v8817_v5  ;;  %11112 = vmatpush3.bf16.msra.mxu1 %v11109_v28 }
0x224f   :  { %v11113_v16 = vpack.c.bf16 %v8052_v57, %v8051_v52 }
0x2251   :  { %11114 = vmatprep.subr.bf16.mxu1 %v11113_v16 }
0x2252   :  { %11116 = vmatpush3.bf16.msra.mxu1 %v11113_v16 }
0x2253   :  { %11118 = vmatprep.subr.bf16.mxu1 %v12840_v2 }
0x2255   :  { %10477 = vmatmul.mubr.msk.f32.vlgmr.msra.gmra.mrb[58].mxu1 %vm296_vm0, %v12752_v12 }
0x2256   :  { %10479 = vmatprep.mubr.msk.f32.mxu1 %vm296_vm0, %v12759_v32  ;;  %11120 = vmatpush3.bf16.msra.mxu1 %v12840_v2 }
0x2257   :  { %11122 = vmatprep.subr.bf16.mxu1 %v12850_v25 }
0x2259   :  { %10480 = vmatmul.mubr.msk.f32.gmra.mrb[60].mxu1 %vm296_vm0, %v12768_v45 }
0x2328   :  { %v10478_v49 = vpop.f32.mrb[58].mxu1 }
0x2329   :  { %v8122_v0 = vpop.f32.mrb[59].mxu1 }
0x232a   :  { %v11125_v18 = vpack.c.bf16 %v10478_v49, %v8122_v0  ;;  %10486 = vmatprep.mubr.msk.f32.mxu1 %vm923_vm7, %v8122_v0 }
0x232b   :  { %10487 = vmatmul.mubr.msk.f32.vlgmr.msra.gmra.mrb[62].mxu1 %vm923_vm7, %v10478_v49 }
0x232c   :  { %v10481_v51 = vpop.f32.mrb[60].mxu1  ;;  %11126 = vmatprep.subr.bf16.mxu0 %v11125_v18  ;;  %11124 = vmatpush3.bf16.msra.mxu1 %v12850_v25 }
0x232d   :  { %v8132_v12 = vpop.f32.mrb[61].mxu1  ;;  %11128 = vmatpush3.bf16.msra.mxu0 %v11125_v18  ;;  %11134 = vmatprep.subr.bf16.mxu1 %v12925_v29 }
0x232e   :  { %v11129_v32 = vpack.c.bf16 %v10481_v51, %v8132_v12  ;;  %10489 = vmatprep.mubr.msk.f32.mxu1 %vm923_vm7, %v8132_v12 }
0x232f   :  { %10490 = vmatmul.mubr.msk.f32.gmra.mrb[64].mxu1 %vm923_vm7, %v10481_v51 }
0x2330   :  { %10496 = vmatprep.mubr.msk.f32.mxu1 %vm923_vm7, %v8049_v10  ;;  %11130 = vmatprep.subr.bf16.mxu0 %v11129_v32 }
0x2331   :  { %11132 = vmatpush3.bf16.msra.mxu0 %v11129_v32 }
0x2333   :  { %10497 = vmatmul.mubr.msk.f32.vlgmr.msra.gmra.mrb[62].mxu1 %vm923_vm7, %v8050_v9 }
0x2334   :  { %10499 = vmatprep.mubr.msk.f32.mxu1 %vm923_vm7, %v8051_v52  ;;  %10511 = vmatmul.mubr.msk.f32.vlgmr.msra.gmra.mrb[88].mxu0 %vm296_vm0, %v12047_v19 }
0x2335   :  { %10513 = vmatprep.mubr.msk.f32.mxu0 %vm296_vm0, %v12052_v20  ;;  %11136 = vmatpush3.bf16.msra.mxu1 %v12925_v29 }
0x2337   :  { %10500 = vmatmul.mubr.msk.f32.gmra.mrb[64].mxu1 %vm923_vm7, %v8052_v57 }
0x2338   :  { %10514 = vmatmul.mubr.msk.f32.gmra.mrb[90].mxu0 %vm296_vm0, %v12059_v21 }
0x2407   :  { %v10512_v45 = vpop.f32.mrb[88].mxu0 }
0x2408   :  { %v8403_v2 = vpop.f32.mrb[89].mxu0  ;;  %v8423_v34 = vsub.f32 %v10512_v45, %v8050_v9 }
0x2409   :  { %v8422_v25 = vsub.f32 %v8403_v2, %v8049_v10 }
0x240b   :  { %v10515_v8 = vpop.f32.mrb[90].mxu0  ;;  %10520 = vmatprep.mubr.msk.f32.mxu1 %vm923_vm7, %v8422_v25 }
0x240c   :  { %v8413_v26 = vpop.f32.mrb[91].mxu0  ;;  %10521 = vmatmul.mubr.msk.f32.vlgmr.msra.gmra.mrb[62].mxu1 %vm923_vm7, %v8423_v34  ;;  %v8425_v54 = vsub.f32 %v10515_v8, %v8052_v57 }
0x240d   :  { %v8424_v19 = vsub.f32 %v8413_v26, %v8051_v52 }
0x240f   :  { %10523 = vmatprep.mubr.msk.f32.mxu1 %vm923_vm7, %v8424_v19 }
0x2410   :  { %10524 = vmatmul.mubr.msk.f32.gmra.mrb[64].mxu1 %vm923_vm7, %v8425_v54 }
0x2411   :  { %11603 = shalt.err (!%p11600_p10)
}
0x2412   :  { %s13281_s26 = sld [smem:[#allocation55_spill]] }
0x2418   :  { %s11604_s15 = scalar_lea.hbm %s13281_s26, 32 }
0x2419   :  { %p11605_p11 = scmp.ne.s32.totalorder %s13281_s26, %s11604_s15  ;;  %p11608_p12 = scmp.lt.u32.totalorder %s11604_s15, %s13281_s26 }
0x241b   :  { %p11610_p13 = pnand %p11608_p12, %p11605_p11 }
0x241d   :  { %11613 = shalt.err (!%p11610_p13)
}
0x241e   :  { %8554 = dma.vmem_to_hbm [thread:$0]  %s8552_s14, 32, %s13281_s26, [#allocation6]  }
0x24df   :  { %v10522_v20 = vpop.f32.mrb[62].mxu1 }
0x24e0   :  { %v8536_v21 = vadd.f32 %v10522_v20, %v12989_v58  ;;  %v8506_v29 = vpop.f32.mrb[63].mxu1 }
0x24e1   :  { %v8535_v27 = vadd.f32 %v12989_v58, %v8506_v29 }
0x24e2   :  { %8540 = vst [vmem:[%s13269_s23 + $0x28] sm:$0xff] %v8536_v21 }
0x24e3   :  { %8539 = vst [vmem:[%s13269_s23 + $0x20] sm:$0xff] %v8535_v27  ;;  %v10525_v24 = vpop.f32.mrb[64].mxu1 }
0x24e4   :  { %v8538_v35 = vadd.f32 %v10525_v24, %v12989_v58  ;;  %v8516_v14 = vpop.f32.mrb[65].mxu1 }
0x24e5   :  { %v8537_v39 = vadd.f32 %v12989_v58, %v8516_v14 }
0x24e6   :  { %8542 = vst [vmem:[%s13269_s23 + $0x38] sm:$0xff] %v8538_v35 }
0x24e7   :  { %8541 = vst [vmem:[%s13269_s23 + $0x30] sm:$0xff] %v8537_v39 }
0x24e8   :  { %11628 = dma.done.wait [#allocation6], 32  }
0x24e9   :  { %11629 = vsyncadd [#allocation6], 4294967264 }
0x24ea   :  { %8560 = vsyncpa [#allocation5], 1 }
0x24eb   :  { %8561 = vsyncpa [#allocation8], 1 }
0x24ec   :  { %8562 = vsyncpa [#allocation11], 1 }
0x24ed   :  { %8563 = vsyncpa [#allocation14], 1 }
0x24ee   :  { %8564 = vsyncpa [#allocation17], 1 }
0x24ef   :  { %8565 = vsyncpa [#allocation20], 1 }
0x24f0   :  { %8566 = vsyncpa [#allocation23], 1 }
0x24f1   :  { %8567 = vsyncpa [#allocation6], 1 }

</bundles_post_ra>
